<compile_context>
chip_gen: v7x
topology: tpu7x:2x2x1
jax: 0.10.0
libtpu: 0.0.40
codegen_flags: <defaults>
</compile_context>

<pallas_src>
import jax
import jax.numpy as jnp
from jax.experimental import pallas as pl
from jax.experimental.pallas import tpu as pltpu


D_IN = 3 * 64 * 64          # 12288
HIDDEN = [64, 256, 256, 64]
D_LATENT = 5
TM_MAX = 256                # batch tile; safe on v7x (64 MiB VMEM), good on v5e/v6e too


def _round_up(n, m):
    return ((n + m - 1) // m) * m


def _mlp_kernel(x_ref,
                w0_ref, b0_ref,
                w1_ref, b1_ref,
                w2_ref, b2_ref,
                w3_ref, b3_ref,
                w4_ref, b4_ref,
                o_ref):
    """One batch tile of the 5-layer MLP.

    x_ref : (tm, 12288) bf16
    wK    : (in_k, out_k) bf16 (resident across the whole grid)
    bK    : (1, out_k)   f32
    o_ref : (tm, 5)      f32
    """
    h = jnp.dot(x_ref[...], w0_ref[...], preferred_element_type=jnp.float32) + b0_ref[...]
    h = jnp.maximum(h, 0.0).astype(jnp.bfloat16)
    h = jnp.dot(h, w1_ref[...], preferred_element_type=jnp.float32) + b1_ref[...]
    h = jnp.maximum(h, 0.0).astype(jnp.bfloat16)
    h = jnp.dot(h, w2_ref[...], preferred_element_type=jnp.float32) + b2_ref[...]
    h = jnp.maximum(h, 0.0).astype(jnp.bfloat16)
    h = jnp.dot(h, w3_ref[...], preferred_element_type=jnp.float32) + b3_ref[...]
    h = jnp.maximum(h, 0.0).astype(jnp.bfloat16)
    y = jnp.dot(h, w4_ref[...], preferred_element_type=jnp.float32) + b4_ref[...]
    o_ref[...] = y.astype(o_ref.dtype)


def init_params(key):
    """Deterministic LeCun/Kaiming-style init, weights stored (in, out), f32 master copy."""
    dims = [D_IN] + HIDDEN + [D_LATENT]
    params = []
    for i in range(len(dims) - 1):
        key, wk, bk = jax.random.split(key, 3)
        scale = 1.0 / jnp.sqrt(jnp.float32(dims[i]))
        w = jax.random.uniform(wk, (dims[i], dims[i + 1]), jnp.float32, -scale, scale)
        b = jax.random.uniform(bk, (dims[i + 1],), jnp.float32, -scale, scale)
        params.append((w, b))
    return params


def prepare_params(params):
    """One-time conversion for the kernel: weights -> bf16 (halves the dominant W0
    HBM traffic, native MXU path), biases -> (1, out) f32."""
    return [(w.astype(jnp.bfloat16), b.reshape(1, -1).astype(jnp.float32))
            for (w, b) in params]


@jax.jit
def supervised_chambers_forward(x, prepared_params):
    """x: (B, 3, 64, 64) float32 (NCHW). Returns (B, 5) float32."""
    B = x.shape[0]
    # Same flatten order as torch .view(B, -1); cast activations to bf16.
    x_flat = x.reshape(B, -1).astype(jnp.bfloat16)

    # Batch tile: multiple of 8 sublanes, capped at TM_MAX; pad batch to a tile multiple.
    tm = min(TM_MAX, _round_up(B, 8))
    B_pad = _round_up(B, tm)
    if B_pad != B:
        x_flat = jnp.pad(x_flat, ((0, B_pad - B), (0, 0)))

    flat_args = []
    in_specs = [pl.BlockSpec((tm, D_IN), lambda i: (i, 0))]       # streamed batch tiles
    for w, b in prepared_params:
        flat_args.append(w)
        in_specs.append(pl.BlockSpec(w.shape, lambda i: (0, 0)))  # resident weight
        flat_args.append(b)
        in_specs.append(pl.BlockSpec(b.shape, lambda i: (0, 0)))  # resident bias

    # TODO(synk): for repeated small-batch serving, amortize the weight DMA further
    # with a cross-call weight-prefetch (SEMAPHORE/VMEM outputs) instead of
    # re-streaming ~1.75 MiB of bf16 weights per call.
    out = pl.pallas_call(
        _mlp_kernel,
        out_shape=jax.ShapeDtypeStruct((B_pad, D_LATENT), jnp.float32),
        grid=(B_pad // tm,),
        in_specs=in_specs,
        out_specs=pl.BlockSpec((tm, D_LATENT), lambda i: (i, 0)),
        compiler_params=pltpu.CompilerParams(
            dimension_semantics=("parallel",),
            vmem_limit_bytes=48 << 20,
        ),
    )(x_flat, *flat_args)
    return out[:B]


def _reference_forward(x, prepared_params):
    """Pure-JAX reference mirroring the kernel's numerics (bf16 inputs, f32 accumulation)."""
    h = x.reshape(x.shape[0], -1).astype(jnp.bfloat16)
    n = len(prepared_params)
    for i, (w, b) in enumerate(prepared_params):
        h = jnp.dot(h, w, preferred_element_type=jnp.float32) + b
        if i < n - 1:
            h = jnp.maximum(h, 0.0).astype(jnp.bfloat16)
    return h


if __name__ == "__main__":
    key = jax.random.PRNGKey(0)
    pkey, xkey = jax.random.split(key)

    params = init_params(pkey)
    prepared = prepare_params(params)          # one-time bf16 conversion

    # Module's in_dim fixes the image size: (B, 3, 64, 64); small batch B=2.
    x = jax.random.normal(xkey, (2, 3, 64, 64), jnp.float32)

    y = supervised_chambers_forward(x, prepared)
    y = jax.block_until_ready(y)

    y_ref = _reference_forward(x, prepared)
    assert y.shape == (2, 5)
    assert jnp.allclose(y, y_ref, atol=1e-2, rtol=1e-2), float(jnp.max(jnp.abs(y - y_ref)))

    print("KERNEL_OK")
</pallas_src>

<mosaic_0001>
module attributes {stable_mosaic.version = 11 : i64} {
  func.func @_mlp_kernel(%arg0: i32, %arg1: memref<8x12288xbf16, #tpu.memory_space<vmem>>, %arg2: memref<12288x64xbf16, #tpu.memory_space<vmem>>, %arg3: memref<1x64xf32, #tpu.memory_space<vmem>>, %arg4: memref<64x256xbf16, #tpu.memory_space<vmem>>, %arg5: memref<1x256xf32, #tpu.memory_space<vmem>>, %arg6: memref<256x256xbf16, #tpu.memory_space<vmem>>, %arg7: memref<1x256xf32, #tpu.memory_space<vmem>>, %arg8: memref<256x64xbf16, #tpu.memory_space<vmem>>, %arg9: memref<1x64xf32, #tpu.memory_space<vmem>>, %arg10: memref<64x5xbf16, #tpu.memory_space<vmem>>, %arg11: memref<1x5xf32, #tpu.memory_space<vmem>>, %arg12: memref<8x5xf32, #tpu.memory_space<vmem>>) attributes {dimension_semantics = [#tpu.dimension_semantics<parallel>], iteration_bounds = array<i64: 1>, scalar_prefetch = 0 : i64, scratch_operands = 0 : i64, tpu.core_type = #tpu.core_type<tc>, window_params = [{transform_indices = @transform_0, window_bounds = array<i64: 8, 12288>}, {pipeline_mode = #tpu.pipeline_mode<synchronous>, transform_indices = @transform_1, window_bounds = array<i64: 12288, 64>}, {pipeline_mode = #tpu.pipeline_mode<synchronous>, transform_indices = @transform_2, window_bounds = array<i64: 1, 64>}, {pipeline_mode = #tpu.pipeline_mode<synchronous>, transform_indices = @transform_3, window_bounds = array<i64: 64, 256>}, {pipeline_mode = #tpu.pipeline_mode<synchronous>, transform_indices = @transform_4, window_bounds = array<i64: 1, 256>}, {pipeline_mode = #tpu.pipeline_mode<synchronous>, transform_indices = @transform_5, window_bounds = array<i64: 256, 256>}, {pipeline_mode = #tpu.pipeline_mode<synchronous>, transform_indices = @transform_6, window_bounds = array<i64: 1, 256>}, {pipeline_mode = #tpu.pipeline_mode<synchronous>, transform_indices = @transform_7, window_bounds = array<i64: 256, 64>}, {pipeline_mode = #tpu.pipeline_mode<synchronous>, transform_indices = @transform_8, window_bounds = array<i64: 1, 64>}, {pipeline_mode = #tpu.pipeline_mode<synchronous>, transform_indices = @transform_9, window_bounds = array<i64: 64, 5>}, {pipeline_mode = #tpu.pipeline_mode<synchronous>, transform_indices = @transform_10, window_bounds = array<i64: 1, 5>}, {transform_indices = @transform_11, window_bounds = array<i64: 8, 5>}]} {
    %c0 = arith.constant 0 : index
    %c0_0 = arith.constant 0 : index
    %0 = vector.load %arg1[%c0, %c0_0] : memref<8x12288xbf16, #tpu.memory_space<vmem>>, vector<8x12288xbf16>
    %c0_1 = arith.constant 0 : index
    %c0_2 = arith.constant 0 : index
    %1 = vector.load %arg2[%c0_1, %c0_2] : memref<12288x64xbf16, #tpu.memory_space<vmem>>, vector<12288x64xbf16>
    %cst = arith.constant dense<0.000000e+00> : vector<8x64xf32>
    %2 = tpu.matmul %0, %1, %cst {dimension_numbers = #tpu.dot_dimension_numbers<[1], [0], [0], [1], [0, 0, 1, 1], [], []>} : vector<8x12288xbf16>, vector<12288x64xbf16>, vector<8x64xf32> -> vector<8x64xf32>
    %c0_3 = arith.constant 0 : index
    %c0_4 = arith.constant 0 : index
    %3 = vector.load %arg3[%c0_3, %c0_4] : memref<1x64xf32, #tpu.memory_space<vmem>>, vector<1x64xf32>
    %4 = vector.broadcast %3 : vector<1x64xf32> to vector<8x64xf32>
    %5 = arith.addf %2, %4 : vector<8x64xf32>
    %cst_5 = arith.constant 0.000000e+00 : f32
    %6 = vector.broadcast %cst_5 : f32 to vector<8x64xf32>
    %7 = arith.maximumf %5, %6 : vector<8x64xf32>
    %8 = arith.truncf %7 : vector<8x64xf32> to vector<8x64xbf16>
    %c0_6 = arith.constant 0 : index
    %c0_7 = arith.constant 0 : index
    %9 = vector.load %arg4[%c0_6, %c0_7] : memref<64x256xbf16, #tpu.memory_space<vmem>>, vector<64x256xbf16>
    %cst_8 = arith.constant dense<0.000000e+00> : vector<8x256xf32>
    %10 = tpu.matmul %8, %9, %cst_8 {dimension_numbers = #tpu.dot_dimension_numbers<[1], [0], [0], [1], [0, 0, 1, 1], [], []>} : vector<8x64xbf16>, vector<64x256xbf16>, vector<8x256xf32> -> vector<8x256xf32>
    %c0_9 = arith.constant 0 : index
    %c0_10 = arith.constant 0 : index
    %11 = vector.load %arg5[%c0_9, %c0_10] : memref<1x256xf32, #tpu.memory_space<vmem>>, vector<1x256xf32>
    %12 = vector.broadcast %11 : vector<1x256xf32> to vector<8x256xf32>
    %13 = arith.addf %10, %12 : vector<8x256xf32>
    %cst_11 = arith.constant 0.000000e+00 : f32
    %14 = vector.broadcast %cst_11 : f32 to vector<8x256xf32>
    %15 = arith.maximumf %13, %14 : vector<8x256xf32>
    %16 = arith.truncf %15 : vector<8x256xf32> to vector<8x256xbf16>
    %c0_12 = arith.constant 0 : index
    %c0_13 = arith.constant 0 : index
    %17 = vector.load %arg6[%c0_12, %c0_13] : memref<256x256xbf16, #tpu.memory_space<vmem>>, vector<256x256xbf16>
    %cst_14 = arith.constant dense<0.000000e+00> : vector<8x256xf32>
    %18 = tpu.matmul %16, %17, %cst_14 {dimension_numbers = #tpu.dot_dimension_numbers<[1], [0], [0], [1], [0, 0, 1, 1], [], []>} : vector<8x256xbf16>, vector<256x256xbf16>, vector<8x256xf32> -> vector<8x256xf32>
    %c0_15 = arith.constant 0 : index
    %c0_16 = arith.constant 0 : index
    %19 = vector.load %arg7[%c0_15, %c0_16] : memref<1x256xf32, #tpu.memory_space<vmem>>, vector<1x256xf32>
    %20 = vector.broadcast %19 : vector<1x256xf32> to vector<8x256xf32>
    %21 = arith.addf %18, %20 : vector<8x256xf32>
    %cst_17 = arith.constant 0.000000e+00 : f32
    %22 = vector.broadcast %cst_17 : f32 to vector<8x256xf32>
    %23 = arith.maximumf %21, %22 : vector<8x256xf32>
    %24 = arith.truncf %23 : vector<8x256xf32> to vector<8x256xbf16>
    %c0_18 = arith.constant 0 : index
    %c0_19 = arith.constant 0 : index
    %25 = vector.load %arg8[%c0_18, %c0_19] : memref<256x64xbf16, #tpu.memory_space<vmem>>, vector<256x64xbf16>
    %cst_20 = arith.constant dense<0.000000e+00> : vector<8x64xf32>
    %26 = tpu.matmul %24, %25, %cst_20 {dimension_numbers = #tpu.dot_dimension_numbers<[1], [0], [0], [1], [0, 0, 1, 1], [], []>} : vector<8x256xbf16>, vector<256x64xbf16>, vector<8x64xf32> -> vector<8x64xf32>
    %c0_21 = arith.constant 0 : index
    %c0_22 = arith.constant 0 : index
    %27 = vector.load %arg9[%c0_21, %c0_22] : memref<1x64xf32, #tpu.memory_space<vmem>>, vector<1x64xf32>
    %28 = vector.broadcast %27 : vector<1x64xf32> to vector<8x64xf32>
    %29 = arith.addf %26, %28 : vector<8x64xf32>
    %cst_23 = arith.constant 0.000000e+00 : f32
    %30 = vector.broadcast %cst_23 : f32 to vector<8x64xf32>
    %31 = arith.maximumf %29, %30 : vector<8x64xf32>
    %32 = arith.truncf %31 : vector<8x64xf32> to vector<8x64xbf16>
    %c0_24 = arith.constant 0 : index
    %c0_25 = arith.constant 0 : index
    %33 = vector.load %arg10[%c0_24, %c0_25] : memref<64x5xbf16, #tpu.memory_space<vmem>>, vector<64x5xbf16>
    %cst_26 = arith.constant dense<0.000000e+00> : vector<8x5xf32>
    %34 = tpu.matmul %32, %33, %cst_26 {dimension_numbers = #tpu.dot_dimension_numbers<[1], [0], [0], [1], [0, 0, 1, 1], [], []>} : vector<8x64xbf16>, vector<64x5xbf16>, vector<8x5xf32> -> vector<8x5xf32>
    %c0_27 = arith.constant 0 : index
    %c0_28 = arith.constant 0 : index
    %35 = vector.load %arg11[%c0_27, %c0_28] : memref<1x5xf32, #tpu.memory_space<vmem>>, vector<1x5xf32>
    %36 = vector.broadcast %35 : vector<1x5xf32> to vector<8x5xf32>
    %37 = arith.addf %34, %36 : vector<8x5xf32>
    %c0_29 = arith.constant 0 : index
    %c0_30 = arith.constant 0 : index
    %38 = vector.load %arg12[%c0_29, %c0_30] : memref<8x5xf32, #tpu.memory_space<vmem>>, vector<8x5xf32>
    tpu.vector_store %arg12[%c0_29, %c0_30], %37 {strides = array<i32>} : memref<8x5xf32, #tpu.memory_space<vmem>>, vector<8x5xf32>,
    return
  }
  func.func @transform_0(%arg0: i32) -> (i32, i32) {
    %c0_i32 = arith.constant 0 : i32
    %c0_i32_0 = arith.constant 0 : i32
    return %arg0, %c0_i32 : i32, i32
  }
  func.func @transform_1(%arg0: i32) -> (i32, i32) {
    %c0_i32 = arith.constant 0 : i32
    %c0_i32_0 = arith.constant 0 : i32
    %c0_i32_1 = arith.constant 0 : i32
    return %c0_i32, %c0_i32_0 : i32, i32
  }
  func.func @transform_2(%arg0: i32) -> (i32, i32) {
    %c0_i32 = arith.constant 0 : i32
    %c0_i32_0 = arith.constant 0 : i32
    %c0_i32_1 = arith.constant 0 : i32
    return %c0_i32, %c0_i32_0 : i32, i32
  }
  func.func @transform_3(%arg0: i32) -> (i32, i32) {
    %c0_i32 = arith.constant 0 : i32
    %c0_i32_0 = arith.constant 0 : i32
    %c0_i32_1 = arith.constant 0 : i32
    return %c0_i32, %c0_i32_0 : i32, i32
  }
  func.func @transform_4(%arg0: i32) -> (i32, i32) {
    %c0_i32 = arith.constant 0 : i32
    %c0_i32_0 = arith.constant 0 : i32
    %c0_i32_1 = arith.constant 0 : i32
    return %c0_i32, %c0_i32_0 : i32, i32
  }
  func.func @transform_5(%arg0: i32) -> (i32, i32) {
    %c0_i32 = arith.constant 0 : i32
    %c0_i32_0 = arith.constant 0 : i32
    %c0_i32_1 = arith.constant 0 : i32
    return %c0_i32, %c0_i32_0 : i32, i32
  }
  func.func @transform_6(%arg0: i32) -> (i32, i32) {
    %c0_i32 = arith.constant 0 : i32
    %c0_i32_0 = arith.constant 0 : i32
    %c0_i32_1 = arith.constant 0 : i32
    return %c0_i32, %c0_i32_0 : i32, i32
  }
  func.func @transform_7(%arg0: i32) -> (i32, i32) {
    %c0_i32 = arith.constant 0 : i32
    %c0_i32_0 = arith.constant 0 : i32
    %c0_i32_1 = arith.constant 0 : i32
    return %c0_i32, %c0_i32_0 : i32, i32
  }
  func.func @transform_8(%arg0: i32) -> (i32, i32) {
    %c0_i32 = arith.constant 0 : i32
    %c0_i32_0 = arith.constant 0 : i32
    %c0_i32_1 = arith.constant 0 : i32
    return %c0_i32, %c0_i32_0 : i32, i32
  }
  func.func @transform_9(%arg0: i32) -> (i32, i32) {
    %c0_i32 = arith.constant 0 : i32
    %c0_i32_0 = arith.constant 0 : i32
    %c0_i32_1 = arith.constant 0 : i32
    return %c0_i32, %c0_i32_0 : i32, i32
  }
  func.func @transform_10(%arg0: i32) -> (i32, i32) {
    %c0_i32 = arith.constant 0 : i32
    %c0_i32_0 = arith.constant 0 : i32
    %c0_i32_1 = arith.constant 0 : i32
    return %c0_i32, %c0_i32_0 : i32, i32
  }
  func.func @transform_11(%arg0: i32) -> (i32, i32) {
    %c0_i32 = arith.constant 0 : i32
    %c0_i32_0 = arith.constant 0 : i32
    return %arg0, %c0_i32 : i32, i32
  }
}

</mosaic_0001>

<bundles_post_ra>
// kernel: supervised_chambers_forward.1
= control target key start
LH: loop header
LB: loop body
LE: loop exit
PB: predicated region body
PF: predicated region fallthrough
CT: control target
= control target key end

     0   :  { %vm8556_vm0 = vcmask 523264   ;;  %vm12092_vm1 = vmmov 0   ;;  %vm9113_vm2 = vcmask 39936   ;;  %s14849_s1 = inlined_call_operand.vmem [shape: bf16[12288,64], index: 1, kind: input, shape index: {}]   ;;  %s14850_s0 = inlined_call_operand.vmem [shape: bf16[8,12288], index: 0, kind: input, shape index: {}]   ;;  %s14851_s2 = inlined_call_operand.vmem [shape: f32[1,64], index: 2, kind: input, shape index: {}]   ;;  %s14852_s3 = inlined_call_operand.vmem [shape: bf16[64,256], index: 3, kind: input, shape index: {}]   ;;  %s14853_s5 = inlined_call_operand.vmem [shape: bf16[256,256], index: 5, kind: input, shape index: {}]   ;;  %s14854_s7 = inlined_call_operand.vmem [shape: bf16[256,64], index: 7, kind: input, shape index: {}]   ;;  %s14855_s4 = inlined_call_operand.vmem [shape: f32[1,256], index: 4, kind: input, shape index: {}]   ;;  %s14856_s9 = inlined_call_operand.vmem [shape: bf16[64,5], index: 9, kind: input, shape index: {}]   ;;  %s14857_s6 = inlined_call_operand.vmem [shape: f32[1,256], index: 6, kind: input, shape index: {}]   ;;  %s14858_s8 = inlined_call_operand.vmem [shape: f32[1,64], index: 8, kind: input, shape index: {}]   ;;  %s14859_s10 = inlined_call_operand.vmem [shape: f32[1,5], index: 10, kind: input, shape index: {}]   ;;  %s14860_s11 = inlined_call_operand.vmem [shape: f32[8,5], index: 11, kind: output, shape index: {}]  }
   0x1   :  { %v11146_v0 = vld [vmem:[%s14849_s1 + $0x40] sm:$0xff]   ;;  %v11150_v4 = vld [vmem:[%s14849_s1 + $0x48] sm:$0xff]   ;;  %v11154_v8 = vld [vmem:[%s14849_s1 + $0x50] sm:$0xff]  }
   0x2   :  { %v11147_v1 = vld [vmem:[%s14849_s1 + $0xc0] sm:$0xff]   ;;  %10048 = vmatprep.subr.bf16.mxu0 %v11146_v0  ;;  %v11151_v5 = vld [vmem:[%s14849_s1 + $0xc8] sm:$0xff]   ;;  %v11155_v9 = vld [vmem:[%s14849_s1 + $0xd0] sm:$0xff]  }
   0x3   :  { %v11148_v2 = vld [vmem:[%s14849_s1] sm:$0xff]   ;;  %10070 = vmatprep.subr.bf16.mxu1 %v11147_v1  ;;  %v11152_v6 = vld [vmem:[%s14849_s1 + $0x8] sm:$0xff]   ;;  %v11156_v10 = vld [vmem:[%s14849_s1 + $0x10] sm:$0xff]  }
   0x4   :  { %v11149_v3 = vld [vmem:[%s14849_s1 + $0x80] sm:$0xff]   ;;  %10049 = vmatpush3.bf16.msra.mxu0 %v11148_v2  ;;  %v11153_v7 = vld [vmem:[%s14849_s1 + $0x88] sm:$0xff]   ;;  %v11157_v11 = vld [vmem:[%s14849_s1 + $0x90] sm:$0xff]  }
   0x5   :  { %10071 = vmatpush3.bf16.msra.mxu1 %v11149_v3  ;;  %10050 = vmatprep.subr.bf16.mxu0 %v11150_v4  ;;  %v11158_v12 = vld [vmem:[%s14849_s1 + $0x58] sm:$0xff]   ;;  %v11162_v16 = vld [vmem:[%s14849_s1 + $0x60] sm:$0xff]   ;;  %v11166_v20 = vld [vmem:[%s14849_s1 + $0x68] sm:$0xff]  }
   0x6   :  { %10072 = vmatprep.subr.bf16.mxu1 %v11151_v5  ;;  %v11159_v13 = vld [vmem:[%s14849_s1 + $0xd8] sm:$0xff]   ;;  %v11163_v17 = vld [vmem:[%s14849_s1 + $0xe0] sm:$0xff]   ;;  %v11167_v21 = vld [vmem:[%s14849_s1 + $0xe8] sm:$0xff]  }
   0x7   :  { %v11160_v14 = vld [vmem:[%s14849_s1 + $0x18] sm:$0xff]   ;;  %v11164_v18 = vld [vmem:[%s14849_s1 + $0x20] sm:$0xff]   ;;  %v11168_v22 = vld [vmem:[%s14849_s1 + $0x28] sm:$0xff]  }
   0x8   :  { %10051 = vmatpush3.bf16.msra.mxu0 %v11152_v6  ;;  %v11161_v15 = vld [vmem:[%s14849_s1 + $0x98] sm:$0xff]   ;;  %v11165_v19 = vld [vmem:[%s14849_s1 + $0xa0] sm:$0xff]   ;;  %v11169_v23 = vld [vmem:[%s14849_s1 + $0xa8] sm:$0xff]  }
   0x9   :  { %10073 = vmatpush3.bf16.msra.mxu1 %v11153_v7  ;;  %10052 = vmatprep.subr.bf16.mxu0 %v11154_v8  ;;  %v11170_v24 = vld [vmem:[%s14849_s1 + $0x70] sm:$0xff]   ;;  %v11174_v28 = vld [vmem:[%s14849_s1 + $0x78] sm:$0xff]   ;;  %v39_v32 = vld [vmem:[%s14850_s0] sm:$0xff] }
   0xa   :  { %10074 = vmatprep.subr.bf16.mxu1 %v11155_v9  ;;  %v11171_v25 = vld [vmem:[%s14849_s1 + $0xf0] sm:$0xff]   ;;  %v11175_v29 = vld [vmem:[%s14849_s1 + $0xf8] sm:$0xff]   ;;  %v40_v33 = vld [vmem:[%s14850_s0 + $0x8] sm:$0xff]  ;;  %v9120_v34 = vcombine.low %v39_v32, %v39_v32  ;;  %v9121_v35 = vcombine.high %v39_v32, %v39_v32 }
   0xb   :  { %v11172_v26 = vld [vmem:[%s14849_s1 + $0x30] sm:$0xff]   ;;  %v11176_v30 = vld [vmem:[%s14849_s1 + $0x38] sm:$0xff]   ;;  %v9122_v36 = vcombine.low %v40_v33, %v40_v33  ;;  %v9123_v37 = vcombine.high %v40_v33, %v40_v33  ;;  %v11182_v38 = vld [vmem:[%s14849_s1 + $0x140] sm:$0xff]  }
   0xc   :  { %10053 = vmatpush3.bf16.msra.mxu0 %v11156_v10  ;;  %v11173_v27 = vld [vmem:[%s14849_s1 + $0xb0] sm:$0xff]   ;;  %v11177_v31 = vld [vmem:[%s14849_s1 + $0xb8] sm:$0xff]   ;;  %v11183_v39 = vld [vmem:[%s14849_s1 + $0x1c0] sm:$0xff]   ;;  %6606 = vmatprep.mubr.bf16.mxu0 %v9121_v35 }
   0xd   :  { %10075 = vmatpush3.bf16.msra.mxu1 %v11157_v11  ;;  %10054 = vmatprep.subr.bf16.mxu0 %v11158_v12  ;;  %v11184_v40 = vld [vmem:[%s14849_s1 + $0x100] sm:$0xff]   ;;  %v11186_v42 = vld [vmem:[%s14849_s1 + $0x148] sm:$0xff]   ;;  %v11190_v46 = vld [vmem:[%s14849_s1 + $0x150] sm:$0xff]  }
   0xe   :  { %10076 = vmatprep.subr.bf16.mxu1 %v11159_v13  ;;  %6646 = vmatprep.mubr.bf16.mxu1 %v9123_v37  ;;  %v11185_v41 = vld [vmem:[%s14849_s1 + $0x180] sm:$0xff]   ;;  %v11187_v43 = vld [vmem:[%s14849_s1 + $0x1c8] sm:$0xff]   ;;  %v11191_v47 = vld [vmem:[%s14849_s1 + $0x1d0] sm:$0xff]  }
   0xf   :  { %v11188_v44 = vld [vmem:[%s14849_s1 + $0x108] sm:$0xff]   ;;  %v11192_v48 = vld [vmem:[%s14849_s1 + $0x110] sm:$0xff]   ;;  %v11194_v50 = vld [vmem:[%s14849_s1 + $0x158] sm:$0xff]  }
  0x10   :  { %10055 = vmatpush3.bf16.msra.mxu0 %v11160_v14  ;;  %v11189_v45 = vld [vmem:[%s14849_s1 + $0x188] sm:$0xff]   ;;  %v11193_v49 = vld [vmem:[%s14849_s1 + $0x190] sm:$0xff]   ;;  %v11195_v51 = vld [vmem:[%s14849_s1 + $0x1d8] sm:$0xff]  }
  0x11   :  { %10077 = vmatpush3.bf16.msra.mxu1 %v11161_v15  ;;  %10056 = vmatprep.subr.bf16.mxu0 %v11162_v16  ;;  %v11196_v52 = vld [vmem:[%s14849_s1 + $0x118] sm:$0xff]   ;;  %v11198_v54 = vld [vmem:[%s14849_s1 + $0x160] sm:$0xff]   ;;  %v11202_v58 = vld [vmem:[%s14849_s1 + $0x168] sm:$0xff]  }
  0x12   :  { %10078 = vmatprep.subr.bf16.mxu1 %v11163_v17  ;;  %v11197_v53 = vld [vmem:[%s14849_s1 + $0x198] sm:$0xff]   ;;  %v11199_v55 = vld [vmem:[%s14849_s1 + $0x1e0] sm:$0xff]   ;;  %v11203_v59 = vld [vmem:[%s14849_s1 + $0x1e8] sm:$0xff]  }
  0x13   :  { %v11200_v56 = vld [vmem:[%s14849_s1 + $0x120] sm:$0xff]   ;;  %v11204_v60 = vld [vmem:[%s14849_s1 + $0x128] sm:$0xff]   ;;  %v11206_v62 = vld [vmem:[%s14849_s1 + $0x170] sm:$0xff]  }
  0x14   :  { %10057 = vmatpush3.bf16.msra.mxu0 %v11164_v18  ;;  %v11201_v57 = vld [vmem:[%s14849_s1 + $0x1a0] sm:$0xff]   ;;  %v11205_v61 = vld [vmem:[%s14849_s1 + $0x1a8] sm:$0xff]   ;;  %v11207_v63 = vld [vmem:[%s14849_s1 + $0x1f0] sm:$0xff]  }
  0x15   :  { %10079 = vmatpush3.bf16.msra.mxu1 %v11165_v19  ;;  %10058 = vmatprep.subr.bf16.mxu0 %v11166_v20  ;;  %v11208_v0 = vld [vmem:[%s14849_s1 + $0x130] sm:$0xff]   ;;  %v11210_v2 = vld [vmem:[%s14849_s1 + $0x178] sm:$0xff]   ;;  %v11218_v12 = vld [vmem:[%s14849_s1 + $0x240] sm:$0xff]  }
  0x16   :  { %10080 = vmatprep.subr.bf16.mxu1 %v11167_v21  ;;  %v11209_v1 = vld [vmem:[%s14849_s1 + $0x1b0] sm:$0xff]   ;;  %v11211_v3 = vld [vmem:[%s14849_s1 + $0x1f8] sm:$0xff]   ;;  %v11219_v13 = vld [vmem:[%s14849_s1 + $0x2c0] sm:$0xff]  }
  0x17   :  { %v11212_v4 = vld [vmem:[%s14849_s1 + $0x138] sm:$0xff]   ;;  %v41_v6 = vld [vmem:[%s14850_s0 + $0x10] sm:$0xff]  ;;  %v11220_v14 = vld [vmem:[%s14849_s1 + $0x200] sm:$0xff]  }
  0x18   :  { %10059 = vmatpush3.bf16.msra.mxu0 %v11168_v22  ;;  %v11213_v5 = vld [vmem:[%s14849_s1 + $0x1b8] sm:$0xff]   ;;  %v9124_v7 = vcombine.low %v41_v6, %v41_v6  ;;  %v9125_v8 = vcombine.high %v41_v6, %v41_v6  ;;  %v11221_v15 = vld [vmem:[%s14849_s1 + $0x280] sm:$0xff]   ;;  %v11222_v16 = vld [vmem:[%s14849_s1 + $0x248] sm:$0xff]  }
  0x19   :  { %10081 = vmatpush3.bf16.msra.mxu1 %v11169_v23  ;;  %10060 = vmatprep.subr.bf16.mxu0 %v11170_v24  ;;  %v42_v9 = vld [vmem:[%s14850_s0 + $0x18] sm:$0xff]  ;;  %v11223_v17 = vld [vmem:[%s14849_s1 + $0x2c8] sm:$0xff]   ;;  %v11226_v20 = vld [vmem:[%s14849_s1 + $0x250] sm:$0xff]  }
  0x1a   :  { %10082 = vmatprep.subr.bf16.mxu1 %v11171_v25  ;;  %v9126_v10 = vcombine.low %v42_v9, %v42_v9  ;;  %v9127_v11 = vcombine.high %v42_v9, %v42_v9  ;;  %v11224_v18 = vld [vmem:[%s14849_s1 + $0x208] sm:$0xff]   ;;  %v11227_v21 = vld [vmem:[%s14849_s1 + $0x2d0] sm:$0xff]   ;;  %v11230_v24 = vld [vmem:[%s14849_s1 + $0x258] sm:$0xff]  }
  0x1b   :  { %v11225_v19 = vld [vmem:[%s14849_s1 + $0x288] sm:$0xff]   ;;  %v11228_v22 = vld [vmem:[%s14849_s1 + $0x210] sm:$0xff]   ;;  %v11231_v25 = vld [vmem:[%s14849_s1 + $0x2d8] sm:$0xff]  }
  0x1c   :  { %10061 = vmatpush3.bf16.msra.mxu0 %v11172_v26  ;;  %v11229_v23 = vld [vmem:[%s14849_s1 + $0x290] sm:$0xff]   ;;  %v11232_v26 = vld [vmem:[%s14849_s1 + $0x218] sm:$0xff]   ;;  %v11238_v32 = vld [vmem:[%s14849_s1 + $0x268] sm:$0xff]  }
  0x1d   :  { %10083 = vmatpush3.bf16.msra.mxu1 %v11173_v27  ;;  %10062 = vmatprep.subr.bf16.mxu0 %v11174_v28  ;;  %v11233_v27 = vld [vmem:[%s14849_s1 + $0x298] sm:$0xff]   ;;  %v11234_v28 = vld [vmem:[%s14849_s1 + $0x260] sm:$0xff]   ;;  %v11239_v33 = vld [vmem:[%s14849_s1 + $0x2e8] sm:$0xff]  }
  0x1e   :  { %10084 = vmatprep.subr.bf16.mxu1 %v11175_v29  ;;  %v11235_v29 = vld [vmem:[%s14849_s1 + $0x2e0] sm:$0xff]   ;;  %v11241_v35 = vld [vmem:[%s14849_s1 + $0x2a8] sm:$0xff]   ;;  %v11243_v37 = vld [vmem:[%s14849_s1 + $0x2f0] sm:$0xff]  }
  0x1f   :  { %v11274_v6 = vld [vmem:[%s14849_s1 + $0x368] sm:$0xff]  }
  0x20   :  { %10063 = vmatpush3.bf16.msra.mxu0 %v11176_v30  ;;  %v11236_v30 = vld [vmem:[%s14849_s1 + $0x220] sm:$0xff]   ;;  %v11277_v9 = vld [vmem:[%s14849_s1 + $0x3a8] sm:$0xff]  }
  0x21   :  { %10085 = vmatpush3.bf16.msra.mxu1 %v11177_v31  ;;  %10092 = vmatprep.subr.bf16.mxu0 %v11182_v38  ;;  %v11237_v31 = vld [vmem:[%s14849_s1 + $0x2a0] sm:$0xff]   ;;  %v11244_v38 = vld [vmem:[%s14849_s1 + $0x230] sm:$0xff]  }
  0x22   :  { %10114 = vmatprep.subr.bf16.mxu1 %v11183_v39  ;;  %v11245_v39 = vld [vmem:[%s14849_s1 + $0x2b0] sm:$0xff]  }
  0x23   :  { %6607 = vmatmul.mubr.bf16.vlgmr.msra.gmra.mrb[0].mxu0 %v9120_v34  ;;  %v11240_v34 = vld [vmem:[%s14849_s1 + $0x228] sm:$0xff]  }
  0x24   :  { %6647 = vmatmul.mubr.bf16.vlgmr.msra.gmra.mrb[0].mxu1 %v9122_v36  ;;  %10093 = vmatpush3.bf16.msra.mxu0 %v11184_v40  ;;  %v11242_v36 = vld [vmem:[%s14849_s1 + $0x270] sm:$0xff]   ;;  %v11246_v40 = vld [vmem:[%s14849_s1 + $0x278] sm:$0xff]  }
  0x25   :  { %10115 = vmatpush3.bf16.msra.mxu1 %v11185_v41  ;;  %10094 = vmatprep.subr.bf16.mxu0 %v11186_v42  ;;  %v11247_v41 = vld [vmem:[%s14849_s1 + $0x2f8] sm:$0xff]  }
  0x26   :  { %10116 = vmatprep.subr.bf16.mxu1 %v11187_v43  ;;  %6686 = vmatprep.mubr.bf16.mxu0 %v9125_v8  ;;  %v11248_v42 = vld [vmem:[%s14849_s1 + $0x238] sm:$0xff]   ;;  %v11276_v8 = vld [vmem:[%s14849_s1 + $0x328] sm:$0xff]  }
  0x27   :  { %6726 = vmatprep.mubr.bf16.mxu1 %v9127_v11  ;;  %v11249_v43 = vld [vmem:[%s14849_s1 + $0x2b8] sm:$0xff]   ;;  %v11279_v11 = vld [vmem:[%s14849_s1 + $0x3f0] sm:$0xff]  }
  0x28   :  { %10095 = vmatpush3.bf16.msra.mxu0 %v11188_v44  ;;  %v43_v44 = vld [vmem:[%s14850_s0 + $0x20] sm:$0xff] }
  0x29   :  { %10117 = vmatpush3.bf16.msra.mxu1 %v11189_v45  ;;  %10096 = vmatprep.subr.bf16.mxu0 %v11190_v46  ;;  %v44_v45 = vld [vmem:[%s14850_s0 + $0x28] sm:$0xff]  ;;  %v9128_v46 = vcombine.low %v43_v44, %v43_v44 }
  0x2a   :  { %10118 = vmatprep.subr.bf16.mxu1 %v11191_v47  ;;  %v9129_v47 = vcombine.high %v43_v44, %v43_v44  ;;  %v11310_v44 = vld [vmem:[%s14849_s1 + $0x468] sm:$0xff]  }
  0x2c   :  { %10097 = vmatpush3.bf16.msra.mxu0 %v11192_v48  ;;  %v9130_v48 = vcombine.low %v44_v45, %v44_v45 }
  0x2d   :  { %10119 = vmatpush3.bf16.msra.mxu1 %v11193_v49  ;;  %10098 = vmatprep.subr.bf16.mxu0 %v11194_v50  ;;  %v9131_v49 = vcombine.high %v44_v45, %v44_v45  ;;  %v11254_v50 = vld [vmem:[%s14849_s1 + $0x340] sm:$0xff]   ;;  %v11311_v45 = vld [vmem:[%s14849_s1 + $0x4e8] sm:$0xff]  }
  0x2e   :  { %10120 = vmatprep.subr.bf16.mxu1 %v11195_v51  ;;  %v11255_v51 = vld [vmem:[%s14849_s1 + $0x3c0] sm:$0xff]  }
  0x30   :  { %10099 = vmatpush3.bf16.msra.mxu0 %v11196_v52  ;;  %v11256_v52 = vld [vmem:[%s14849_s1 + $0x300] sm:$0xff]  }
  0x31   :  { %10121 = vmatpush3.bf16.msra.mxu1 %v11197_v53  ;;  %10100 = vmatprep.subr.bf16.mxu0 %v11198_v54  ;;  %v11257_v53 = vld [vmem:[%s14849_s1 + $0x380] sm:$0xff]   ;;  %v11258_v54 = vld [vmem:[%s14849_s1 + $0x348] sm:$0xff]  }
  0x32   :  { %10122 = vmatprep.subr.bf16.mxu1 %v11199_v55  ;;  %v11259_v55 = vld [vmem:[%s14849_s1 + $0x3c8] sm:$0xff]  }
  0x34   :  { %10101 = vmatpush3.bf16.msra.mxu0 %v11200_v56  ;;  %v11260_v56 = vld [vmem:[%s14849_s1 + $0x308] sm:$0xff]  }
  0x35   :  { %10123 = vmatpush3.bf16.msra.mxu1 %v11201_v57  ;;  %10102 = vmatprep.subr.bf16.mxu0 %v11202_v58  ;;  %v11261_v57 = vld [vmem:[%s14849_s1 + $0x388] sm:$0xff]   ;;  %v11262_v58 = vld [vmem:[%s14849_s1 + $0x350] sm:$0xff]  }
  0x36   :  { %10124 = vmatprep.subr.bf16.mxu1 %v11203_v59  ;;  %v11263_v59 = vld [vmem:[%s14849_s1 + $0x3d0] sm:$0xff]  }
  0x38   :  { %10103 = vmatpush3.bf16.msra.mxu0 %v11204_v60  ;;  %v11264_v60 = vld [vmem:[%s14849_s1 + $0x310] sm:$0xff]  }
  0x39   :  { %10125 = vmatpush3.bf16.msra.mxu1 %v11205_v61  ;;  %10104 = vmatprep.subr.bf16.mxu0 %v11206_v62  ;;  %v11265_v61 = vld [vmem:[%s14849_s1 + $0x390] sm:$0xff]   ;;  %v11266_v62 = vld [vmem:[%s14849_s1 + $0x358] sm:$0xff]  }
  0x3a   :  { %10126 = vmatprep.subr.bf16.mxu1 %v11207_v63  ;;  %v11267_v63 = vld [vmem:[%s14849_s1 + $0x3d8] sm:$0xff]  }
  0x3c   :  { %10105 = vmatpush3.bf16.msra.mxu0 %v11208_v0  ;;  %v11268_v0 = vld [vmem:[%s14849_s1 + $0x318] sm:$0xff]  }
  0x3d   :  { %10127 = vmatpush3.bf16.msra.mxu1 %v11209_v1  ;;  %10106 = vmatprep.subr.bf16.mxu0 %v11210_v2  ;;  %v11269_v1 = vld [vmem:[%s14849_s1 + $0x398] sm:$0xff]   ;;  %v11270_v2 = vld [vmem:[%s14849_s1 + $0x360] sm:$0xff]  }
  0x3e   :  { %10128 = vmatprep.subr.bf16.mxu1 %v11211_v3  ;;  %v11271_v3 = vld [vmem:[%s14849_s1 + $0x3e0] sm:$0xff]  }
  0x40   :  { %10107 = vmatpush3.bf16.msra.mxu0 %v11212_v4  ;;  %v11272_v4 = vld [vmem:[%s14849_s1 + $0x320] sm:$0xff]  }
  0x41   :  { %10129 = vmatpush3.bf16.msra.mxu1 %v11213_v5  ;;  %10136 = vmatprep.subr.bf16.mxu0 %v11218_v12  ;;  %v11273_v5 = vld [vmem:[%s14849_s1 + $0x3a0] sm:$0xff]   ;;  %v11280_v12 = vld [vmem:[%s14849_s1 + $0x330] sm:$0xff]  }
  0x42   :  { %10158 = vmatprep.subr.bf16.mxu1 %v11219_v13  ;;  %v11281_v13 = vld [vmem:[%s14849_s1 + $0x3b0] sm:$0xff]  }
  0x43   :  { %6687 = vmatmul.mubr.bf16.vlgmr.msra.gmra.mrb[4].mxu0 %v9124_v7  ;;  %v11275_v7 = vld [vmem:[%s14849_s1 + $0x3e8] sm:$0xff]  }
  0x44   :  { %6727 = vmatmul.mubr.bf16.vlgmr.msra.gmra.mrb[4].mxu1 %v9126_v10  ;;  %10137 = vmatpush3.bf16.msra.mxu0 %v11220_v14  ;;  %v11278_v10 = vld [vmem:[%s14849_s1 + $0x370] sm:$0xff]   ;;  %v11282_v14 = vld [vmem:[%s14849_s1 + $0x378] sm:$0xff]  }
  0x45   :  { %10159 = vmatpush3.bf16.msra.mxu1 %v11221_v15  ;;  %10138 = vmatprep.subr.bf16.mxu0 %v11222_v16  ;;  %v11283_v15 = vld [vmem:[%s14849_s1 + $0x3f8] sm:$0xff]  }
  0x46   :  { %10160 = vmatprep.subr.bf16.mxu1 %v11223_v17  ;;  %6766 = vmatprep.mubr.bf16.mxu0 %v9129_v47  ;;  %v11284_v16 = vld [vmem:[%s14849_s1 + $0x338] sm:$0xff]   ;;  %v11313_v47 = vld [vmem:[%s14849_s1 + $0x4a8] sm:$0xff]  }
  0x47   :  { %6806 = vmatprep.mubr.bf16.mxu1 %v9131_v49  ;;  %v11285_v17 = vld [vmem:[%s14849_s1 + $0x3b8] sm:$0xff]   ;;  %v11315_v49 = vld [vmem:[%s14849_s1 + $0x4f0] sm:$0xff]  }
  0x48   :  { %10139 = vmatpush3.bf16.msra.mxu0 %v11224_v18  ;;  %v45_v18 = vld [vmem:[%s14850_s0 + $0x30] sm:$0xff] }
  0x49   :  { %10161 = vmatpush3.bf16.msra.mxu1 %v11225_v19  ;;  %10140 = vmatprep.subr.bf16.mxu0 %v11226_v20  ;;  %v46_v19 = vld [vmem:[%s14850_s0 + $0x38] sm:$0xff]  ;;  %v9132_v20 = vcombine.low %v45_v18, %v45_v18 }
  0x4a   :  { %10162 = vmatprep.subr.bf16.mxu1 %v11227_v21  ;;  %v9133_v21 = vcombine.high %v45_v18, %v45_v18  ;;  %v11346_v18 = vld [vmem:[%s14849_s1 + $0x568] sm:$0xff]  }
  0x4c   :  { %10141 = vmatpush3.bf16.msra.mxu0 %v11228_v22  ;;  %v9134_v22 = vcombine.low %v46_v19, %v46_v19 }
  0x4d   :  { %10163 = vmatpush3.bf16.msra.mxu1 %v11229_v23  ;;  %10142 = vmatprep.subr.bf16.mxu0 %v11230_v24  ;;  %v11290_v23 = vld [vmem:[%s14849_s1 + $0x440] sm:$0xff]   ;;  %v9135_v24 = vcombine.high %v46_v19, %v46_v19  ;;  %v11347_v19 = vld [vmem:[%s14849_s1 + $0x5e8] sm:$0xff]  }
  0x4e   :  { %10164 = vmatprep.subr.bf16.mxu1 %v11231_v25  ;;  %v11291_v25 = vld [vmem:[%s14849_s1 + $0x4c0] sm:$0xff]  }
  0x50   :  { %10143 = vmatpush3.bf16.msra.mxu0 %v11232_v26  ;;  %v11292_v26 = vld [vmem:[%s14849_s1 + $0x400] sm:$0xff]  }
  0x51   :  { %10165 = vmatpush3.bf16.msra.mxu1 %v11233_v27  ;;  %10144 = vmatprep.subr.bf16.mxu0 %v11234_v28  ;;  %v11293_v27 = vld [vmem:[%s14849_s1 + $0x480] sm:$0xff]   ;;  %v11294_v28 = vld [vmem:[%s14849_s1 + $0x448] sm:$0xff]  }
  0x52   :  { %10166 = vmatprep.subr.bf16.mxu1 %v11235_v29  ;;  %v11295_v29 = vld [vmem:[%s14849_s1 + $0x4c8] sm:$0xff]  }
  0x54   :  { %10145 = vmatpush3.bf16.msra.mxu0 %v11236_v30  ;;  %v11296_v30 = vld [vmem:[%s14849_s1 + $0x408] sm:$0xff]  }
  0x55   :  { %10167 = vmatpush3.bf16.msra.mxu1 %v11237_v31  ;;  %10146 = vmatprep.subr.bf16.mxu0 %v11238_v32  ;;  %v11297_v31 = vld [vmem:[%s14849_s1 + $0x488] sm:$0xff]   ;;  %v11298_v32 = vld [vmem:[%s14849_s1 + $0x450] sm:$0xff]  }
  0x56   :  { %10168 = vmatprep.subr.bf16.mxu1 %v11239_v33  ;;  %v11299_v33 = vld [vmem:[%s14849_s1 + $0x4d0] sm:$0xff]  }
  0x58   :  { %10147 = vmatpush3.bf16.msra.mxu0 %v11240_v34  ;;  %v11300_v34 = vld [vmem:[%s14849_s1 + $0x410] sm:$0xff]  }
  0x59   :  { %10169 = vmatpush3.bf16.msra.mxu1 %v11241_v35  ;;  %10148 = vmatprep.subr.bf16.mxu0 %v11242_v36  ;;  %v11301_v35 = vld [vmem:[%s14849_s1 + $0x490] sm:$0xff]   ;;  %v11302_v36 = vld [vmem:[%s14849_s1 + $0x458] sm:$0xff]  }
  0x5a   :  { %10170 = vmatprep.subr.bf16.mxu1 %v11243_v37  ;;  %v11303_v37 = vld [vmem:[%s14849_s1 + $0x4d8] sm:$0xff]  }
  0x5c   :  { %10149 = vmatpush3.bf16.msra.mxu0 %v11244_v38  ;;  %v11304_v38 = vld [vmem:[%s14849_s1 + $0x418] sm:$0xff]  }
  0x5d   :  { %10171 = vmatpush3.bf16.msra.mxu1 %v11245_v39  ;;  %10150 = vmatprep.subr.bf16.mxu0 %v11246_v40  ;;  %v11305_v39 = vld [vmem:[%s14849_s1 + $0x498] sm:$0xff]   ;;  %v11306_v40 = vld [vmem:[%s14849_s1 + $0x460] sm:$0xff]  }
  0x5e   :  { %10172 = vmatprep.subr.bf16.mxu1 %v11247_v41  ;;  %v11307_v41 = vld [vmem:[%s14849_s1 + $0x4e0] sm:$0xff]  }
  0x60   :  { %10151 = vmatpush3.bf16.msra.mxu0 %v11248_v42  ;;  %v11308_v42 = vld [vmem:[%s14849_s1 + $0x420] sm:$0xff]  }
  0x61   :  { %10173 = vmatpush3.bf16.msra.mxu1 %v11249_v43  ;;  %10180 = vmatprep.subr.bf16.mxu0 %v11254_v50  ;;  %v11309_v43 = vld [vmem:[%s14849_s1 + $0x4a0] sm:$0xff]   ;;  %v11316_v50 = vld [vmem:[%s14849_s1 + $0x430] sm:$0xff]  }
  0x62   :  { %10202 = vmatprep.subr.bf16.mxu1 %v11255_v51  ;;  %v11317_v51 = vld [vmem:[%s14849_s1 + $0x4b0] sm:$0xff]  }
  0x63   :  { %6767 = vmatmul.mubr.bf16.vlgmr.msra.gmra.mrb[8].mxu0 %v9128_v46  ;;  %v11312_v46 = vld [vmem:[%s14849_s1 + $0x428] sm:$0xff]  }
  0x64   :  { %6807 = vmatmul.mubr.bf16.vlgmr.msra.gmra.mrb[8].mxu1 %v9130_v48  ;;  %10181 = vmatpush3.bf16.msra.mxu0 %v11256_v52  ;;  %v11314_v48 = vld [vmem:[%s14849_s1 + $0x470] sm:$0xff]   ;;  %v11318_v52 = vld [vmem:[%s14849_s1 + $0x478] sm:$0xff]  }
  0x65   :  { %10203 = vmatpush3.bf16.msra.mxu1 %v11257_v53  ;;  %10182 = vmatprep.subr.bf16.mxu0 %v11258_v54  ;;  %v11319_v53 = vld [vmem:[%s14849_s1 + $0x4f8] sm:$0xff]  }
  0x66   :  { %10204 = vmatprep.subr.bf16.mxu1 %v11259_v55  ;;  %6846 = vmatprep.mubr.bf16.mxu0 %v9133_v21  ;;  %v11320_v54 = vld [vmem:[%s14849_s1 + $0x438] sm:$0xff]   ;;  %v11349_v21 = vld [vmem:[%s14849_s1 + $0x5a8] sm:$0xff]  }
  0x67   :  { %6886 = vmatprep.mubr.bf16.mxu1 %v9135_v24  ;;  %v11321_v55 = vld [vmem:[%s14849_s1 + $0x4b8] sm:$0xff]   ;;  %v11352_v24 = vld [vmem:[%s14849_s1 + $0x530] sm:$0xff]  }
  0x68   :  { %10183 = vmatpush3.bf16.msra.mxu0 %v11260_v56  ;;  %v47_v56 = vld [vmem:[%s14850_s0 + $0x40] sm:$0xff] }
  0x69   :  { %10205 = vmatpush3.bf16.msra.mxu1 %v11261_v57  ;;  %10184 = vmatprep.subr.bf16.mxu0 %v11262_v58  ;;  %v9136_v57 = vcombine.low %v47_v56, %v47_v56  ;;  %v9137_v58 = vcombine.high %v47_v56, %v47_v56  ;;  %v11382_v56 = vld [vmem:[%s14849_s1 + $0x668] sm:$0xff]  }
  0x6a   :  { %10206 = vmatprep.subr.bf16.mxu1 %v11263_v59  ;;  %v48_v59 = vld [vmem:[%s14850_s0 + $0x48] sm:$0xff] }
  0x6c   :  { %10185 = vmatpush3.bf16.msra.mxu0 %v11264_v60  ;;  %v9138_v60 = vcombine.low %v48_v59, %v48_v59 }
  0x6d   :  { %10207 = vmatpush3.bf16.msra.mxu1 %v11265_v61  ;;  %10186 = vmatprep.subr.bf16.mxu0 %v11266_v62  ;;  %v9139_v61 = vcombine.high %v48_v59, %v48_v59  ;;  %v11326_v62 = vld [vmem:[%s14849_s1 + $0x540] sm:$0xff]   ;;  %v11385_v59 = vld [vmem:[%s14849_s1 + $0x6a8] sm:$0xff]  }
  0x6e   :  { %10208 = vmatprep.subr.bf16.mxu1 %v11267_v63  ;;  %v11327_v63 = vld [vmem:[%s14849_s1 + $0x5c0] sm:$0xff]  }
  0x70   :  { %10187 = vmatpush3.bf16.msra.mxu0 %v11268_v0  ;;  %v11328_v0 = vld [vmem:[%s14849_s1 + $0x500] sm:$0xff]  }
  0x71   :  { %10209 = vmatpush3.bf16.msra.mxu1 %v11269_v1  ;;  %10188 = vmatprep.subr.bf16.mxu0 %v11270_v2  ;;  %v11329_v1 = vld [vmem:[%s14849_s1 + $0x580] sm:$0xff]   ;;  %v11330_v2 = vld [vmem:[%s14849_s1 + $0x548] sm:$0xff]  }
  0x72   :  { %10210 = vmatprep.subr.bf16.mxu1 %v11271_v3  ;;  %v11331_v3 = vld [vmem:[%s14849_s1 + $0x5c8] sm:$0xff]  }
  0x74   :  { %10189 = vmatpush3.bf16.msra.mxu0 %v11272_v4  ;;  %v11332_v4 = vld [vmem:[%s14849_s1 + $0x508] sm:$0xff]  }
  0x75   :  { %10211 = vmatpush3.bf16.msra.mxu1 %v11273_v5  ;;  %10190 = vmatprep.subr.bf16.mxu0 %v11274_v6  ;;  %v11333_v5 = vld [vmem:[%s14849_s1 + $0x588] sm:$0xff]   ;;  %v11334_v6 = vld [vmem:[%s14849_s1 + $0x550] sm:$0xff]  }
  0x76   :  { %10212 = vmatprep.subr.bf16.mxu1 %v11275_v7  ;;  %v11335_v7 = vld [vmem:[%s14849_s1 + $0x5d0] sm:$0xff]  }
  0x78   :  { %10191 = vmatpush3.bf16.msra.mxu0 %v11276_v8  ;;  %v11336_v8 = vld [vmem:[%s14849_s1 + $0x510] sm:$0xff]  }
  0x79   :  { %10213 = vmatpush3.bf16.msra.mxu1 %v11277_v9  ;;  %10192 = vmatprep.subr.bf16.mxu0 %v11278_v10  ;;  %v11337_v9 = vld [vmem:[%s14849_s1 + $0x590] sm:$0xff]   ;;  %v11338_v10 = vld [vmem:[%s14849_s1 + $0x558] sm:$0xff]  }
  0x7a   :  { %10214 = vmatprep.subr.bf16.mxu1 %v11279_v11  ;;  %v11339_v11 = vld [vmem:[%s14849_s1 + $0x5d8] sm:$0xff]  }
  0x7c   :  { %10193 = vmatpush3.bf16.msra.mxu0 %v11280_v12  ;;  %v11340_v12 = vld [vmem:[%s14849_s1 + $0x518] sm:$0xff]  }
  0x7d   :  { %10215 = vmatpush3.bf16.msra.mxu1 %v11281_v13  ;;  %10194 = vmatprep.subr.bf16.mxu0 %v11282_v14  ;;  %v11341_v13 = vld [vmem:[%s14849_s1 + $0x598] sm:$0xff]   ;;  %v11342_v14 = vld [vmem:[%s14849_s1 + $0x560] sm:$0xff]  }
  0x7e   :  { %10216 = vmatprep.subr.bf16.mxu1 %v11283_v15  ;;  %v11343_v15 = vld [vmem:[%s14849_s1 + $0x5e0] sm:$0xff]  }
  0x80   :  { %10195 = vmatpush3.bf16.msra.mxu0 %v11284_v16  ;;  %v11344_v16 = vld [vmem:[%s14849_s1 + $0x520] sm:$0xff]  }
  0x81   :  { %10217 = vmatpush3.bf16.msra.mxu1 %v11285_v17  ;;  %10224 = vmatprep.subr.bf16.mxu0 %v11290_v23  ;;  %v11345_v17 = vld [vmem:[%s14849_s1 + $0x5a0] sm:$0xff]   ;;  %v11351_v23 = vld [vmem:[%s14849_s1 + $0x5f0] sm:$0xff]  }
  0x82   :  { %10246 = vmatprep.subr.bf16.mxu1 %v11291_v25  ;;  %v11353_v25 = vld [vmem:[%s14849_s1 + $0x5b0] sm:$0xff]  }
  0x83   :  { %6847 = vmatmul.mubr.bf16.vlgmr.msra.gmra.mrb[12].mxu0 %v9132_v20  ;;  %v11348_v20 = vld [vmem:[%s14849_s1 + $0x528] sm:$0xff]  }
  0x84   :  { %6887 = vmatmul.mubr.bf16.vlgmr.msra.gmra.mrb[12].mxu1 %v9134_v22  ;;  %10225 = vmatpush3.bf16.msra.mxu0 %v11292_v26  ;;  %v11350_v22 = vld [vmem:[%s14849_s1 + $0x570] sm:$0xff]   ;;  %v11354_v26 = vld [vmem:[%s14849_s1 + $0x578] sm:$0xff]  }
  0x85   :  { %10247 = vmatpush3.bf16.msra.mxu1 %v11293_v27  ;;  %10226 = vmatprep.subr.bf16.mxu0 %v11294_v28  ;;  %v11355_v27 = vld [vmem:[%s14849_s1 + $0x5f8] sm:$0xff]  }
  0x86   :  { %10248 = vmatprep.subr.bf16.mxu1 %v11295_v29  ;;  %6926 = vmatprep.mubr.bf16.mxu0 %v9137_v58  ;;  %v11356_v28 = vld [vmem:[%s14849_s1 + $0x538] sm:$0xff]   ;;  %v11384_v58 = vld [vmem:[%s14849_s1 + $0x628] sm:$0xff]  }
  0x87   :  { %6966 = vmatprep.mubr.bf16.mxu1 %v9139_v61  ;;  %v11357_v29 = vld [vmem:[%s14849_s1 + $0x5b8] sm:$0xff]   ;;  %v11387_v61 = vld [vmem:[%s14849_s1 + $0x6f0] sm:$0xff]  }
  0x88   :  { %10227 = vmatpush3.bf16.msra.mxu0 %v11296_v30  ;;  %v49_v30 = vld [vmem:[%s14850_s0 + $0x50] sm:$0xff] }
  0x89   :  { %10249 = vmatpush3.bf16.msra.mxu1 %v11297_v31  ;;  %10228 = vmatprep.subr.bf16.mxu0 %v11298_v32  ;;  %v50_v31 = vld [vmem:[%s14850_s0 + $0x58] sm:$0xff]  ;;  %v9140_v32 = vcombine.low %v49_v30, %v49_v30 }
  0x8a   :  { %10250 = vmatprep.subr.bf16.mxu1 %v11299_v33  ;;  %v9141_v33 = vcombine.high %v49_v30, %v49_v30  ;;  %v11417_v30 = vld [vmem:[%s14849_s1 + $0x7a0] sm:$0xff]  }
  0x8c   :  { %10229 = vmatpush3.bf16.msra.mxu0 %v11300_v34  ;;  %v9142_v34 = vcombine.low %v50_v31, %v50_v31 }
  0x8d   :  { %10251 = vmatpush3.bf16.msra.mxu1 %v11301_v35  ;;  %10230 = vmatprep.subr.bf16.mxu0 %v11302_v36  ;;  %v9143_v35 = vcombine.high %v50_v31, %v50_v31  ;;  %v11362_v36 = vld [vmem:[%s14849_s1 + $0x640] sm:$0xff]  }
  0x8e   :  { %10252 = vmatprep.subr.bf16.mxu1 %v11303_v37  ;;  %v11363_v37 = vld [vmem:[%s14849_s1 + $0x6c0] sm:$0xff]  }
  0x90   :  { %10231 = vmatpush3.bf16.msra.mxu0 %v11304_v38  ;;  %v11364_v38 = vld [vmem:[%s14849_s1 + $0x600] sm:$0xff]  }
  0x91   :  { %10253 = vmatpush3.bf16.msra.mxu1 %v11305_v39  ;;  %10232 = vmatprep.subr.bf16.mxu0 %v11306_v40  ;;  %v11365_v39 = vld [vmem:[%s14849_s1 + $0x680] sm:$0xff]   ;;  %v11366_v40 = vld [vmem:[%s14849_s1 + $0x648] sm:$0xff]  }
  0x92   :  { %10254 = vmatprep.subr.bf16.mxu1 %v11307_v41  ;;  %v11367_v41 = vld [vmem:[%s14849_s1 + $0x6c8] sm:$0xff]  }
  0x94   :  { %10233 = vmatpush3.bf16.msra.mxu0 %v11308_v42  ;;  %v11368_v42 = vld [vmem:[%s14849_s1 + $0x608] sm:$0xff]  }
  0x95   :  { %10255 = vmatpush3.bf16.msra.mxu1 %v11309_v43  ;;  %10234 = vmatprep.subr.bf16.mxu0 %v11310_v44  ;;  %v11369_v43 = vld [vmem:[%s14849_s1 + $0x688] sm:$0xff]   ;;  %v11370_v44 = vld [vmem:[%s14849_s1 + $0x650] sm:$0xff]  }
  0x96   :  { %10256 = vmatprep.subr.bf16.mxu1 %v11311_v45  ;;  %v11371_v45 = vld [vmem:[%s14849_s1 + $0x6d0] sm:$0xff]  }
  0x98   :  { %10235 = vmatpush3.bf16.msra.mxu0 %v11312_v46  ;;  %v11372_v46 = vld [vmem:[%s14849_s1 + $0x610] sm:$0xff]  }
  0x99   :  { %10257 = vmatpush3.bf16.msra.mxu1 %v11313_v47  ;;  %10236 = vmatprep.subr.bf16.mxu0 %v11314_v48  ;;  %v11373_v47 = vld [vmem:[%s14849_s1 + $0x690] sm:$0xff]   ;;  %v11374_v48 = vld [vmem:[%s14849_s1 + $0x658] sm:$0xff]  }
  0x9a   :  { %10258 = vmatprep.subr.bf16.mxu1 %v11315_v49  ;;  %v11375_v49 = vld [vmem:[%s14849_s1 + $0x6d8] sm:$0xff]  }
  0x9c   :  { %10237 = vmatpush3.bf16.msra.mxu0 %v11316_v50  ;;  %v11376_v50 = vld [vmem:[%s14849_s1 + $0x618] sm:$0xff]  }
  0x9d   :  { %10259 = vmatpush3.bf16.msra.mxu1 %v11317_v51  ;;  %10238 = vmatprep.subr.bf16.mxu0 %v11318_v52  ;;  %v11377_v51 = vld [vmem:[%s14849_s1 + $0x698] sm:$0xff]   ;;  %v11378_v52 = vld [vmem:[%s14849_s1 + $0x660] sm:$0xff]  }
  0x9e   :  { %10260 = vmatprep.subr.bf16.mxu1 %v11319_v53  ;;  %v11379_v53 = vld [vmem:[%s14849_s1 + $0x6e0] sm:$0xff]  }
  0xa0   :  { %10239 = vmatpush3.bf16.msra.mxu0 %v11320_v54  ;;  %v11380_v54 = vld [vmem:[%s14849_s1 + $0x620] sm:$0xff]  }
  0xa1   :  { %10261 = vmatpush3.bf16.msra.mxu1 %v11321_v55  ;;  %10268 = vmatprep.subr.bf16.mxu0 %v11326_v62  ;;  %v11381_v55 = vld [vmem:[%s14849_s1 + $0x6a0] sm:$0xff]   ;;  %v11388_v62 = vld [vmem:[%s14849_s1 + $0x630] sm:$0xff]  }
  0xa2   :  { %10290 = vmatprep.subr.bf16.mxu1 %v11327_v63  ;;  %v11389_v63 = vld [vmem:[%s14849_s1 + $0x6b0] sm:$0xff]  }
  0xa3   :  { %6927 = vmatmul.mubr.bf16.vlgmr.msra.gmra.mrb[16].mxu0 %v9136_v57  ;;  %v11383_v57 = vld [vmem:[%s14849_s1 + $0x6e8] sm:$0xff]  }
  0xa4   :  { %6967 = vmatmul.mubr.bf16.vlgmr.msra.gmra.mrb[16].mxu1 %v9138_v60  ;;  %10269 = vmatpush3.bf16.msra.mxu0 %v11328_v0  ;;  %v11386_v60 = vld [vmem:[%s14849_s1 + $0x670] sm:$0xff]   ;;  %v11390_v0 = vld [vmem:[%s14849_s1 + $0x678] sm:$0xff]  }
  0xa5   :  { %10291 = vmatpush3.bf16.msra.mxu1 %v11329_v1  ;;  %10270 = vmatprep.subr.bf16.mxu0 %v11330_v2  ;;  %v11391_v1 = vld [vmem:[%s14849_s1 + $0x6f8] sm:$0xff]  }
  0xa6   :  { %10292 = vmatprep.subr.bf16.mxu1 %v11331_v3  ;;  %7006 = vmatprep.mubr.bf16.mxu0 %v9141_v33  ;;  %v11392_v2 = vld [vmem:[%s14849_s1 + $0x638] sm:$0xff]  }
  0xa7   :  { %7046 = vmatprep.mubr.bf16.mxu1 %v9143_v35  ;;  %v11393_v3 = vld [vmem:[%s14849_s1 + $0x6b8] sm:$0xff]  }
  0xa8   :  { %10271 = vmatpush3.bf16.msra.mxu0 %v11332_v4  ;;  %v51_v4 = vld [vmem:[%s14850_s0 + $0x60] sm:$0xff] }
  0xa9   :  { %10293 = vmatpush3.bf16.msra.mxu1 %v11333_v5  ;;  %10272 = vmatprep.subr.bf16.mxu0 %v11334_v6  ;;  %v52_v5 = vld [vmem:[%s14850_s0 + $0x68] sm:$0xff]  ;;  %v9144_v6 = vcombine.low %v51_v4, %v51_v4 }
  0xaa   :  { %10294 = vmatprep.subr.bf16.mxu1 %v11335_v7  ;;  %v9145_v7 = vcombine.high %v51_v4, %v51_v4  ;;  %v11441_v4 = vld [vmem:[%s14849_s1 + $0x888] sm:$0xff]  }
  0xac   :  { %10273 = vmatpush3.bf16.msra.mxu0 %v11336_v8  ;;  %v9146_v8 = vcombine.low %v52_v5, %v52_v5 }
  0xad   :  { %10295 = vmatpush3.bf16.msra.mxu1 %v11337_v9  ;;  %10274 = vmatprep.subr.bf16.mxu0 %v11338_v10  ;;  %v11398_v9 = vld [vmem:[%s14849_s1 + $0x740] sm:$0xff]   ;;  %v9147_v10 = vcombine.high %v52_v5, %v52_v5  ;;  %v11442_v5 = vld [vmem:[%s14849_s1 + $0x850] sm:$0xff]  }
  0xae   :  { %10296 = vmatprep.subr.bf16.mxu1 %v11339_v11  ;;  %v11399_v11 = vld [vmem:[%s14849_s1 + $0x7c0] sm:$0xff]  }
  0xb0   :  { %10275 = vmatpush3.bf16.msra.mxu0 %v11340_v12  ;;  %v11400_v12 = vld [vmem:[%s14849_s1 + $0x700] sm:$0xff]  }
  0xb1   :  { %10297 = vmatpush3.bf16.msra.mxu1 %v11341_v13  ;;  %10276 = vmatprep.subr.bf16.mxu0 %v11342_v14  ;;  %v11401_v13 = vld [vmem:[%s14849_s1 + $0x780] sm:$0xff]   ;;  %v11402_v14 = vld [vmem:[%s14849_s1 + $0x748] sm:$0xff]  }
  0xb2   :  { %10298 = vmatprep.subr.bf16.mxu1 %v11343_v15  ;;  %v11403_v15 = vld [vmem:[%s14849_s1 + $0x7c8] sm:$0xff]  }
  0xb4   :  { %10277 = vmatpush3.bf16.msra.mxu0 %v11344_v16  ;;  %v11404_v16 = vld [vmem:[%s14849_s1 + $0x708] sm:$0xff]  }
  0xb5   :  { %10299 = vmatpush3.bf16.msra.mxu1 %v11345_v17  ;;  %10278 = vmatprep.subr.bf16.mxu0 %v11346_v18  ;;  %v11405_v17 = vld [vmem:[%s14849_s1 + $0x788] sm:$0xff]   ;;  %v11406_v18 = vld [vmem:[%s14849_s1 + $0x750] sm:$0xff]  }
  0xb6   :  { %10300 = vmatprep.subr.bf16.mxu1 %v11347_v19  ;;  %v11407_v19 = vld [vmem:[%s14849_s1 + $0x7d0] sm:$0xff]  }
  0xb8   :  { %10279 = vmatpush3.bf16.msra.mxu0 %v11348_v20  ;;  %v11408_v20 = vld [vmem:[%s14849_s1 + $0x710] sm:$0xff]  }
  0xb9   :  { %10301 = vmatpush3.bf16.msra.mxu1 %v11349_v21  ;;  %10280 = vmatprep.subr.bf16.mxu0 %v11350_v22  ;;  %v11409_v21 = vld [vmem:[%s14849_s1 + $0x790] sm:$0xff]   ;;  %v11410_v22 = vld [vmem:[%s14849_s1 + $0x758] sm:$0xff]  }
  0xba   :  { %10302 = vmatprep.subr.bf16.mxu1 %v11351_v23  ;;  %v11411_v23 = vld [vmem:[%s14849_s1 + $0x7d8] sm:$0xff]  }
  0xbc   :  { %10281 = vmatpush3.bf16.msra.mxu0 %v11352_v24  ;;  %v11412_v24 = vld [vmem:[%s14849_s1 + $0x718] sm:$0xff]  }
  0xbd   :  { %10303 = vmatpush3.bf16.msra.mxu1 %v11353_v25  ;;  %10282 = vmatprep.subr.bf16.mxu0 %v11354_v26  ;;  %v11413_v25 = vld [vmem:[%s14849_s1 + $0x798] sm:$0xff]   ;;  %v11414_v26 = vld [vmem:[%s14849_s1 + $0x760] sm:$0xff]  }
  0xbe   :  { %10304 = vmatprep.subr.bf16.mxu1 %v11355_v27  ;;  %v11415_v27 = vld [vmem:[%s14849_s1 + $0x7e0] sm:$0xff]  }
  0xc0   :  { %10283 = vmatpush3.bf16.msra.mxu0 %v11356_v28  ;;  %v11416_v28 = vld [vmem:[%s14849_s1 + $0x720] sm:$0xff]  }
  0xc1   :  { %10305 = vmatpush3.bf16.msra.mxu1 %v11357_v29  ;;  %10312 = vmatprep.subr.bf16.mxu0 %v11362_v36 }
  0xc2   :  { %10334 = vmatprep.subr.bf16.mxu1 %v11363_v37  ;;  %v11418_v37 = vld [vmem:[%s14849_s1 + $0x768] sm:$0xff]  }
  0xc3   :  { %7007 = vmatmul.mubr.bf16.vlgmr.msra.gmra.mrb[20].mxu0 %v9140_v32  ;;  %v9119_v32 = vld [vmem:[%s14851_s2] ss:$0 sm:$0xff] }
  0xc4   :  { %7047 = vmatmul.mubr.bf16.vlgmr.msra.gmra.mrb[20].mxu1 %v9142_v34  ;;  %10313 = vmatpush3.bf16.msra.mxu0 %v11364_v38 }
  0xc5   :  { %10335 = vmatpush3.bf16.msra.mxu1 %v11365_v39  ;;  %10314 = vmatprep.subr.bf16.mxu0 %v11366_v40  ;;  %v11419_v39 = vld [vmem:[%s14849_s1 + $0x7e8] sm:$0xff]  }
  0xc6   :  { %10336 = vmatprep.subr.bf16.mxu1 %v11367_v41  ;;  %7086 = vmatprep.mubr.bf16.mxu0 %v9145_v7  ;;  %v11444_v7 = vld [vmem:[%s14849_s1 + $0x810] sm:$0xff]  }
  0xc7   :  { %7126 = vmatprep.mubr.bf16.mxu1 %v9147_v10  ;;  %v11447_v10 = vld [vmem:[%s14849_s1 + $0x8d8] sm:$0xff]  }
  0xc8   :  { %10315 = vmatpush3.bf16.msra.mxu0 %v11368_v42  ;;  %v11420_v42 = vld [vmem:[%s14849_s1 + $0x728] sm:$0xff]  }
  0xc9   :  { %10337 = vmatpush3.bf16.msra.mxu1 %v11369_v43  ;;  %10316 = vmatprep.subr.bf16.mxu0 %v11370_v44  ;;  %v11421_v44 = vld [vmem:[%s14849_s1 + $0x7a8] sm:$0xff]  }
  0xca   :  { %10338 = vmatprep.subr.bf16.mxu1 %v11371_v45 }
  0xcc   :  { %10317 = vmatpush3.bf16.msra.mxu0 %v11372_v46 }
  0xcd   :  { %10339 = vmatpush3.bf16.msra.mxu1 %v11373_v47  ;;  %10318 = vmatprep.subr.bf16.mxu0 %v11374_v48  ;;  %v11422_v47 = vld [vmem:[%s14849_s1 + $0x770] sm:$0xff]  }
  0xce   :  { %10340 = vmatprep.subr.bf16.mxu1 %v11375_v49  ;;  %v11423_v48 = vld [vmem:[%s14849_s1 + $0x7f0] sm:$0xff]  }
  0xcf   :  { %v11424_v49 = vld [vmem:[%s14849_s1 + $0x730] sm:$0xff]  }
  0xd0   :  { %10319 = vmatpush3.bf16.msra.mxu0 %v11376_v50  ;;  %v11425_v50 = vld [vmem:[%s14849_s1 + $0x7b0] sm:$0xff]  }
  0xd1   :  { %10341 = vmatpush3.bf16.msra.mxu1 %v11377_v51  ;;  %10320 = vmatprep.subr.bf16.mxu0 %v11378_v52  ;;  %v11426_v51 = vld [vmem:[%s14849_s1 + $0x778] sm:$0xff]  }
  0xd2   :  { %10342 = vmatprep.subr.bf16.mxu1 %v11379_v53  ;;  %v11427_v52 = vld [vmem:[%s14849_s1 + $0x7f8] sm:$0xff]  }
  0xd3   :  { %v11428_v53 = vld [vmem:[%s14849_s1 + $0x738] sm:$0xff]  }
  0xd4   :  { %10321 = vmatpush3.bf16.msra.mxu0 %v11380_v54  ;;  %v11429_v54 = vld [vmem:[%s14849_s1 + $0x7b8] sm:$0xff]  }
  0xd5   :  { %10343 = vmatpush3.bf16.msra.mxu1 %v11381_v55  ;;  %10322 = vmatprep.subr.bf16.mxu0 %v11382_v56  ;;  %v53_v55 = vld [vmem:[%s14850_s0 + $0x70] sm:$0xff]  ;;  %v54_v56 = vld [vmem:[%s14850_s0 + $0x78] sm:$0xff] }
  0xd6   :  { %10344 = vmatprep.subr.bf16.mxu1 %v11383_v57  ;;  %v9148_v57 = vcombine.low %v53_v55, %v53_v55 }
  0xd8   :  { %10323 = vmatpush3.bf16.msra.mxu0 %v11384_v58  ;;  %v9149_v58 = vcombine.high %v53_v55, %v53_v55  ;;  %v11478_v55 = vld [vmem:[%s14849_s1 + $0x950] sm:$0xff]  }
  0xd9   :  { %10345 = vmatpush3.bf16.msra.mxu1 %v11385_v59  ;;  %10324 = vmatprep.subr.bf16.mxu0 %v11386_v60  ;;  %v9150_v59 = vcombine.low %v54_v56, %v54_v56  ;;  %v9151_v60 = vcombine.high %v54_v56, %v54_v56  ;;  %v11479_v56 = vld [vmem:[%s14849_s1 + $0x9d0] sm:$0xff]  }
  0xda   :  { %10346 = vmatprep.subr.bf16.mxu1 %v11387_v61  ;;  %v11434_v61 = vld [vmem:[%s14849_s1 + $0x840] sm:$0xff]  }
  0xdc   :  { %10325 = vmatpush3.bf16.msra.mxu0 %v11388_v62  ;;  %v11435_v62 = vld [vmem:[%s14849_s1 + $0x8c0] sm:$0xff]  }
  0xdd   :  { %10347 = vmatpush3.bf16.msra.mxu1 %v11389_v63  ;;  %10326 = vmatprep.subr.bf16.mxu0 %v11390_v0  ;;  %v11436_v63 = vld [vmem:[%s14849_s1 + $0x800] sm:$0xff]  }
  0xde   :  { %10348 = vmatprep.subr.bf16.mxu1 %v11391_v1  ;;  %v11437_v0 = vld [vmem:[%s14849_s1 + $0x880] sm:$0xff]   ;;  %v11438_v1 = vld [vmem:[%s14849_s1 + $0x848] sm:$0xff]  }
  0xe0   :  { %10327 = vmatpush3.bf16.msra.mxu0 %v11392_v2  ;;  %v11439_v2 = vld [vmem:[%s14849_s1 + $0x8c8] sm:$0xff]  }
  0xe1   :  { %10349 = vmatpush3.bf16.msra.mxu1 %v11393_v3  ;;  %10356 = vmatprep.subr.bf16.mxu0 %v11398_v9  ;;  %v11440_v3 = vld [vmem:[%s14849_s1 + $0x808] sm:$0xff]   ;;  %v11446_v9 = vld [vmem:[%s14849_s1 + $0x858] sm:$0xff]  }
  0xe2   :  { %10378 = vmatprep.subr.bf16.mxu1 %v11399_v11  ;;  %v11448_v11 = vld [vmem:[%s14849_s1 + $0x818] sm:$0xff]  }
  0xe3   :  { %7087 = vmatmul.mubr.bf16.vlgmr.msra.gmra.mrb[24].mxu0 %v9144_v6  ;;  %v11443_v6 = vld [vmem:[%s14849_s1 + $0x8d0] sm:$0xff]  }
  0xe4   :  { %7127 = vmatmul.mubr.bf16.vlgmr.msra.gmra.mrb[24].mxu1 %v9146_v8  ;;  %10357 = vmatpush3.bf16.msra.mxu0 %v11400_v12  ;;  %v11445_v8 = vld [vmem:[%s14849_s1 + $0x890] sm:$0xff]   ;;  %v11449_v12 = vld [vmem:[%s14849_s1 + $0x898] sm:$0xff]  }
  0xe5   :  { %10379 = vmatpush3.bf16.msra.mxu1 %v11401_v13  ;;  %10358 = vmatprep.subr.bf16.mxu0 %v11402_v14  ;;  %v11450_v13 = vld [vmem:[%s14849_s1 + $0x860] sm:$0xff]  }
  0xe6   :  { %10380 = vmatprep.subr.bf16.mxu1 %v11403_v15  ;;  %7166 = vmatprep.mubr.bf16.mxu0 %v9149_v58  ;;  %v11451_v14 = vld [vmem:[%s14849_s1 + $0x8e0] sm:$0xff]   ;;  %v11481_v58 = vld [vmem:[%s14849_s1 + $0x990] sm:$0xff]  }
  0xe7   :  { %7206 = vmatprep.mubr.bf16.mxu1 %v9151_v60  ;;  %v11452_v15 = vld [vmem:[%s14849_s1 + $0x820] sm:$0xff]   ;;  %v11483_v60 = vld [vmem:[%s14849_s1 + $0x9d8] sm:$0xff]  }
  0xe8   :  { %10359 = vmatpush3.bf16.msra.mxu0 %v11404_v16 }
  0xe9   :  { %10381 = vmatpush3.bf16.msra.mxu1 %v11405_v17  ;;  %10360 = vmatprep.subr.bf16.mxu0 %v11406_v18  ;;  %v11453_v17 = vld [vmem:[%s14849_s1 + $0x8a0] sm:$0xff]  }
  0xea   :  { %10382 = vmatprep.subr.bf16.mxu1 %v11407_v19 }
  0xec   :  { %10361 = vmatpush3.bf16.msra.mxu0 %v11408_v20 }
  0xed   :  { %10383 = vmatpush3.bf16.msra.mxu1 %v11409_v21  ;;  %10362 = vmatprep.subr.bf16.mxu0 %v11410_v22 }
  0xee   :  { %10384 = vmatprep.subr.bf16.mxu1 %v11411_v23  ;;  %v11454_v23 = vld [vmem:[%s14849_s1 + $0x868] sm:$0xff]  }
  0xf0   :  { %10363 = vmatpush3.bf16.msra.mxu0 %v11412_v24 }
  0xf1   :  { %10385 = vmatpush3.bf16.msra.mxu1 %v11413_v25  ;;  %10364 = vmatprep.subr.bf16.mxu0 %v11414_v26  ;;  %v11455_v25 = vld [vmem:[%s14849_s1 + $0x8e8] sm:$0xff]  }
  0xf2   :  { %10386 = vmatprep.subr.bf16.mxu1 %v11415_v27 }
  0xf4   :  { %10365 = vmatpush3.bf16.msra.mxu0 %v11416_v28  ;;  %v11456_v28 = vld [vmem:[%s14849_s1 + $0x828] sm:$0xff]  }
  0xf5   :  { %10387 = vmatpush3.bf16.msra.mxu1 %v11417_v30  ;;  %10366 = vmatprep.subr.bf16.mxu0 %v11418_v37  ;;  %v11457_v30 = vld [vmem:[%s14849_s1 + $0x8a8] sm:$0xff]   ;;  %v11462_v37 = vld [vmem:[%s14849_s1 + $0x878] sm:$0xff]  }
  0xf6   :  { %v10064_v29 = vpop.f32.mrb[0].mxu0  ;;  %10388 = vmatprep.subr.bf16.mxu1 %v11419_v39  ;;  %v11464_v39 = vld [vmem:[%s14849_s1 + $0x838] sm:$0xff]  }
  0xf7   :  { %v10086_v31 = vpop.f32.mrb[0].mxu1  ;;  %v10065_v33 = vpop.f32.mrb[1].mxu0 }
  0xf8   :  { %v10087_v34 = vpop.f32.mrb[1].mxu1  ;;  %v10066_v35 = vadd.f32 %v10065_v33, %v10064_v29  ;;  %v10067_v38 = vpop.f32.mrb[2].mxu0  ;;  %10367 = vmatpush3.bf16.msra.mxu0 %v11420_v42  ;;  %v11458_v33 = vld [vmem:[%s14849_s1 + $0x870] sm:$0xff]   ;;  %v56_v42 = vld [vmem:[%s14850_s0 + $0x88] sm:$0xff] }
  0xf9   :  { %v10088_v36 = vadd.f32 %v10087_v34, %v10086_v31  ;;  %v10089_v40 = vpop.f32.mrb[2].mxu1  ;;  %v10068_v43 = vpop.f32.mrb[3].mxu0  ;;  %10389 = vmatpush3.bf16.msra.mxu1 %v11421_v44  ;;  %10368 = vmatprep.subr.bf16.mxu0 %v11422_v47  ;;  %v11459_v34 = vld [vmem:[%s14849_s1 + $0x8f0] sm:$0xff]   ;;  %v11463_v38 = vld [vmem:[%s14849_s1 + $0x8f8] sm:$0xff]   ;;  %v11470_v47 = vld [vmem:[%s14849_s1 + $0x940] sm:$0xff]  }
  0xfa   :  { %v6609_v41 = vadd.f32 %v10066_v35, %v9119_v32  ;;  %v10090_v45 = vpop.f32.mrb[3].mxu1  ;;  %10390 = vmatprep.subr.bf16.mxu1 %v11423_v48  ;;  %v11460_v35 = vld [vmem:[%s14849_s1 + $0x830] sm:$0xff]   ;;  %v11465_v40 = vld [vmem:[%s14849_s1 + $0x8b8] sm:$0xff]   ;;  %v11471_v48 = vld [vmem:[%s14849_s1 + $0x9c0] sm:$0xff]  }
  0xfb   :  { %v9154_v45 = vcombine.low %v56_v42, %v56_v42 }
  0xfc   :  { %v12942_v46 = vadd.f32 %v10088_v36, %v6609_v41  ;;  %10369 = vmatpush3.bf16.msra.mxu0 %v11424_v49  ;;  %v11461_v36 = vld [vmem:[%s14849_s1 + $0x8b0] sm:$0xff]   ;;  %v55_v41 = vld [vmem:[%s14850_s0 + $0x80] sm:$0xff] }
  0xfd   :  { %10391 = vmatpush3.bf16.msra.mxu1 %v11425_v50  ;;  %10370 = vmatprep.subr.bf16.mxu0 %v11426_v51  ;;  %v9152_v43 = vcombine.low %v55_v41, %v55_v41  ;;  %v9153_v44 = vcombine.high %v55_v41, %v55_v41  ;;  %v11472_v49 = vld [vmem:[%s14849_s1 + $0x900] sm:$0xff]   ;;  %v11474_v51 = vld [vmem:[%s14849_s1 + $0x948] sm:$0xff]   ;;  %v11514_v41 = vld [vmem:[%s14849_s1 + $0xa50] sm:$0xff]  }
  0xfe   :  { %10392 = vmatprep.subr.bf16.mxu1 %v11427_v52  ;;  %v11473_v50 = vld [vmem:[%s14849_s1 + $0x980] sm:$0xff]   ;;  %v11475_v52 = vld [vmem:[%s14849_s1 + $0x9c8] sm:$0xff]  }
 0x100   :  { %10371 = vmatpush3.bf16.msra.mxu0 %v11428_v53  ;;  %v11476_v53 = vld [vmem:[%s14849_s1 + $0x908] sm:$0xff]  }
 0x101   :  { %10393 = vmatpush3.bf16.msra.mxu1 %v11429_v54  ;;  %10400 = vmatprep.subr.bf16.mxu0 %v11434_v61  ;;  %v11477_v54 = vld [vmem:[%s14849_s1 + $0x988] sm:$0xff]   ;;  %v11484_v61 = vld [vmem:[%s14849_s1 + $0x918] sm:$0xff]  }
 0x102   :  { %10422 = vmatprep.subr.bf16.mxu1 %v11435_v62  ;;  %v11485_v62 = vld [vmem:[%s14849_s1 + $0x998] sm:$0xff]  }
 0x103   :  { %7167 = vmatmul.mubr.bf16.vlgmr.msra.gmra.mrb[28].mxu0 %v9148_v57  ;;  %v11480_v57 = vld [vmem:[%s14849_s1 + $0x910] sm:$0xff]  }
 0x104   :  { %7207 = vmatmul.mubr.bf16.vlgmr.msra.gmra.mrb[28].mxu1 %v9150_v59  ;;  %10401 = vmatpush3.bf16.msra.mxu0 %v11436_v63  ;;  %v11482_v59 = vld [vmem:[%s14849_s1 + $0x958] sm:$0xff]   ;;  %v11486_v63 = vld [vmem:[%s14849_s1 + $0x960] sm:$0xff]  }
 0x105   :  { %10423 = vmatpush3.bf16.msra.mxu1 %v11437_v0  ;;  %10402 = vmatprep.subr.bf16.mxu0 %v11438_v1  ;;  %v11487_v0 = vld [vmem:[%s14849_s1 + $0x9e0] sm:$0xff]  }
 0x106   :  { %10424 = vmatprep.subr.bf16.mxu1 %v11439_v2  ;;  %7246 = vmatprep.mubr.bf16.mxu0 %v9153_v44  ;;  %v11488_v2 = vld [vmem:[%s14849_s1 + $0x920] sm:$0xff]   ;;  %v11517_v44 = vld [vmem:[%s14849_s1 + $0xa90] sm:$0xff]  }
 0x108   :  { %10403 = vmatpush3.bf16.msra.mxu0 %v11440_v3 }
 0x109   :  { %10425 = vmatpush3.bf16.msra.mxu1 %v11441_v4  ;;  %10404 = vmatprep.subr.bf16.mxu0 %v11442_v5  ;;  %v11489_v4 = vld [vmem:[%s14849_s1 + $0x9a0] sm:$0xff]  }
 0x10a   :  { %10426 = vmatprep.subr.bf16.mxu1 %v11443_v6 }
 0x10c   :  { %10405 = vmatpush3.bf16.msra.mxu0 %v11444_v7 }
 0x10d   :  { %10427 = vmatpush3.bf16.msra.mxu1 %v11445_v8  ;;  %10406 = vmatprep.subr.bf16.mxu0 %v11446_v9  ;;  %v11490_v8 = vld [vmem:[%s14849_s1 + $0x968] sm:$0xff]  }
 0x10e   :  { %10428 = vmatprep.subr.bf16.mxu1 %v11447_v10  ;;  %v11491_v10 = vld [vmem:[%s14849_s1 + $0x9e8] sm:$0xff]  }
 0x110   :  { %10407 = vmatpush3.bf16.msra.mxu0 %v11448_v11 }
 0x111   :  { %10429 = vmatpush3.bf16.msra.mxu1 %v11449_v12  ;;  %10408 = vmatprep.subr.bf16.mxu0 %v11450_v13 }
 0x112   :  { %10430 = vmatprep.subr.bf16.mxu1 %v11451_v14  ;;  %v11492_v14 = vld [vmem:[%s14849_s1 + $0x928] sm:$0xff]  }
 0x114   :  { %10409 = vmatpush3.bf16.msra.mxu0 %v11452_v15  ;;  %v11493_v15 = vld [vmem:[%s14849_s1 + $0x9a8] sm:$0xff]  }
 0x115   :  { %10431 = vmatpush3.bf16.msra.mxu1 %v11453_v17  ;;  %10410 = vmatprep.subr.bf16.mxu0 %v11454_v23  ;;  %v11498_v23 = vld [vmem:[%s14849_s1 + $0x978] sm:$0xff]  }
 0x116   :  { %v10108_v16 = vpop.f32.mrb[4].mxu0  ;;  %10432 = vmatprep.subr.bf16.mxu1 %v11455_v25  ;;  %v11500_v25 = vld [vmem:[%s14849_s1 + $0x938] sm:$0xff]  }
 0x117   :  { %v10130_v18 = vpop.f32.mrb[4].mxu1  ;;  %v10109_v19 = vpop.f32.mrb[5].mxu0 }
 0x118   :  { %v10131_v20 = vpop.f32.mrb[5].mxu1  ;;  %v10110_v21 = vadd.f32 %v10109_v19, %v10108_v16  ;;  %v10111_v24 = vpop.f32.mrb[6].mxu0  ;;  %10411 = vmatpush3.bf16.msra.mxu0 %v11456_v28  ;;  %v11494_v19 = vld [vmem:[%s14849_s1 + $0x970] sm:$0xff]   ;;  %v58_v28 = vld [vmem:[%s14850_s0 + $0x98] sm:$0xff] }
 0x119   :  { %v10132_v22 = vadd.f32 %v10131_v20, %v10130_v18  ;;  %v10133_v26 = vpop.f32.mrb[6].mxu1  ;;  %v10112_v29 = vpop.f32.mrb[7].mxu0  ;;  %10433 = vmatpush3.bf16.msra.mxu1 %v11457_v30  ;;  %10412 = vmatprep.subr.bf16.mxu0 %v11458_v33  ;;  %v11495_v20 = vld [vmem:[%s14849_s1 + $0x9f0] sm:$0xff]   ;;  %v11499_v24 = vld [vmem:[%s14849_s1 + $0x9f8] sm:$0xff]   ;;  %v9159_v33 = vcombine.high %v58_v28, %v58_v28 }
 0x11a   :  { %v6689_v27 = vadd.f32 %v10110_v21, %v12942_v46  ;;  %v10134_v31 = vpop.f32.mrb[7].mxu1  ;;  %10434 = vmatprep.subr.bf16.mxu1 %v11459_v34  ;;  %v9155_v46 = vcombine.high %v56_v42, %v56_v42  ;;  %v11496_v21 = vld [vmem:[%s14849_s1 + $0x930] sm:$0xff]   ;;  %v11501_v26 = vld [vmem:[%s14849_s1 + $0x9b8] sm:$0xff]   ;;  %v11507_v34 = vld [vmem:[%s14849_s1 + $0xac0] sm:$0xff]  }
 0x11b   :  { %v9158_v31 = vcombine.low %v58_v28, %v58_v28  ;;  %v11515_v42 = vld [vmem:[%s14849_s1 + $0xad0] sm:$0xff]  }
 0x11c   :  { %v13047_v32 = vadd.f32 %v10132_v22, %v6689_v27  ;;  %10413 = vmatpush3.bf16.msra.mxu0 %v11460_v35  ;;  %7286 = vmatprep.mubr.bf16.mxu1 %v9155_v46  ;;  %v11497_v22 = vld [vmem:[%s14849_s1 + $0x9b0] sm:$0xff]   ;;  %v11508_v35 = vld [vmem:[%s14849_s1 + $0xa00] sm:$0xff]   ;;  %v11519_v46 = vld [vmem:[%s14849_s1 + $0xad8] sm:$0xff]  }
 0x11d   :  { %10435 = vmatpush3.bf16.msra.mxu1 %v11461_v36  ;;  %10414 = vmatprep.subr.bf16.mxu0 %v11462_v37  ;;  %v57_v27 = vld [vmem:[%s14850_s0 + $0x90] sm:$0xff]  ;;  %v11509_v36 = vld [vmem:[%s14849_s1 + $0xa80] sm:$0xff]   ;;  %v11510_v37 = vld [vmem:[%s14849_s1 + $0xa48] sm:$0xff]  }
 0x11e   :  { %10436 = vmatprep.subr.bf16.mxu1 %v11463_v38  ;;  %v9156_v29 = vcombine.low %v57_v27, %v57_v27  ;;  %v9157_v30 = vcombine.high %v57_v27, %v57_v27  ;;  %v11511_v38 = vld [vmem:[%s14849_s1 + $0xac8] sm:$0xff]   ;;  %v11550_v27 = vld [vmem:[%s14849_s1 + $0xb50] sm:$0xff]  }
 0x11f   :  { %v11551_v28 = vld [vmem:[%s14849_s1 + $0xbd0] sm:$0xff]  }
 0x120   :  { %10415 = vmatpush3.bf16.msra.mxu0 %v11464_v39  ;;  %v11512_v39 = vld [vmem:[%s14849_s1 + $0xa08] sm:$0xff]  }
 0x121   :  { %10437 = vmatpush3.bf16.msra.mxu1 %v11465_v40  ;;  %10444 = vmatprep.subr.bf16.mxu0 %v11470_v47  ;;  %v11513_v40 = vld [vmem:[%s14849_s1 + $0xa88] sm:$0xff]   ;;  %v11520_v47 = vld [vmem:[%s14849_s1 + $0xa18] sm:$0xff]  }
 0x122   :  { %10466 = vmatprep.subr.bf16.mxu1 %v11471_v48  ;;  %v11521_v48 = vld [vmem:[%s14849_s1 + $0xa98] sm:$0xff]  }
 0x123   :  { %7247 = vmatmul.mubr.bf16.vlgmr.msra.gmra.mrb[32].mxu0 %v9152_v43  ;;  %v11516_v43 = vld [vmem:[%s14849_s1 + $0xa10] sm:$0xff]  }
 0x124   :  { %7287 = vmatmul.mubr.bf16.vlgmr.msra.gmra.mrb[32].mxu1 %v9154_v45  ;;  %10445 = vmatpush3.bf16.msra.mxu0 %v11472_v49  ;;  %v11518_v45 = vld [vmem:[%s14849_s1 + $0xa58] sm:$0xff]   ;;  %v11522_v49 = vld [vmem:[%s14849_s1 + $0xa60] sm:$0xff]  }
 0x125   :  { %10467 = vmatpush3.bf16.msra.mxu1 %v11473_v50  ;;  %10446 = vmatprep.subr.bf16.mxu0 %v11474_v51  ;;  %v11523_v50 = vld [vmem:[%s14849_s1 + $0xae0] sm:$0xff]  }
 0x126   :  { %10468 = vmatprep.subr.bf16.mxu1 %v11475_v52  ;;  %7326 = vmatprep.mubr.bf16.mxu0 %v9157_v30  ;;  %v11524_v52 = vld [vmem:[%s14849_s1 + $0xa20] sm:$0xff]   ;;  %v11553_v30 = vld [vmem:[%s14849_s1 + $0xb90] sm:$0xff]  }
 0x127   :  { %7366 = vmatprep.mubr.bf16.mxu1 %v9159_v33  ;;  %v11556_v33 = vld [vmem:[%s14849_s1 + $0xb18] sm:$0xff]  }
 0x128   :  { %10447 = vmatpush3.bf16.msra.mxu0 %v11476_v53 }
 0x129   :  { %10469 = vmatpush3.bf16.msra.mxu1 %v11477_v54  ;;  %10448 = vmatprep.subr.bf16.mxu0 %v11478_v55  ;;  %v11525_v54 = vld [vmem:[%s14849_s1 + $0xaa0] sm:$0xff]  }
 0x12a   :  { %10470 = vmatprep.subr.bf16.mxu1 %v11479_v56 }
 0x12c   :  { %10449 = vmatpush3.bf16.msra.mxu0 %v11480_v57  ;;  %v11526_v57 = vld [vmem:[%s14849_s1 + $0xa68] sm:$0xff]  }
 0x12d   :  { %10471 = vmatpush3.bf16.msra.mxu1 %v11481_v58  ;;  %10450 = vmatprep.subr.bf16.mxu0 %v11482_v59 }
 0x12e   :  { %10472 = vmatprep.subr.bf16.mxu1 %v11483_v60  ;;  %v11527_v60 = vld [vmem:[%s14849_s1 + $0xae8] sm:$0xff]  }
 0x130   :  { %10451 = vmatpush3.bf16.msra.mxu0 %v11484_v61 }
 0x131   :  { %10473 = vmatpush3.bf16.msra.mxu1 %v11485_v62  ;;  %10452 = vmatprep.subr.bf16.mxu0 %v11486_v63  ;;  %v11528_v63 = vld [vmem:[%s14849_s1 + $0xa28] sm:$0xff]  }
 0x132   :  { %10474 = vmatprep.subr.bf16.mxu1 %v11487_v0 }
 0x134   :  { %10453 = vmatpush3.bf16.msra.mxu0 %v11488_v2 }
 0x135   :  { %10475 = vmatpush3.bf16.msra.mxu1 %v11489_v4  ;;  %10454 = vmatprep.subr.bf16.mxu0 %v11490_v8  ;;  %v11530_v4 = vld [vmem:[%s14849_s1 + $0xa70] sm:$0xff]  }
 0x136   :  { %v10152_v1 = vpop.f32.mrb[8].mxu0  ;;  %10476 = vmatprep.subr.bf16.mxu1 %v11491_v10  ;;  %v11533_v8 = vld [vmem:[%s14849_s1 + $0xab0] sm:$0xff]   ;;  %v11535_v10 = vld [vmem:[%s14849_s1 + $0xaf8] sm:$0xff]  }
 0x137   :  { %v10174_v3 = vpop.f32.mrb[8].mxu1  ;;  %v10153_v5 = vpop.f32.mrb[9].mxu0 }
 0x138   :  { %v10154_v6 = vadd.f32 %v10153_v5, %v10152_v1  ;;  %v10175_v7 = vpop.f32.mrb[9].mxu1  ;;  %v10155_v11 = vpop.f32.mrb[10].mxu0  ;;  %10455 = vmatpush3.bf16.msra.mxu0 %v11492_v14  ;;  %v11529_v1 = vld [vmem:[%s14849_s1 + $0xaa8] sm:$0xff]  }
 0x139   :  { %v10176_v9 = vadd.f32 %v10175_v7, %v10174_v3  ;;  %v10177_v13 = vpop.f32.mrb[10].mxu1  ;;  %v10156_v16 = vpop.f32.mrb[11].mxu0  ;;  %10477 = vmatpush3.bf16.msra.mxu1 %v11493_v15  ;;  %10456 = vmatprep.subr.bf16.mxu0 %v11494_v19  ;;  %v11532_v7 = vld [vmem:[%s14849_s1 + $0xa30] sm:$0xff]   ;;  %v11536_v11 = vld [vmem:[%s14849_s1 + $0xa38] sm:$0xff]   ;;  %v11542_v19 = vld [vmem:[%s14849_s1 + $0xb40] sm:$0xff]  }
 0x13a   :  { %v6769_v12 = vadd.f32 %v10154_v6, %v13047_v32  ;;  %v10178_v18 = vpop.f32.mrb[11].mxu1  ;;  %10478 = vmatprep.subr.bf16.mxu1 %v11495_v20  ;;  %v11506_v32 = vld [vmem:[%s14849_s1 + $0xa40] sm:$0xff]   ;;  %v11531_v6 = vld [vmem:[%s14849_s1 + $0xaf0] sm:$0xff]   ;;  %v60_v16 = vld [vmem:[%s14850_s0 + $0xa8] sm:$0xff] }
 0x13b   :  { %v59_v13 = vld [vmem:[%s14850_s0 + $0xa0] sm:$0xff]  ;;  %v9163_v18 = vcombine.high %v60_v16, %v60_v16 }
 0x13c   :  { %v13152_v17 = vadd.f32 %v10176_v9, %v6769_v12  ;;  %10457 = vmatpush3.bf16.msra.mxu0 %v11496_v21  ;;  %v11534_v9 = vld [vmem:[%s14849_s1 + $0xa78] sm:$0xff]   ;;  %v9160_v14 = vcombine.low %v59_v13, %v59_v13  ;;  %v9161_v15 = vcombine.high %v59_v13, %v59_v13  ;;  %v11543_v20 = vld [vmem:[%s14849_s1 + $0xbc0] sm:$0xff]   ;;  %v11586_v13 = vld [vmem:[%s14849_s1 + $0xc50] sm:$0xff]  }
 0x13d   :  { %10479 = vmatpush3.bf16.msra.mxu1 %v11497_v22  ;;  %10458 = vmatprep.subr.bf16.mxu0 %v11498_v23  ;;  %v11537_v12 = vld [vmem:[%s14849_s1 + $0xab8] sm:$0xff]   ;;  %v11544_v21 = vld [vmem:[%s14849_s1 + $0xb00] sm:$0xff]   ;;  %v11546_v23 = vld [vmem:[%s14849_s1 + $0xb48] sm:$0xff]  }
 0x13e   :  { %10480 = vmatprep.subr.bf16.mxu1 %v11499_v24  ;;  %v11545_v22 = vld [vmem:[%s14849_s1 + $0xb80] sm:$0xff]   ;;  %v11547_v24 = vld [vmem:[%s14849_s1 + $0xbc8] sm:$0xff]  }
 0x140   :  { %10459 = vmatpush3.bf16.msra.mxu0 %v11500_v25  ;;  %v11548_v25 = vld [vmem:[%s14849_s1 + $0xb08] sm:$0xff]  }
 0x141   :  { %10481 = vmatpush3.bf16.msra.mxu1 %v11501_v26  ;;  %10488 = vmatprep.subr.bf16.mxu0 %v11506_v32  ;;  %v11549_v26 = vld [vmem:[%s14849_s1 + $0xb88] sm:$0xff]   ;;  %v11555_v32 = vld [vmem:[%s14849_s1 + $0xbd8] sm:$0xff]  }
 0x142   :  { %10510 = vmatprep.subr.bf16.mxu1 %v11507_v34  ;;  %v11557_v34 = vld [vmem:[%s14849_s1 + $0xb98] sm:$0xff]  }
 0x143   :  { %7327 = vmatmul.mubr.bf16.vlgmr.msra.gmra.mrb[36].mxu0 %v9156_v29  ;;  %v11552_v29 = vld [vmem:[%s14849_s1 + $0xb10] sm:$0xff]  }
 0x144   :  { %7367 = vmatmul.mubr.bf16.vlgmr.msra.gmra.mrb[36].mxu1 %v9158_v31  ;;  %10489 = vmatpush3.bf16.msra.mxu0 %v11508_v35  ;;  %v11554_v31 = vld [vmem:[%s14849_s1 + $0xb58] sm:$0xff]   ;;  %v11558_v35 = vld [vmem:[%s14849_s1 + $0xb60] sm:$0xff]  }
 0x145   :  { %10511 = vmatpush3.bf16.msra.mxu1 %v11509_v36  ;;  %10490 = vmatprep.subr.bf16.mxu0 %v11510_v37  ;;  %v11559_v36 = vld [vmem:[%s14849_s1 + $0xbe0] sm:$0xff]  }
 0x146   :  { %10512 = vmatprep.subr.bf16.mxu1 %v11511_v38  ;;  %7406 = vmatprep.mubr.bf16.mxu0 %v9161_v15  ;;  %v11560_v38 = vld [vmem:[%s14849_s1 + $0xb20] sm:$0xff]   ;;  %v11588_v15 = vld [vmem:[%s14849_s1 + $0xc10] sm:$0xff]  }
 0x147   :  { %7446 = vmatprep.mubr.bf16.mxu1 %v9163_v18  ;;  %v11591_v18 = vld [vmem:[%s14849_s1 + $0xcd8] sm:$0xff]  }
 0x148   :  { %10491 = vmatpush3.bf16.msra.mxu0 %v11512_v39 }
 0x149   :  { %10513 = vmatpush3.bf16.msra.mxu1 %v11513_v40  ;;  %10492 = vmatprep.subr.bf16.mxu0 %v11514_v41  ;;  %v11561_v40 = vld [vmem:[%s14849_s1 + $0xba0] sm:$0xff]  }
 0x14a   :  { %10514 = vmatprep.subr.bf16.mxu1 %v11515_v42 }
 0x14c   :  { %10493 = vmatpush3.bf16.msra.mxu0 %v11516_v43  ;;  %v11562_v43 = vld [vmem:[%s14849_s1 + $0xb68] sm:$0xff]  }
 0x14d   :  { %10515 = vmatpush3.bf16.msra.mxu1 %v11517_v44  ;;  %10494 = vmatprep.subr.bf16.mxu0 %v11518_v45 }
 0x14e   :  { %10516 = vmatprep.subr.bf16.mxu1 %v11519_v46  ;;  %v11563_v46 = vld [vmem:[%s14849_s1 + $0xbe8] sm:$0xff]  }
 0x150   :  { %10495 = vmatpush3.bf16.msra.mxu0 %v11520_v47 }
 0x151   :  { %10517 = vmatpush3.bf16.msra.mxu1 %v11521_v48  ;;  %10496 = vmatprep.subr.bf16.mxu0 %v11522_v49  ;;  %v11564_v49 = vld [vmem:[%s14849_s1 + $0xb28] sm:$0xff]  }
 0x152   :  { %10518 = vmatprep.subr.bf16.mxu1 %v11523_v50 }
 0x154   :  { %10497 = vmatpush3.bf16.msra.mxu0 %v11524_v52 }
 0x155   :  { %10519 = vmatpush3.bf16.msra.mxu1 %v11525_v54  ;;  %10498 = vmatprep.subr.bf16.mxu0 %v11526_v57  ;;  %v11566_v54 = vld [vmem:[%s14849_s1 + $0xb70] sm:$0xff]  }
 0x156   :  { %v10196_v51 = vpop.f32.mrb[12].mxu0  ;;  %10520 = vmatprep.subr.bf16.mxu1 %v11527_v60  ;;  %v11568_v57 = vld [vmem:[%s14849_s1 + $0xb30] sm:$0xff]   ;;  %v11571_v60 = vld [vmem:[%s14849_s1 + $0xbf8] sm:$0xff]  }
 0x157   :  { %v10218_v53 = vpop.f32.mrb[12].mxu1  ;;  %v10197_v55 = vpop.f32.mrb[13].mxu0 }
 0x158   :  { %v10219_v56 = vpop.f32.mrb[13].mxu1  ;;  %v10198_v58 = vadd.f32 %v10197_v55, %v10196_v51  ;;  %v10199_v61 = vpop.f32.mrb[14].mxu0  ;;  %10499 = vmatpush3.bf16.msra.mxu0 %v11528_v63  ;;  %v11565_v51 = vld [vmem:[%s14849_s1 + $0xba8] sm:$0xff]   ;;  %v61_v63 = vld [vmem:[%s14850_s0 + $0xb0] sm:$0xff] }
 0x159   :  { %v10220_v59 = vadd.f32 %v10219_v56, %v10218_v53  ;;  %v10221_v62 = vpop.f32.mrb[14].mxu1  ;;  %v10200_v2 = vpop.f32.mrb[15].mxu0  ;;  %10521 = vmatpush3.bf16.msra.mxu1 %v11529_v1  ;;  %10500 = vmatprep.subr.bf16.mxu0 %v11530_v4  ;;  %v11567_v56 = vld [vmem:[%s14849_s1 + $0xbf0] sm:$0xff]   ;;  %v11572_v61 = vld [vmem:[%s14849_s1 + $0xb38] sm:$0xff]   ;;  %v9164_v1 = vcombine.low %v61_v63, %v61_v63 }
 0x15a   :  { %v6849_v0 = vadd.f32 %v10198_v58, %v13152_v17  ;;  %v10222_v3 = vpop.f32.mrb[15].mxu1  ;;  %10522 = vmatprep.subr.bf16.mxu1 %v11531_v6  ;;  %v9162_v17 = vcombine.low %v60_v16, %v60_v16  ;;  %v11569_v58 = vld [vmem:[%s14849_s1 + $0xbb0] sm:$0xff]   ;;  %v11573_v62 = vld [vmem:[%s14849_s1 + $0xbb8] sm:$0xff]   ;;  %v9165_v2 = vcombine.high %v61_v63, %v61_v63  ;;  %v11579_v6 = vld [vmem:[%s14849_s1 + $0xcc0] sm:$0xff]  }
 0x15b   :  { %v11589_v16 = vld [vmem:[%s14849_s1 + $0xc90] sm:$0xff]  }
 0x15c   :  { %v13260_v5 = vadd.f32 %v10220_v59, %v6849_v0  ;;  %10501 = vmatpush3.bf16.msra.mxu0 %v11532_v7  ;;  %v11570_v59 = vld [vmem:[%s14849_s1 + $0xb78] sm:$0xff]   ;;  %v11580_v7 = vld [vmem:[%s14849_s1 + $0xc00] sm:$0xff]   ;;  %v11622_v63 = vld [vmem:[%s14849_s1 + $0xd50] sm:$0xff]  }
 0x15d   :  { %10523 = vmatpush3.bf16.msra.mxu1 %v11533_v8  ;;  %10502 = vmatprep.subr.bf16.mxu0 %v11534_v9  ;;  %v62_v0 = vld [vmem:[%s14850_s0 + $0xb8] sm:$0xff]  ;;  %v11581_v8 = vld [vmem:[%s14849_s1 + $0xc80] sm:$0xff]   ;;  %v11582_v9 = vld [vmem:[%s14849_s1 + $0xc48] sm:$0xff]  }
 0x15e   :  { %10524 = vmatprep.subr.bf16.mxu1 %v11535_v10  ;;  %v9166_v3 = vcombine.low %v62_v0, %v62_v0  ;;  %v9167_v4 = vcombine.high %v62_v0, %v62_v0  ;;  %v11583_v10 = vld [vmem:[%s14849_s1 + $0xcc8] sm:$0xff]   ;;  %v11623_v0 = vld [vmem:[%s14849_s1 + $0xdd0] sm:$0xff]  }
 0x160   :  { %10503 = vmatpush3.bf16.msra.mxu0 %v11536_v11  ;;  %v11584_v11 = vld [vmem:[%s14849_s1 + $0xc08] sm:$0xff]  }
 0x161   :  { %10525 = vmatpush3.bf16.msra.mxu1 %v11537_v12  ;;  %10532 = vmatprep.subr.bf16.mxu0 %v11542_v19  ;;  %v11585_v12 = vld [vmem:[%s14849_s1 + $0xc88] sm:$0xff]   ;;  %v11592_v19 = vld [vmem:[%s14849_s1 + $0xc18] sm:$0xff]  }
 0x162   :  { %10554 = vmatprep.subr.bf16.mxu1 %v11543_v20  ;;  %v11593_v20 = vld [vmem:[%s14849_s1 + $0xc98] sm:$0xff]  }
 0x163   :  { %7407 = vmatmul.mubr.bf16.vlgmr.msra.gmra.mrb[40].mxu0 %v9160_v14  ;;  %v11587_v14 = vld [vmem:[%s14849_s1 + $0xcd0] sm:$0xff]  }
 0x164   :  { %7447 = vmatmul.mubr.bf16.vlgmr.msra.gmra.mrb[40].mxu1 %v9162_v17  ;;  %10533 = vmatpush3.bf16.msra.mxu0 %v11544_v21  ;;  %v11590_v17 = vld [vmem:[%s14849_s1 + $0xc58] sm:$0xff]   ;;  %v11594_v21 = vld [vmem:[%s14849_s1 + $0xc60] sm:$0xff]  }
 0x165   :  { %10555 = vmatpush3.bf16.msra.mxu1 %v11545_v22  ;;  %10534 = vmatprep.subr.bf16.mxu0 %v11546_v23  ;;  %v11595_v22 = vld [vmem:[%s14849_s1 + $0xce0] sm:$0xff]  }
 0x166   :  { %10556 = vmatprep.subr.bf16.mxu1 %v11547_v24  ;;  %7486 = vmatprep.mubr.bf16.mxu0 %v9165_v2  ;;  %v11596_v24 = vld [vmem:[%s14849_s1 + $0xc20] sm:$0xff]   ;;  %v11625_v2 = vld [vmem:[%s14849_s1 + $0xd90] sm:$0xff]  }
 0x167   :  { %7526 = vmatprep.mubr.bf16.mxu1 %v9167_v4  ;;  %v11627_v4 = vld [vmem:[%s14849_s1 + $0xdd8] sm:$0xff]  }
 0x168   :  { %10535 = vmatpush3.bf16.msra.mxu0 %v11548_v25 }
 0x169   :  { %10557 = vmatpush3.bf16.msra.mxu1 %v11549_v26  ;;  %10536 = vmatprep.subr.bf16.mxu0 %v11550_v27  ;;  %v11597_v26 = vld [vmem:[%s14849_s1 + $0xca0] sm:$0xff]  }
 0x16a   :  { %10558 = vmatprep.subr.bf16.mxu1 %v11551_v28 }
 0x16c   :  { %10537 = vmatpush3.bf16.msra.mxu0 %v11552_v29 }
 0x16d   :  { %10559 = vmatpush3.bf16.msra.mxu1 %v11553_v30  ;;  %10538 = vmatprep.subr.bf16.mxu0 %v11554_v31  ;;  %v11598_v30 = vld [vmem:[%s14849_s1 + $0xc68] sm:$0xff]  }
 0x16e   :  { %10560 = vmatprep.subr.bf16.mxu1 %v11555_v32  ;;  %v11599_v32 = vld [vmem:[%s14849_s1 + $0xce8] sm:$0xff]  }
 0x170   :  { %10539 = vmatpush3.bf16.msra.mxu0 %v11556_v33 }
 0x171   :  { %10561 = vmatpush3.bf16.msra.mxu1 %v11557_v34  ;;  %10540 = vmatprep.subr.bf16.mxu0 %v11558_v35 }
 0x172   :  { %10562 = vmatprep.subr.bf16.mxu1 %v11559_v36  ;;  %v11600_v36 = vld [vmem:[%s14849_s1 + $0xc28] sm:$0xff]  }
 0x174   :  { %10541 = vmatpush3.bf16.msra.mxu0 %v11560_v38 }
 0x175   :  { %10563 = vmatpush3.bf16.msra.mxu1 %v11561_v40  ;;  %10542 = vmatprep.subr.bf16.mxu0 %v11562_v43  ;;  %v11604_v43 = vld [vmem:[%s14849_s1 + $0xc30] sm:$0xff]  }
 0x176   :  { %v10240_v37 = vpop.f32.mrb[16].mxu0  ;;  %10564 = vmatprep.subr.bf16.mxu1 %v11563_v46  ;;  %v11607_v46 = vld [vmem:[%s14849_s1 + $0xcf8] sm:$0xff]  }
 0x177   :  { %v10262_v39 = vpop.f32.mrb[16].mxu1  ;;  %v10241_v41 = vpop.f32.mrb[17].mxu0 }
 0x178   :  { %v10263_v42 = vpop.f32.mrb[17].mxu1  ;;  %v10242_v44 = vadd.f32 %v10241_v41, %v10240_v37  ;;  %v10243_v47 = vpop.f32.mrb[18].mxu0  ;;  %10543 = vmatpush3.bf16.msra.mxu0 %v11564_v49  ;;  %v11601_v37 = vld [vmem:[%s14849_s1 + $0xca8] sm:$0xff]   ;;  %v11602_v41 = vld [vmem:[%s14849_s1 + $0xc70] sm:$0xff]   ;;  %v63_v49 = vld [vmem:[%s14850_s0 + $0xc0] sm:$0xff] }
 0x179   :  { %v10264_v45 = vadd.f32 %v10263_v42, %v10262_v39  ;;  %v10265_v48 = vpop.f32.mrb[18].mxu1  ;;  %v10244_v52 = vpop.f32.mrb[19].mxu0  ;;  %10565 = vmatpush3.bf16.msra.mxu1 %v11565_v51  ;;  %10544 = vmatprep.subr.bf16.mxu0 %v11566_v54  ;;  %v11603_v42 = vld [vmem:[%s14849_s1 + $0xcf0] sm:$0xff]   ;;  %v11608_v47 = vld [vmem:[%s14849_s1 + $0xc38] sm:$0xff]   ;;  %v9168_v51 = vcombine.low %v63_v49, %v63_v49  ;;  %v11614_v54 = vld [vmem:[%s14849_s1 + $0xd40] sm:$0xff]  }
 0x17a   :  { %v6929_v50 = vadd.f32 %v10242_v44, %v13260_v5  ;;  %v10266_v53 = vpop.f32.mrb[19].mxu1  ;;  %10566 = vmatprep.subr.bf16.mxu1 %v11567_v56  ;;  %v11578_v5 = vld [vmem:[%s14849_s1 + $0xc40] sm:$0xff]   ;;  %v11605_v44 = vld [vmem:[%s14849_s1 + $0xcb0] sm:$0xff]   ;;  %v11609_v48 = vld [vmem:[%s14849_s1 + $0xcb8] sm:$0xff]   ;;  %v9169_v52 = vcombine.high %v63_v49, %v63_v49 }
 0x17b   :  { %v11615_v56 = vld [vmem:[%s14849_s1 + $0xdc0] sm:$0xff]   ;;  %v11658_v49 = vld [vmem:[%s14849_s1 + $0xe50] sm:$0xff]  }
 0x17c   :  { %v13365_v55 = vadd.f32 %v10264_v45, %v6929_v50  ;;  %10545 = vmatpush3.bf16.msra.mxu0 %v11568_v57  ;;  %v11606_v45 = vld [vmem:[%s14849_s1 + $0xc78] sm:$0xff]   ;;  %v64_v50 = vld [vmem:[%s14850_s0 + $0xc8] sm:$0xff]  ;;  %v11616_v57 = vld [vmem:[%s14849_s1 + $0xd00] sm:$0xff]  }
 0x17d   :  { %10567 = vmatpush3.bf16.msra.mxu1 %v11569_v58  ;;  %10546 = vmatprep.subr.bf16.mxu0 %v11570_v59  ;;  %v9170_v53 = vcombine.low %v64_v50, %v64_v50  ;;  %v11617_v58 = vld [vmem:[%s14849_s1 + $0xd80] sm:$0xff]   ;;  %v11618_v59 = vld [vmem:[%s14849_s1 + $0xd48] sm:$0xff]  }
 0x17e   :  { %10568 = vmatprep.subr.bf16.mxu1 %v11571_v60  ;;  %v11619_v60 = vld [vmem:[%s14849_s1 + $0xdc8] sm:$0xff]  }
 0x180   :  { %10547 = vmatpush3.bf16.msra.mxu0 %v11572_v61  ;;  %v11620_v61 = vld [vmem:[%s14849_s1 + $0xd08] sm:$0xff]  }
 0x181   :  { %10569 = vmatpush3.bf16.msra.mxu1 %v11573_v62  ;;  %10576 = vmatprep.subr.bf16.mxu0 %v11578_v5  ;;  %v11621_v62 = vld [vmem:[%s14849_s1 + $0xd88] sm:$0xff]   ;;  %v11628_v5 = vld [vmem:[%s14849_s1 + $0xd18] sm:$0xff]  }
 0x182   :  { %10598 = vmatprep.subr.bf16.mxu1 %v11579_v6  ;;  %v11629_v6 = vld [vmem:[%s14849_s1 + $0xd98] sm:$0xff]  }
 0x183   :  { %7487 = vmatmul.mubr.bf16.vlgmr.msra.gmra.mrb[44].mxu0 %v9164_v1  ;;  %v11624_v1 = vld [vmem:[%s14849_s1 + $0xd10] sm:$0xff]  }
 0x184   :  { %7527 = vmatmul.mubr.bf16.vlgmr.msra.gmra.mrb[44].mxu1 %v9166_v3  ;;  %10577 = vmatpush3.bf16.msra.mxu0 %v11580_v7  ;;  %v11626_v3 = vld [vmem:[%s14849_s1 + $0xd58] sm:$0xff]   ;;  %v11630_v7 = vld [vmem:[%s14849_s1 + $0xd60] sm:$0xff]  }
 0x185   :  { %10599 = vmatpush3.bf16.msra.mxu1 %v11581_v8  ;;  %10578 = vmatprep.subr.bf16.mxu0 %v11582_v9  ;;  %v11631_v8 = vld [vmem:[%s14849_s1 + $0xde0] sm:$0xff]  }
 0x186   :  { %10600 = vmatprep.subr.bf16.mxu1 %v11583_v10  ;;  %7566 = vmatprep.mubr.bf16.mxu0 %v9169_v52  ;;  %v11632_v10 = vld [vmem:[%s14849_s1 + $0xd20] sm:$0xff]   ;;  %v11661_v52 = vld [vmem:[%s14849_s1 + $0xe90] sm:$0xff]  }
 0x188   :  { %10579 = vmatpush3.bf16.msra.mxu0 %v11584_v11 }
 0x189   :  { %10601 = vmatpush3.bf16.msra.mxu1 %v11585_v12  ;;  %10580 = vmatprep.subr.bf16.mxu0 %v11586_v13  ;;  %v11633_v12 = vld [vmem:[%s14849_s1 + $0xda0] sm:$0xff]  }
 0x18a   :  { %10602 = vmatprep.subr.bf16.mxu1 %v11587_v14 }
 0x18c   :  { %10581 = vmatpush3.bf16.msra.mxu0 %v11588_v15  ;;  %v11634_v15 = vld [vmem:[%s14849_s1 + $0xd68] sm:$0xff]  }
 0x18d   :  { %10603 = vmatpush3.bf16.msra.mxu1 %v11589_v16  ;;  %10582 = vmatprep.subr.bf16.mxu0 %v11590_v17 }
 0x18e   :  { %10604 = vmatprep.subr.bf16.mxu1 %v11591_v18  ;;  %v11635_v18 = vld [vmem:[%s14849_s1 + $0xde8] sm:$0xff]  }
 0x190   :  { %10583 = vmatpush3.bf16.msra.mxu0 %v11592_v19 }
 0x191   :  { %10605 = vmatpush3.bf16.msra.mxu1 %v11593_v20  ;;  %10584 = vmatprep.subr.bf16.mxu0 %v11594_v21  ;;  %v11636_v21 = vld [vmem:[%s14849_s1 + $0xd28] sm:$0xff]  }
 0x192   :  { %10606 = vmatprep.subr.bf16.mxu1 %v11595_v22 }
 0x194   :  { %10585 = vmatpush3.bf16.msra.mxu0 %v11596_v24 }
 0x195   :  { %10607 = vmatpush3.bf16.msra.mxu1 %v11597_v26  ;;  %10586 = vmatprep.subr.bf16.mxu0 %v11598_v30  ;;  %v11638_v26 = vld [vmem:[%s14849_s1 + $0xd70] sm:$0xff]  }
 0x196   :  { %v10284_v23 = vpop.f32.mrb[20].mxu0  ;;  %10608 = vmatprep.subr.bf16.mxu1 %v11599_v32  ;;  %v11641_v30 = vld [vmem:[%s14849_s1 + $0xdb0] sm:$0xff]   ;;  %v11643_v32 = vld [vmem:[%s14849_s1 + $0xdf8] sm:$0xff]  }
 0x197   :  { %v10306_v25 = vpop.f32.mrb[20].mxu1  ;;  %v10285_v27 = vpop.f32.mrb[21].mxu0 }
 0x198   :  { %v10286_v28 = vadd.f32 %v10285_v27, %v10284_v23  ;;  %v10307_v29 = vpop.f32.mrb[21].mxu1  ;;  %v10287_v33 = vpop.f32.mrb[22].mxu0  ;;  %10587 = vmatpush3.bf16.msra.mxu0 %v11600_v36  ;;  %v11637_v23 = vld [vmem:[%s14849_s1 + $0xda8] sm:$0xff]  }
 0x199   :  { %v10308_v31 = vadd.f32 %v10307_v29, %v10306_v25  ;;  %v10309_v35 = vpop.f32.mrb[22].mxu1  ;;  %v10288_v38 = vpop.f32.mrb[23].mxu0  ;;  %10609 = vmatpush3.bf16.msra.mxu1 %v11601_v37  ;;  %10588 = vmatprep.subr.bf16.mxu0 %v11602_v41  ;;  %v11640_v29 = vld [vmem:[%s14849_s1 + $0xd30] sm:$0xff]   ;;  %v11644_v33 = vld [vmem:[%s14849_s1 + $0xd38] sm:$0xff]   ;;  %v11650_v41 = vld [vmem:[%s14849_s1 + $0xe40] sm:$0xff]  }
 0x19a   :  { %v7009_v34 = vadd.f32 %v10286_v28, %v13365_v55  ;;  %v10310_v40 = vpop.f32.mrb[23].mxu1  ;;  %10610 = vmatprep.subr.bf16.mxu1 %v11603_v42  ;;  %v9171_v55 = vcombine.high %v64_v50, %v64_v50  ;;  %v11639_v28 = vld [vmem:[%s14849_s1 + $0xdf0] sm:$0xff]   ;;  %v66_v38 = vld [vmem:[%s14850_s0 + $0xd8] sm:$0xff]  ;;  %v11651_v42 = vld [vmem:[%s14849_s1 + $0xec0] sm:$0xff]  }
 0x19b   :  { %v65_v35 = vld [vmem:[%s14850_s0 + $0xd0] sm:$0xff]  ;;  %v9175_v40 = vcombine.high %v66_v38, %v66_v38 }
 0x19c   :  { %v13467_v39 = vadd.f32 %v10308_v31, %v7009_v34  ;;  %10589 = vmatpush3.bf16.msra.mxu0 %v11604_v43  ;;  %7606 = vmatprep.mubr.bf16.mxu1 %v9171_v55  ;;  %v11642_v31 = vld [vmem:[%s14849_s1 + $0xd78] sm:$0xff]   ;;  %v9172_v36 = vcombine.low %v65_v35, %v65_v35  ;;  %v9173_v37 = vcombine.high %v65_v35, %v65_v35  ;;  %v11652_v43 = vld [vmem:[%s14849_s1 + $0xe00] sm:$0xff]   ;;  %v11659_v50 = vld [vmem:[%s14849_s1 + $0xed0] sm:$0xff]  }
 0x19d   :  { %10611 = vmatpush3.bf16.msra.mxu1 %v11605_v44  ;;  %10590 = vmatprep.subr.bf16.mxu0 %v11606_v45  ;;  %v11645_v34 = vld [vmem:[%s14849_s1 + $0xdb8] sm:$0xff]   ;;  %v11653_v44 = vld [vmem:[%s14849_s1 + $0xe80] sm:$0xff]   ;;  %v11654_v45 = vld [vmem:[%s14849_s1 + $0xe48] sm:$0xff]  }
 0x19e   :  { %10612 = vmatprep.subr.bf16.mxu1 %v11607_v46  ;;  %v11655_v46 = vld [vmem:[%s14849_s1 + $0xec8] sm:$0xff]   ;;  %v11664_v55 = vld [vmem:[%s14849_s1 + $0xe18] sm:$0xff]   ;;  %v11694_v35 = vld [vmem:[%s14849_s1 + $0xf50] sm:$0xff]  }
 0x1a0   :  { %10591 = vmatpush3.bf16.msra.mxu0 %v11608_v47  ;;  %v11656_v47 = vld [vmem:[%s14849_s1 + $0xe08] sm:$0xff]  }
 0x1a1   :  { %10613 = vmatpush3.bf16.msra.mxu1 %v11609_v48  ;;  %10620 = vmatprep.subr.bf16.mxu0 %v11614_v54  ;;  %v11657_v48 = vld [vmem:[%s14849_s1 + $0xe88] sm:$0xff]   ;;  %v11663_v54 = vld [vmem:[%s14849_s1 + $0xed8] sm:$0xff]  }
 0x1a2   :  { %10642 = vmatprep.subr.bf16.mxu1 %v11615_v56  ;;  %v11665_v56 = vld [vmem:[%s14849_s1 + $0xe98] sm:$0xff]  }
 0x1a3   :  { %7567 = vmatmul.mubr.bf16.vlgmr.msra.gmra.mrb[48].mxu0 %v9168_v51  ;;  %v11660_v51 = vld [vmem:[%s14849_s1 + $0xe10] sm:$0xff]  }
 0x1a4   :  { %7607 = vmatmul.mubr.bf16.vlgmr.msra.gmra.mrb[48].mxu1 %v9170_v53  ;;  %10621 = vmatpush3.bf16.msra.mxu0 %v11616_v57  ;;  %v11662_v53 = vld [vmem:[%s14849_s1 + $0xe58] sm:$0xff]   ;;  %v11666_v57 = vld [vmem:[%s14849_s1 + $0xe60] sm:$0xff]  }
 0x1a5   :  { %10643 = vmatpush3.bf16.msra.mxu1 %v11617_v58  ;;  %10622 = vmatprep.subr.bf16.mxu0 %v11618_v59  ;;  %v11667_v58 = vld [vmem:[%s14849_s1 + $0xee0] sm:$0xff]  }
 0x1a6   :  { %10644 = vmatprep.subr.bf16.mxu1 %v11619_v60  ;;  %7646 = vmatprep.mubr.bf16.mxu0 %v9173_v37  ;;  %v11668_v60 = vld [vmem:[%s14849_s1 + $0xe20] sm:$0xff]   ;;  %v11696_v37 = vld [vmem:[%s14849_s1 + $0xf10] sm:$0xff]  }
 0x1a7   :  { %7686 = vmatprep.mubr.bf16.mxu1 %v9175_v40  ;;  %v11699_v40 = vld [vmem:[%s14849_s1 + $0xfd8] sm:$0xff]  }
 0x1a8   :  { %10623 = vmatpush3.bf16.msra.mxu0 %v11620_v61 }
 0x1a9   :  { %10645 = vmatpush3.bf16.msra.mxu1 %v11621_v62  ;;  %10624 = vmatprep.subr.bf16.mxu0 %v11622_v63  ;;  %v11669_v62 = vld [vmem:[%s14849_s1 + $0xea0] sm:$0xff]  }
 0x1aa   :  { %10646 = vmatprep.subr.bf16.mxu1 %v11623_v0 }
 0x1ac   :  { %10625 = vmatpush3.bf16.msra.mxu0 %v11624_v1  ;;  %v11670_v1 = vld [vmem:[%s14849_s1 + $0xe68] sm:$0xff]  }
 0x1ad   :  { %10647 = vmatpush3.bf16.msra.mxu1 %v11625_v2  ;;  %10626 = vmatprep.subr.bf16.mxu0 %v11626_v3 }
 0x1ae   :  { %10648 = vmatprep.subr.bf16.mxu1 %v11627_v4  ;;  %v11671_v4 = vld [vmem:[%s14849_s1 + $0xee8] sm:$0xff]  }
 0x1b0   :  { %10627 = vmatpush3.bf16.msra.mxu0 %v11628_v5 }
 0x1b1   :  { %10649 = vmatpush3.bf16.msra.mxu1 %v11629_v6  ;;  %10628 = vmatprep.subr.bf16.mxu0 %v11630_v7  ;;  %v11672_v7 = vld [vmem:[%s14849_s1 + $0xe28] sm:$0xff]  }
 0x1b2   :  { %10650 = vmatprep.subr.bf16.mxu1 %v11631_v8 }
 0x1b4   :  { %10629 = vmatpush3.bf16.msra.mxu0 %v11632_v10 }
 0x1b5   :  { %10651 = vmatpush3.bf16.msra.mxu1 %v11633_v12  ;;  %10630 = vmatprep.subr.bf16.mxu0 %v11634_v15  ;;  %v11674_v12 = vld [vmem:[%s14849_s1 + $0xe70] sm:$0xff]  }
 0x1b6   :  { %v10328_v9 = vpop.f32.mrb[24].mxu0  ;;  %10652 = vmatprep.subr.bf16.mxu1 %v11635_v18  ;;  %v11676_v15 = vld [vmem:[%s14849_s1 + $0xe30] sm:$0xff]   ;;  %v11679_v18 = vld [vmem:[%s14849_s1 + $0xef8] sm:$0xff]  }
 0x1b7   :  { %v10350_v11 = vpop.f32.mrb[24].mxu1  ;;  %v10329_v13 = vpop.f32.mrb[25].mxu0 }
 0x1b8   :  { %v10351_v14 = vpop.f32.mrb[25].mxu1  ;;  %v10330_v16 = vadd.f32 %v10329_v13, %v10328_v9  ;;  %v10331_v19 = vpop.f32.mrb[26].mxu0  ;;  %10631 = vmatpush3.bf16.msra.mxu0 %v11636_v21  ;;  %v11673_v9 = vld [vmem:[%s14849_s1 + $0xea8] sm:$0xff]   ;;  %v67_v21 = vld [vmem:[%s14850_s0 + $0xe0] sm:$0xff] }
 0x1b9   :  { %v10352_v17 = vadd.f32 %v10351_v14, %v10350_v11  ;;  %v10353_v20 = vpop.f32.mrb[26].mxu1  ;;  %v10332_v24 = vpop.f32.mrb[27].mxu0  ;;  %10653 = vmatpush3.bf16.msra.mxu1 %v11637_v23  ;;  %10632 = vmatprep.subr.bf16.mxu0 %v11638_v26  ;;  %v11675_v14 = vld [vmem:[%s14849_s1 + $0xef0] sm:$0xff]   ;;  %v11680_v19 = vld [vmem:[%s14849_s1 + $0xe38] sm:$0xff]   ;;  %v9176_v23 = vcombine.low %v67_v21, %v67_v21 }
 0x1ba   :  { %v7089_v22 = vadd.f32 %v10330_v16, %v13467_v39  ;;  %v10354_v25 = vpop.f32.mrb[27].mxu1  ;;  %10654 = vmatprep.subr.bf16.mxu1 %v11639_v28  ;;  %v9174_v39 = vcombine.low %v66_v38, %v66_v38  ;;  %v11677_v16 = vld [vmem:[%s14849_s1 + $0xeb0] sm:$0xff]   ;;  %v11681_v20 = vld [vmem:[%s14849_s1 + $0xeb8] sm:$0xff]   ;;  %v9177_v24 = vcombine.high %v67_v21, %v67_v21  ;;  %v11687_v28 = vld [vmem:[%s14849_s1 + $0xfc0] sm:$0xff]  }
 0x1bb   :  { %v11697_v38 = vld [vmem:[%s14849_s1 + $0xf90] sm:$0xff]  }
 0x1bc   :  { %v13575_v27 = vadd.f32 %v10352_v17, %v7089_v22  ;;  %10633 = vmatpush3.bf16.msra.mxu0 %v11640_v29  ;;  %v11678_v17 = vld [vmem:[%s14849_s1 + $0xe78] sm:$0xff]   ;;  %v68_v22 = vld [vmem:[%s14850_s0 + $0xe8] sm:$0xff]  ;;  %v11688_v29 = vld [vmem:[%s14849_s1 + $0xf00] sm:$0xff]  }
 0x1bd   :  { %10655 = vmatpush3.bf16.msra.mxu1 %v11641_v30  ;;  %10634 = vmatprep.subr.bf16.mxu0 %v11642_v31  ;;  %v9178_v25 = vcombine.low %v68_v22, %v68_v22  ;;  %v9179_v26 = vcombine.high %v68_v22, %v68_v22  ;;  %v11689_v30 = vld [vmem:[%s14849_s1 + $0xf80] sm:$0xff]   ;;  %v11690_v31 = vld [vmem:[%s14849_s1 + $0xf48] sm:$0xff]   ;;  %v11730_v21 = vld [vmem:[%s14849_s1 + $0x1050] sm:$0xff]  }
 0x1be   :  { %10656 = vmatprep.subr.bf16.mxu1 %v11643_v32  ;;  %v11691_v32 = vld [vmem:[%s14849_s1 + $0xfc8] sm:$0xff]   ;;  %v11731_v22 = vld [vmem:[%s14849_s1 + $0x10d0] sm:$0xff]  }
 0x1c0   :  { %10635 = vmatpush3.bf16.msra.mxu0 %v11644_v33  ;;  %v11692_v33 = vld [vmem:[%s14849_s1 + $0xf08] sm:$0xff]  }
 0x1c1   :  { %10657 = vmatpush3.bf16.msra.mxu1 %v11645_v34  ;;  %10664 = vmatprep.subr.bf16.mxu0 %v11650_v41  ;;  %v11693_v34 = vld [vmem:[%s14849_s1 + $0xf88] sm:$0xff]   ;;  %v11700_v41 = vld [vmem:[%s14849_s1 + $0xf18] sm:$0xff]  }
 0x1c2   :  { %10686 = vmatprep.subr.bf16.mxu1 %v11651_v42  ;;  %v11701_v42 = vld [vmem:[%s14849_s1 + $0xf98] sm:$0xff]  }
 0x1c3   :  { %7647 = vmatmul.mubr.bf16.vlgmr.msra.gmra.mrb[52].mxu0 %v9172_v36  ;;  %v11695_v36 = vld [vmem:[%s14849_s1 + $0xfd0] sm:$0xff]  }
 0x1c4   :  { %7687 = vmatmul.mubr.bf16.vlgmr.msra.gmra.mrb[52].mxu1 %v9174_v39  ;;  %10665 = vmatpush3.bf16.msra.mxu0 %v11652_v43  ;;  %v11698_v39 = vld [vmem:[%s14849_s1 + $0xf58] sm:$0xff]   ;;  %v11702_v43 = vld [vmem:[%s14849_s1 + $0xf60] sm:$0xff]  }
 0x1c5   :  { %10687 = vmatpush3.bf16.msra.mxu1 %v11653_v44  ;;  %10666 = vmatprep.subr.bf16.mxu0 %v11654_v45  ;;  %v11703_v44 = vld [vmem:[%s14849_s1 + $0xfe0] sm:$0xff]  }
 0x1c6   :  { %10688 = vmatprep.subr.bf16.mxu1 %v11655_v46  ;;  %7726 = vmatprep.mubr.bf16.mxu0 %v9177_v24  ;;  %v11704_v45 = vld [vmem:[%s14849_s1 + $0xf20] sm:$0xff]   ;;  %v11733_v24 = vld [vmem:[%s14849_s1 + $0x1090] sm:$0xff]  }
 0x1c7   :  { %7766 = vmatprep.mubr.bf16.mxu1 %v9179_v26  ;;  %v11735_v26 = vld [vmem:[%s14849_s1 + $0x10d8] sm:$0xff]  }
 0x1c8   :  { %10667 = vmatpush3.bf16.msra.mxu0 %v11656_v47  ;;  %v11705_v47 = vld [vmem:[%s14849_s1 + $0xfa0] sm:$0xff]  }
 0x1c9   :  { %10689 = vmatpush3.bf16.msra.mxu1 %v11657_v48  ;;  %10668 = vmatprep.subr.bf16.mxu0 %v11658_v49 }
 0x1ca   :  { %10690 = vmatprep.subr.bf16.mxu1 %v11659_v50 }
 0x1cc   :  { %10669 = vmatpush3.bf16.msra.mxu0 %v11660_v51 }
 0x1cd   :  { %10691 = vmatpush3.bf16.msra.mxu1 %v11661_v52  ;;  %10670 = vmatprep.subr.bf16.mxu0 %v11662_v53  ;;  %v11706_v53 = vld [vmem:[%s14849_s1 + $0xf68] sm:$0xff]  }
 0x1ce   :  { %10692 = vmatprep.subr.bf16.mxu1 %v11663_v54 }
 0x1d0   :  { %10671 = vmatpush3.bf16.msra.mxu0 %v11664_v55  ;;  %v11707_v55 = vld [vmem:[%s14849_s1 + $0xfe8] sm:$0xff]  }
 0x1d1   :  { %10693 = vmatpush3.bf16.msra.mxu1 %v11665_v56  ;;  %10672 = vmatprep.subr.bf16.mxu0 %v11666_v57 }
 0x1d2   :  { %10694 = vmatprep.subr.bf16.mxu1 %v11667_v58  ;;  %v11708_v58 = vld [vmem:[%s14849_s1 + $0xf28] sm:$0xff]  }
 0x1d4   :  { %10673 = vmatpush3.bf16.msra.mxu0 %v11668_v60  ;;  %v11709_v60 = vld [vmem:[%s14849_s1 + $0xfa8] sm:$0xff]  }
 0x1d5   :  { %10695 = vmatpush3.bf16.msra.mxu1 %v11669_v62  ;;  %10674 = vmatprep.subr.bf16.mxu0 %v11670_v1  ;;  %v11712_v1 = vld [vmem:[%s14849_s1 + $0xf30] sm:$0xff]  }
 0x1d6   :  { %v10372_v59 = vpop.f32.mrb[28].mxu0  ;;  %10696 = vmatprep.subr.bf16.mxu1 %v11671_v4  ;;  %v11715_v4 = vld [vmem:[%s14849_s1 + $0xff8] sm:$0xff]  }
 0x1d7   :  { %v10394_v61 = vpop.f32.mrb[28].mxu1  ;;  %v10373_v63 = vpop.f32.mrb[29].mxu0 }
 0x1d8   :  { %v10395_v0 = vpop.f32.mrb[29].mxu1  ;;  %v10374_v2 = vadd.f32 %v10373_v63, %v10372_v59  ;;  %v10375_v5 = vpop.f32.mrb[30].mxu0  ;;  %10675 = vmatpush3.bf16.msra.mxu0 %v11672_v7  ;;  %v11710_v63 = vld [vmem:[%s14849_s1 + $0xf70] sm:$0xff]  }
 0x1d9   :  { %v10396_v3 = vadd.f32 %v10395_v0, %v10394_v61  ;;  %v10397_v6 = vpop.f32.mrb[30].mxu1  ;;  %v10376_v10 = vpop.f32.mrb[31].mxu0  ;;  %10697 = vmatpush3.bf16.msra.mxu1 %v11673_v9  ;;  %10676 = vmatprep.subr.bf16.mxu0 %v11674_v12  ;;  %v11711_v0 = vld [vmem:[%s14849_s1 + $0xff0] sm:$0xff]   ;;  %v11716_v5 = vld [vmem:[%s14849_s1 + $0xf38] sm:$0xff]  }
 0x1da   :  { %v7169_v8 = vadd.f32 %v10374_v2, %v13575_v27  ;;  %v10398_v11 = vpop.f32.mrb[31].mxu1  ;;  %10698 = vmatprep.subr.bf16.mxu1 %v11675_v14  ;;  %v11686_v27 = vld [vmem:[%s14849_s1 + $0xf40] sm:$0xff]   ;;  %v11713_v2 = vld [vmem:[%s14849_s1 + $0xfb0] sm:$0xff]   ;;  %v11717_v6 = vld [vmem:[%s14849_s1 + $0xfb8] sm:$0xff]  }
 0x1db   :  { %v69_v7 = vld [vmem:[%s14850_s0 + $0xf0] sm:$0xff]  ;;  %v11723_v14 = vld [vmem:[%s14849_s1 + $0x10c0] sm:$0xff]  }
 0x1dc   :  { %v13680_v13 = vadd.f32 %v10396_v3, %v7169_v8  ;;  %10677 = vmatpush3.bf16.msra.mxu0 %v11676_v15  ;;  %v11714_v3 = vld [vmem:[%s14849_s1 + $0xf78] sm:$0xff]   ;;  %v9180_v9 = vcombine.low %v69_v7, %v69_v7  ;;  %v9181_v10 = vcombine.high %v69_v7, %v69_v7  ;;  %v11724_v15 = vld [vmem:[%s14849_s1 + $0x1000] sm:$0xff]   ;;  %v11766_v7 = vld [vmem:[%s14849_s1 + $0x1150] sm:$0xff]  }
 0x1dd   :  { %10699 = vmatpush3.bf16.msra.mxu1 %v11677_v16  ;;  %10678 = vmatprep.subr.bf16.mxu0 %v11678_v17  ;;  %v70_v8 = vld [vmem:[%s14850_s0 + $0xf8] sm:$0xff]  ;;  %v11725_v16 = vld [vmem:[%s14849_s1 + $0x1080] sm:$0xff]   ;;  %v11726_v17 = vld [vmem:[%s14849_s1 + $0x1048] sm:$0xff]  }
 0x1de   :  { %10700 = vmatprep.subr.bf16.mxu1 %v11679_v18  ;;  %v9182_v11 = vcombine.low %v70_v8, %v70_v8  ;;  %v9183_v12 = vcombine.high %v70_v8, %v70_v8  ;;  %v11727_v18 = vld [vmem:[%s14849_s1 + $0x10c8] sm:$0xff]   ;;  %v11767_v8 = vld [vmem:[%s14849_s1 + $0x11d0] sm:$0xff]  }
 0x1e0   :  { %10679 = vmatpush3.bf16.msra.mxu0 %v11680_v19  ;;  %v11728_v19 = vld [vmem:[%s14849_s1 + $0x1008] sm:$0xff]  }
 0x1e1   :  { %10701 = vmatpush3.bf16.msra.mxu1 %v11681_v20  ;;  %10708 = vmatprep.subr.bf16.mxu0 %v11686_v27  ;;  %v11729_v20 = vld [vmem:[%s14849_s1 + $0x1088] sm:$0xff]   ;;  %v11736_v27 = vld [vmem:[%s14849_s1 + $0x1018] sm:$0xff]  }
 0x1e2   :  { %10730 = vmatprep.subr.bf16.mxu1 %v11687_v28  ;;  %v11737_v28 = vld [vmem:[%s14849_s1 + $0x1098] sm:$0xff]  }
 0x1e3   :  { %7727 = vmatmul.mubr.bf16.vlgmr.msra.gmra.mrb[56].mxu0 %v9176_v23  ;;  %v11732_v23 = vld [vmem:[%s14849_s1 + $0x1010] sm:$0xff]  }
 0x1e4   :  { %7767 = vmatmul.mubr.bf16.vlgmr.msra.gmra.mrb[56].mxu1 %v9178_v25  ;;  %10709 = vmatpush3.bf16.msra.mxu0 %v11688_v29  ;;  %v11734_v25 = vld [vmem:[%s14849_s1 + $0x1058] sm:$0xff]   ;;  %v11738_v29 = vld [vmem:[%s14849_s1 + $0x1060] sm:$0xff]  }
 0x1e5   :  { %10731 = vmatpush3.bf16.msra.mxu1 %v11689_v30  ;;  %10710 = vmatprep.subr.bf16.mxu0 %v11690_v31  ;;  %v11739_v30 = vld [vmem:[%s14849_s1 + $0x10e0] sm:$0xff]  }
 0x1e6   :  { %10732 = vmatprep.subr.bf16.mxu1 %v11691_v32  ;;  %7806 = vmatprep.mubr.bf16.mxu0 %v9181_v10  ;;  %v11740_v31 = vld [vmem:[%s14849_s1 + $0x1020] sm:$0xff]   ;;  %v11769_v10 = vld [vmem:[%s14849_s1 + $0x1190] sm:$0xff]  }
 0x1e7   :  { %7846 = vmatprep.mubr.bf16.mxu1 %v9183_v12  ;;  %v11771_v12 = vld [vmem:[%s14849_s1 + $0x11d8] sm:$0xff]  }
 0x1e8   :  { %10711 = vmatpush3.bf16.msra.mxu0 %v11692_v33  ;;  %v11741_v33 = vld [vmem:[%s14849_s1 + $0x10a0] sm:$0xff]  }
 0x1e9   :  { %10733 = vmatpush3.bf16.msra.mxu1 %v11693_v34  ;;  %10712 = vmatprep.subr.bf16.mxu0 %v11694_v35 }
 0x1ea   :  { %10734 = vmatprep.subr.bf16.mxu1 %v11695_v36 }
 0x1ec   :  { %10713 = vmatpush3.bf16.msra.mxu0 %v11696_v37 }
 0x1ed   :  { %10735 = vmatpush3.bf16.msra.mxu1 %v11697_v38  ;;  %10714 = vmatprep.subr.bf16.mxu0 %v11698_v39  ;;  %v11742_v39 = vld [vmem:[%s14849_s1 + $0x1068] sm:$0xff]  }
 0x1ee   :  { %10736 = vmatprep.subr.bf16.mxu1 %v11699_v40 }
 0x1f0   :  { %10715 = vmatpush3.bf16.msra.mxu0 %v11700_v41  ;;  %v11743_v41 = vld [vmem:[%s14849_s1 + $0x10e8] sm:$0xff]  }
 0x1f1   :  { %10737 = vmatpush3.bf16.msra.mxu1 %v11701_v42  ;;  %10716 = vmatprep.subr.bf16.mxu0 %v11702_v43 }
 0x1f2   :  { %10738 = vmatprep.subr.bf16.mxu1 %v11703_v44  ;;  %v11744_v44 = vld [vmem:[%s14849_s1 + $0x1028] sm:$0xff]  }
 0x1f4   :  { %10717 = vmatpush3.bf16.msra.mxu0 %v11704_v45 }
 0x1f5   :  { %10739 = vmatpush3.bf16.msra.mxu1 %v11705_v47  ;;  %10718 = vmatprep.subr.bf16.mxu0 %v11706_v53  ;;  %v11750_v53 = vld [vmem:[%s14849_s1 + $0x1078] sm:$0xff]  }
 0x1f6   :  { %v10416_v46 = vpop.f32.mrb[32].mxu0  ;;  %10740 = vmatprep.subr.bf16.mxu1 %v11707_v55  ;;  %v11752_v55 = vld [vmem:[%s14849_s1 + $0x1038] sm:$0xff]  }
 0x1f7   :  { %v10438_v48 = vpop.f32.mrb[32].mxu1  ;;  %v10417_v49 = vpop.f32.mrb[33].mxu0 }
 0x1f8   :  { %v10439_v50 = vpop.f32.mrb[33].mxu1  ;;  %v10418_v51 = vadd.f32 %v10417_v49, %v10416_v46  ;;  %v10419_v54 = vpop.f32.mrb[34].mxu0  ;;  %10719 = vmatpush3.bf16.msra.mxu0 %v11708_v58  ;;  %v11745_v46 = vld [vmem:[%s14849_s1 + $0x10a8] sm:$0xff]   ;;  %v11746_v49 = vld [vmem:[%s14849_s1 + $0x1070] sm:$0xff]  }
 0x1f9   :  { %v10440_v52 = vadd.f32 %v10439_v50, %v10438_v48  ;;  %v10441_v56 = vpop.f32.mrb[34].mxu1  ;;  %v10420_v59 = vpop.f32.mrb[35].mxu0  ;;  %10741 = vmatpush3.bf16.msra.mxu1 %v11709_v60  ;;  %10720 = vmatprep.subr.bf16.mxu0 %v11710_v63  ;;  %v11747_v50 = vld [vmem:[%s14849_s1 + $0x10f0] sm:$0xff]   ;;  %v11751_v54 = vld [vmem:[%s14849_s1 + $0x10f8] sm:$0xff]   ;;  %v72_v58 = vld [vmem:[%s14850_s0 + $0x108] sm:$0xff] }
 0x1fa   :  { %v7249_v57 = vadd.f32 %v10418_v51, %v13680_v13  ;;  %v10442_v61 = vpop.f32.mrb[35].mxu1  ;;  %10742 = vmatprep.subr.bf16.mxu1 %v11711_v0  ;;  %v11722_v13 = vld [vmem:[%s14849_s1 + $0x1040] sm:$0xff]   ;;  %v11748_v51 = vld [vmem:[%s14849_s1 + $0x1030] sm:$0xff]   ;;  %v11753_v56 = vld [vmem:[%s14849_s1 + $0x10b8] sm:$0xff]  }
 0x1fb   :  { %v9186_v61 = vcombine.low %v72_v58, %v72_v58  ;;  %v11758_v63 = vld [vmem:[%s14849_s1 + $0x1140] sm:$0xff]  }
 0x1fc   :  { %v13782_v62 = vadd.f32 %v10440_v52, %v7249_v57  ;;  %10721 = vmatpush3.bf16.msra.mxu0 %v11712_v1  ;;  %v11749_v52 = vld [vmem:[%s14849_s1 + $0x10b0] sm:$0xff]   ;;  %v71_v57 = vld [vmem:[%s14850_s0 + $0x100] sm:$0xff] }
 0x1fd   :  { %10743 = vmatpush3.bf16.msra.mxu1 %v11713_v2  ;;  %10722 = vmatprep.subr.bf16.mxu0 %v11714_v3  ;;  %v9184_v59 = vcombine.low %v71_v57, %v71_v57  ;;  %v9185_v60 = vcombine.high %v71_v57, %v71_v57  ;;  %v11759_v0 = vld [vmem:[%s14849_s1 + $0x11c0] sm:$0xff]   ;;  %v11762_v3 = vld [vmem:[%s14849_s1 + $0x1148] sm:$0xff]   ;;  %v11802_v57 = vld [vmem:[%s14849_s1 + $0x1250] sm:$0xff]  }
 0x1fe   :  { %10744 = vmatprep.subr.bf16.mxu1 %v11715_v4  ;;  %v11760_v1 = vld [vmem:[%s14849_s1 + $0x1100] sm:$0xff]   ;;  %v11763_v4 = vld [vmem:[%s14849_s1 + $0x11c8] sm:$0xff]  }
 0x1ff   :  { %v11761_v2 = vld [vmem:[%s14849_s1 + $0x1180] sm:$0xff]  }
 0x200   :  { %10723 = vmatpush3.bf16.msra.mxu0 %v11716_v5  ;;  %v11764_v5 = vld [vmem:[%s14849_s1 + $0x1108] sm:$0xff]  }
 0x201   :  { %10745 = vmatpush3.bf16.msra.mxu1 %v11717_v6  ;;  %10752 = vmatprep.subr.bf16.mxu0 %v11722_v13  ;;  %v11765_v6 = vld [vmem:[%s14849_s1 + $0x1188] sm:$0xff]   ;;  %v11772_v13 = vld [vmem:[%s14849_s1 + $0x1118] sm:$0xff]  }
 0x202   :  { %10774 = vmatprep.subr.bf16.mxu1 %v11723_v14  ;;  %v11773_v14 = vld [vmem:[%s14849_s1 + $0x1198] sm:$0xff]  }
 0x203   :  { %7807 = vmatmul.mubr.bf16.vlgmr.msra.gmra.mrb[60].mxu0 %v9180_v9  ;;  %v11768_v9 = vld [vmem:[%s14849_s1 + $0x1110] sm:$0xff]  }
 0x204   :  { %7847 = vmatmul.mubr.bf16.vlgmr.msra.gmra.mrb[60].mxu1 %v9182_v11  ;;  %10753 = vmatpush3.bf16.msra.mxu0 %v11724_v15  ;;  %v11770_v11 = vld [vmem:[%s14849_s1 + $0x1158] sm:$0xff]   ;;  %v11774_v15 = vld [vmem:[%s14849_s1 + $0x1160] sm:$0xff]  }
 0x205   :  { %10775 = vmatpush3.bf16.msra.mxu1 %v11725_v16  ;;  %10754 = vmatprep.subr.bf16.mxu0 %v11726_v17  ;;  %v11775_v16 = vld [vmem:[%s14849_s1 + $0x11e0] sm:$0xff]  }
 0x206   :  { %10776 = vmatprep.subr.bf16.mxu1 %v11727_v18  ;;  %7886 = vmatprep.mubr.bf16.mxu0 %v9185_v60  ;;  %v11776_v17 = vld [vmem:[%s14849_s1 + $0x1120] sm:$0xff]   ;;  %v11805_v60 = vld [vmem:[%s14849_s1 + $0x1290] sm:$0xff]  }
 0x208   :  { %10755 = vmatpush3.bf16.msra.mxu0 %v11728_v19  ;;  %v11777_v19 = vld [vmem:[%s14849_s1 + $0x11a0] sm:$0xff]  }
 0x209   :  { %10777 = vmatpush3.bf16.msra.mxu1 %v11729_v20  ;;  %10756 = vmatprep.subr.bf16.mxu0 %v11730_v21 }
 0x20a   :  { %10778 = vmatprep.subr.bf16.mxu1 %v11731_v22 }
 0x20c   :  { %10757 = vmatpush3.bf16.msra.mxu0 %v11732_v23 }
 0x20d   :  { %10779 = vmatpush3.bf16.msra.mxu1 %v11733_v24  ;;  %10758 = vmatprep.subr.bf16.mxu0 %v11734_v25  ;;  %v11778_v25 = vld [vmem:[%s14849_s1 + $0x1168] sm:$0xff]  }
 0x20e   :  { %10780 = vmatprep.subr.bf16.mxu1 %v11735_v26 }
 0x210   :  { %10759 = vmatpush3.bf16.msra.mxu0 %v11736_v27  ;;  %v11779_v27 = vld [vmem:[%s14849_s1 + $0x11e8] sm:$0xff]  }
 0x211   :  { %10781 = vmatpush3.bf16.msra.mxu1 %v11737_v28  ;;  %10760 = vmatprep.subr.bf16.mxu0 %v11738_v29 }
 0x212   :  { %10782 = vmatprep.subr.bf16.mxu1 %v11739_v30  ;;  %v11780_v30 = vld [vmem:[%s14849_s1 + $0x1128] sm:$0xff]  }
 0x214   :  { %10761 = vmatpush3.bf16.msra.mxu0 %v11740_v31 }
 0x215   :  { %10783 = vmatpush3.bf16.msra.mxu1 %v11741_v33  ;;  %10762 = vmatprep.subr.bf16.mxu0 %v11742_v39  ;;  %v11786_v39 = vld [vmem:[%s14849_s1 + $0x1178] sm:$0xff]  }
 0x216   :  { %v10460_v32 = vpop.f32.mrb[36].mxu0  ;;  %10784 = vmatprep.subr.bf16.mxu1 %v11743_v41  ;;  %v11788_v41 = vld [vmem:[%s14849_s1 + $0x1138] sm:$0xff]  }
 0x217   :  { %v10482_v34 = vpop.f32.mrb[36].mxu1  ;;  %v10461_v35 = vpop.f32.mrb[37].mxu0 }
 0x218   :  { %v10483_v36 = vpop.f32.mrb[37].mxu1  ;;  %v10462_v37 = vadd.f32 %v10461_v35, %v10460_v32  ;;  %v10463_v40 = vpop.f32.mrb[38].mxu0  ;;  %10763 = vmatpush3.bf16.msra.mxu0 %v11744_v44  ;;  %v11781_v32 = vld [vmem:[%s14849_s1 + $0x11a8] sm:$0xff]   ;;  %v11782_v35 = vld [vmem:[%s14849_s1 + $0x1170] sm:$0xff]   ;;  %v74_v44 = vld [vmem:[%s14850_s0 + $0x118] sm:$0xff] }
 0x219   :  { %v10484_v38 = vadd.f32 %v10483_v36, %v10482_v34  ;;  %v10485_v42 = vpop.f32.mrb[38].mxu1  ;;  %v10464_v45 = vpop.f32.mrb[39].mxu0  ;;  %10785 = vmatpush3.bf16.msra.mxu1 %v11745_v46  ;;  %10764 = vmatprep.subr.bf16.mxu0 %v11746_v49  ;;  %v11783_v36 = vld [vmem:[%s14849_s1 + $0x11f0] sm:$0xff]   ;;  %v11787_v40 = vld [vmem:[%s14849_s1 + $0x11f8] sm:$0xff]   ;;  %v11794_v49 = vld [vmem:[%s14849_s1 + $0x1240] sm:$0xff]  }
 0x21a   :  { %v7329_v43 = vadd.f32 %v10462_v37, %v13782_v62  ;;  %v10486_v47 = vpop.f32.mrb[39].mxu1  ;;  %10786 = vmatprep.subr.bf16.mxu1 %v11747_v50  ;;  %v9187_v62 = vcombine.high %v72_v58, %v72_v58  ;;  %v11784_v37 = vld [vmem:[%s14849_s1 + $0x1130] sm:$0xff]   ;;  %v11789_v42 = vld [vmem:[%s14849_s1 + $0x11b8] sm:$0xff]   ;;  %v11795_v50 = vld [vmem:[%s14849_s1 + $0x12c0] sm:$0xff]  }
 0x21b   :  { %v9190_v47 = vcombine.low %v74_v44, %v74_v44  ;;  %v11803_v58 = vld [vmem:[%s14849_s1 + $0x12d0] sm:$0xff]  }
 0x21c   :  { %v13887_v48 = vadd.f32 %v10484_v38, %v7329_v43  ;;  %10765 = vmatpush3.bf16.msra.mxu0 %v11748_v51  ;;  %7926 = vmatprep.mubr.bf16.mxu1 %v9187_v62  ;;  %v11785_v38 = vld [vmem:[%s14849_s1 + $0x11b0] sm:$0xff]   ;;  %v11796_v51 = vld [vmem:[%s14849_s1 + $0x1200] sm:$0xff]   ;;  %v11807_v62 = vld [vmem:[%s14849_s1 + $0x12d8] sm:$0xff]  }
 0x21d   :  { %10787 = vmatpush3.bf16.msra.mxu1 %v11749_v52  ;;  %10766 = vmatprep.subr.bf16.mxu0 %v11750_v53  ;;  %v73_v43 = vld [vmem:[%s14850_s0 + $0x110] sm:$0xff]  ;;  %v11797_v52 = vld [vmem:[%s14849_s1 + $0x1280] sm:$0xff]   ;;  %v11798_v53 = vld [vmem:[%s14849_s1 + $0x1248] sm:$0xff]  }
 0x21e   :  { %10788 = vmatprep.subr.bf16.mxu1 %v11751_v54  ;;  %v9188_v45 = vcombine.low %v73_v43, %v73_v43  ;;  %v9189_v46 = vcombine.high %v73_v43, %v73_v43  ;;  %v11799_v54 = vld [vmem:[%s14849_s1 + $0x12c8] sm:$0xff]   ;;  %v11838_v43 = vld [vmem:[%s14849_s1 + $0x1350] sm:$0xff]  }
 0x220   :  { %10767 = vmatpush3.bf16.msra.mxu0 %v11752_v55  ;;  %v11800_v55 = vld [vmem:[%s14849_s1 + $0x1208] sm:$0xff]  }
 0x221   :  { %10789 = vmatpush3.bf16.msra.mxu1 %v11753_v56  ;;  %10796 = vmatprep.subr.bf16.mxu0 %v11758_v63  ;;  %v11801_v56 = vld [vmem:[%s14849_s1 + $0x1288] sm:$0xff]   ;;  %v11808_v63 = vld [vmem:[%s14849_s1 + $0x1218] sm:$0xff]  }
 0x222   :  { %10818 = vmatprep.subr.bf16.mxu1 %v11759_v0  ;;  %v11809_v0 = vld [vmem:[%s14849_s1 + $0x1298] sm:$0xff]  }
 0x223   :  { %7887 = vmatmul.mubr.bf16.vlgmr.msra.gmra.mrb[64].mxu0 %v9184_v59  ;;  %v11804_v59 = vld [vmem:[%s14849_s1 + $0x1210] sm:$0xff]  }
 0x224   :  { %7927 = vmatmul.mubr.bf16.vlgmr.msra.gmra.mrb[64].mxu1 %v9186_v61  ;;  %10797 = vmatpush3.bf16.msra.mxu0 %v11760_v1  ;;  %v11806_v61 = vld [vmem:[%s14849_s1 + $0x1258] sm:$0xff]   ;;  %v11810_v1 = vld [vmem:[%s14849_s1 + $0x1260] sm:$0xff]  }
 0x225   :  { %10819 = vmatpush3.bf16.msra.mxu1 %v11761_v2  ;;  %10798 = vmatprep.subr.bf16.mxu0 %v11762_v3  ;;  %v11811_v2 = vld [vmem:[%s14849_s1 + $0x12e0] sm:$0xff]  }
 0x226   :  { %10820 = vmatprep.subr.bf16.mxu1 %v11763_v4  ;;  %7966 = vmatprep.mubr.bf16.mxu0 %v9189_v46  ;;  %v11812_v4 = vld [vmem:[%s14849_s1 + $0x1220] sm:$0xff]   ;;  %v11841_v46 = vld [vmem:[%s14849_s1 + $0x1390] sm:$0xff]  }
 0x228   :  { %10799 = vmatpush3.bf16.msra.mxu0 %v11764_v5 }
 0x229   :  { %10821 = vmatpush3.bf16.msra.mxu1 %v11765_v6  ;;  %10800 = vmatprep.subr.bf16.mxu0 %v11766_v7  ;;  %v11813_v6 = vld [vmem:[%s14849_s1 + $0x12a0] sm:$0xff]  }
 0x22a   :  { %10822 = vmatprep.subr.bf16.mxu1 %v11767_v8 }
 0x22c   :  { %10801 = vmatpush3.bf16.msra.mxu0 %v11768_v9 }
 0x22d   :  { %10823 = vmatpush3.bf16.msra.mxu1 %v11769_v10  ;;  %10802 = vmatprep.subr.bf16.mxu0 %v11770_v11  ;;  %v11814_v10 = vld [vmem:[%s14849_s1 + $0x1268] sm:$0xff]  }
 0x22e   :  { %10824 = vmatprep.subr.bf16.mxu1 %v11771_v12  ;;  %v11815_v12 = vld [vmem:[%s14849_s1 + $0x12e8] sm:$0xff]  }
 0x230   :  { %10803 = vmatpush3.bf16.msra.mxu0 %v11772_v13 }
 0x231   :  { %10825 = vmatpush3.bf16.msra.mxu1 %v11773_v14  ;;  %10804 = vmatprep.subr.bf16.mxu0 %v11774_v15 }
 0x232   :  { %10826 = vmatprep.subr.bf16.mxu1 %v11775_v16  ;;  %v11816_v16 = vld [vmem:[%s14849_s1 + $0x1228] sm:$0xff]  }
 0x234   :  { %10805 = vmatpush3.bf16.msra.mxu0 %v11776_v17  ;;  %v11817_v17 = vld [vmem:[%s14849_s1 + $0x12a8] sm:$0xff]  }
 0x235   :  { %10827 = vmatpush3.bf16.msra.mxu1 %v11777_v19  ;;  %10806 = vmatprep.subr.bf16.mxu0 %v11778_v25  ;;  %v11822_v25 = vld [vmem:[%s14849_s1 + $0x1278] sm:$0xff]  }
 0x236   :  { %v10504_v18 = vpop.f32.mrb[40].mxu0  ;;  %10828 = vmatprep.subr.bf16.mxu1 %v11779_v27  ;;  %v11824_v27 = vld [vmem:[%s14849_s1 + $0x1238] sm:$0xff]  }
 0x237   :  { %v10526_v20 = vpop.f32.mrb[40].mxu1  ;;  %v10505_v21 = vpop.f32.mrb[41].mxu0 }
 0x238   :  { %v10527_v22 = vpop.f32.mrb[41].mxu1  ;;  %v10506_v23 = vadd.f32 %v10505_v21, %v10504_v18  ;;  %v10507_v26 = vpop.f32.mrb[42].mxu0  ;;  %10807 = vmatpush3.bf16.msra.mxu0 %v11780_v30  ;;  %v11818_v21 = vld [vmem:[%s14849_s1 + $0x1270] sm:$0xff]   ;;  %v76_v30 = vld [vmem:[%s14850_s0 + $0x128] sm:$0xff] }
 0x239   :  { %v10528_v24 = vadd.f32 %v10527_v22, %v10526_v20  ;;  %v10529_v28 = vpop.f32.mrb[42].mxu1  ;;  %v10508_v31 = vpop.f32.mrb[43].mxu0  ;;  %10829 = vmatpush3.bf16.msra.mxu1 %v11781_v32  ;;  %10808 = vmatprep.subr.bf16.mxu0 %v11782_v35  ;;  %v11819_v22 = vld [vmem:[%s14849_s1 + $0x12f0] sm:$0xff]   ;;  %v11823_v26 = vld [vmem:[%s14849_s1 + $0x12f8] sm:$0xff]   ;;  %v9195_v35 = vcombine.high %v76_v30, %v76_v30 }
 0x23a   :  { %v7409_v29 = vadd.f32 %v10506_v23, %v13887_v48  ;;  %v10530_v33 = vpop.f32.mrb[43].mxu1  ;;  %10830 = vmatprep.subr.bf16.mxu1 %v11783_v36  ;;  %v9191_v48 = vcombine.high %v74_v44, %v74_v44  ;;  %v11820_v23 = vld [vmem:[%s14849_s1 + $0x1230] sm:$0xff]   ;;  %v11825_v28 = vld [vmem:[%s14849_s1 + $0x12b8] sm:$0xff]   ;;  %v11831_v36 = vld [vmem:[%s14849_s1 + $0x13c0] sm:$0xff]  }
 0x23b   :  { %v9194_v33 = vcombine.low %v76_v30, %v76_v30  ;;  %v11839_v44 = vld [vmem:[%s14849_s1 + $0x13d0] sm:$0xff]  }
 0x23c   :  { %v13992_v34 = vadd.f32 %v10528_v24, %v7409_v29  ;;  %10809 = vmatpush3.bf16.msra.mxu0 %v11784_v37  ;;  %8006 = vmatprep.mubr.bf16.mxu1 %v9191_v48  ;;  %v11821_v24 = vld [vmem:[%s14849_s1 + $0x12b0] sm:$0xff]   ;;  %v75_v29 = vld [vmem:[%s14850_s0 + $0x120] sm:$0xff]  ;;  %v11843_v48 = vld [vmem:[%s14849_s1 + $0x13d8] sm:$0xff]  }
 0x23d   :  { %10831 = vmatpush3.bf16.msra.mxu1 %v11785_v38  ;;  %10810 = vmatprep.subr.bf16.mxu0 %v11786_v39  ;;  %v9192_v31 = vcombine.low %v75_v29, %v75_v29  ;;  %v9193_v32 = vcombine.high %v75_v29, %v75_v29  ;;  %v11832_v37 = vld [vmem:[%s14849_s1 + $0x1300] sm:$0xff]   ;;  %v11834_v39 = vld [vmem:[%s14849_s1 + $0x1348] sm:$0xff]   ;;  %v11874_v29 = vld [vmem:[%s14849_s1 + $0x1450] sm:$0xff]  }
 0x23e   :  { %10832 = vmatprep.subr.bf16.mxu1 %v11787_v40  ;;  %v11833_v38 = vld [vmem:[%s14849_s1 + $0x1380] sm:$0xff]   ;;  %v11835_v40 = vld [vmem:[%s14849_s1 + $0x13c8] sm:$0xff]   ;;  %v11875_v30 = vld [vmem:[%s14849_s1 + $0x14d0] sm:$0xff]  }
 0x240   :  { %10811 = vmatpush3.bf16.msra.mxu0 %v11788_v41  ;;  %v11836_v41 = vld [vmem:[%s14849_s1 + $0x1308] sm:$0xff]  }
 0x241   :  { %10833 = vmatpush3.bf16.msra.mxu1 %v11789_v42  ;;  %10840 = vmatprep.subr.bf16.mxu0 %v11794_v49  ;;  %v11837_v42 = vld [vmem:[%s14849_s1 + $0x1388] sm:$0xff]   ;;  %v11844_v49 = vld [vmem:[%s14849_s1 + $0x1318] sm:$0xff]  }
 0x242   :  { %10862 = vmatprep.subr.bf16.mxu1 %v11795_v50  ;;  %v11845_v50 = vld [vmem:[%s14849_s1 + $0x1398] sm:$0xff]  }
 0x243   :  { %7967 = vmatmul.mubr.bf16.vlgmr.msra.gmra.mrb[68].mxu0 %v9188_v45  ;;  %v11840_v45 = vld [vmem:[%s14849_s1 + $0x1310] sm:$0xff]  }
 0x244   :  { %8007 = vmatmul.mubr.bf16.vlgmr.msra.gmra.mrb[68].mxu1 %v9190_v47  ;;  %10841 = vmatpush3.bf16.msra.mxu0 %v11796_v51  ;;  %v11842_v47 = vld [vmem:[%s14849_s1 + $0x1358] sm:$0xff]   ;;  %v11846_v51 = vld [vmem:[%s14849_s1 + $0x1360] sm:$0xff]  }
 0x245   :  { %10863 = vmatpush3.bf16.msra.mxu1 %v11797_v52  ;;  %10842 = vmatprep.subr.bf16.mxu0 %v11798_v53  ;;  %v11847_v52 = vld [vmem:[%s14849_s1 + $0x13e0] sm:$0xff]  }
 0x246   :  { %10864 = vmatprep.subr.bf16.mxu1 %v11799_v54  ;;  %8046 = vmatprep.mubr.bf16.mxu0 %v9193_v32  ;;  %v11848_v54 = vld [vmem:[%s14849_s1 + $0x1320] sm:$0xff]   ;;  %v11877_v32 = vld [vmem:[%s14849_s1 + $0x1490] sm:$0xff]  }
 0x247   :  { %8086 = vmatprep.mubr.bf16.mxu1 %v9195_v35  ;;  %v11880_v35 = vld [vmem:[%s14849_s1 + $0x1418] sm:$0xff]  }
 0x248   :  { %10843 = vmatpush3.bf16.msra.mxu0 %v11800_v55 }
 0x249   :  { %10865 = vmatpush3.bf16.msra.mxu1 %v11801_v56  ;;  %10844 = vmatprep.subr.bf16.mxu0 %v11802_v57  ;;  %v11849_v56 = vld [vmem:[%s14849_s1 + $0x13a0] sm:$0xff]  }
 0x24a   :  { %10866 = vmatprep.subr.bf16.mxu1 %v11803_v58 }
 0x24c   :  { %10845 = vmatpush3.bf16.msra.mxu0 %v11804_v59  ;;  %v11850_v59 = vld [vmem:[%s14849_s1 + $0x1368] sm:$0xff]  }
 0x24d   :  { %10867 = vmatpush3.bf16.msra.mxu1 %v11805_v60  ;;  %10846 = vmatprep.subr.bf16.mxu0 %v11806_v61 }
 0x24e   :  { %10868 = vmatprep.subr.bf16.mxu1 %v11807_v62  ;;  %v11851_v62 = vld [vmem:[%s14849_s1 + $0x13e8] sm:$0xff]  }
 0x250   :  { %10847 = vmatpush3.bf16.msra.mxu0 %v11808_v63 }
 0x251   :  { %10869 = vmatpush3.bf16.msra.mxu1 %v11809_v0  ;;  %10848 = vmatprep.subr.bf16.mxu0 %v11810_v1  ;;  %v11852_v1 = vld [vmem:[%s14849_s1 + $0x1328] sm:$0xff]  }
 0x252   :  { %10870 = vmatprep.subr.bf16.mxu1 %v11811_v2 }
 0x254   :  { %10849 = vmatpush3.bf16.msra.mxu0 %v11812_v4 }
 0x255   :  { %10871 = vmatpush3.bf16.msra.mxu1 %v11813_v6  ;;  %10850 = vmatprep.subr.bf16.mxu0 %v11814_v10  ;;  %v11854_v6 = vld [vmem:[%s14849_s1 + $0x1370] sm:$0xff]  }
 0x256   :  { %v10548_v3 = vpop.f32.mrb[44].mxu0  ;;  %10872 = vmatprep.subr.bf16.mxu1 %v11815_v12  ;;  %v11857_v10 = vld [vmem:[%s14849_s1 + $0x13b0] sm:$0xff]   ;;  %v11859_v12 = vld [vmem:[%s14849_s1 + $0x13f8] sm:$0xff]  }
 0x257   :  { %v10570_v5 = vpop.f32.mrb[44].mxu1  ;;  %v10549_v7 = vpop.f32.mrb[45].mxu0 }
 0x258   :  { %v10550_v8 = vadd.f32 %v10549_v7, %v10548_v3  ;;  %v10571_v9 = vpop.f32.mrb[45].mxu1  ;;  %v10551_v13 = vpop.f32.mrb[46].mxu0  ;;  %10851 = vmatpush3.bf16.msra.mxu0 %v11816_v16  ;;  %v11853_v3 = vld [vmem:[%s14849_s1 + $0x13a8] sm:$0xff]  }
 0x259   :  { %v10572_v11 = vadd.f32 %v10571_v9, %v10570_v5  ;;  %v10573_v15 = vpop.f32.mrb[46].mxu1  ;;  %v10552_v18 = vpop.f32.mrb[47].mxu0  ;;  %10873 = vmatpush3.bf16.msra.mxu1 %v11817_v17  ;;  %10852 = vmatprep.subr.bf16.mxu0 %v11818_v21  ;;  %v11856_v9 = vld [vmem:[%s14849_s1 + $0x1330] sm:$0xff]   ;;  %v11860_v13 = vld [vmem:[%s14849_s1 + $0x1338] sm:$0xff]   ;;  %v11866_v21 = vld [vmem:[%s14849_s1 + $0x1440] sm:$0xff]  }
 0x25a   :  { %v7489_v14 = vadd.f32 %v10550_v8, %v13992_v34  ;;  %v10574_v20 = vpop.f32.mrb[47].mxu1  ;;  %10874 = vmatprep.subr.bf16.mxu1 %v11819_v22  ;;  %v11830_v34 = vld [vmem:[%s14849_s1 + $0x1340] sm:$0xff]   ;;  %v11855_v8 = vld [vmem:[%s14849_s1 + $0x13f0] sm:$0xff]   ;;  %v78_v18 = vld [vmem:[%s14850_s0 + $0x138] sm:$0xff] }
 0x25b   :  { %v77_v15 = vld [vmem:[%s14850_s0 + $0x130] sm:$0xff]  ;;  %v9199_v20 = vcombine.high %v78_v18, %v78_v18  ;;  %v11867_v22 = vld [vmem:[%s14849_s1 + $0x14c0] sm:$0xff]  }
 0x25c   :  { %v14097_v19 = vadd.f32 %v10572_v11, %v7489_v14  ;;  %10853 = vmatpush3.bf16.msra.mxu0 %v11820_v23  ;;  %v11858_v11 = vld [vmem:[%s14849_s1 + $0x1378] sm:$0xff]   ;;  %v9196_v16 = vcombine.low %v77_v15, %v77_v15  ;;  %v9197_v17 = vcombine.high %v77_v15, %v77_v15  ;;  %v11868_v23 = vld [vmem:[%s14849_s1 + $0x1400] sm:$0xff]   ;;  %v11910_v15 = vld [vmem:[%s14849_s1 + $0x1550] sm:$0xff]  }
 0x25d   :  { %10875 = vmatpush3.bf16.msra.mxu1 %v11821_v24  ;;  %10854 = vmatprep.subr.bf16.mxu0 %v11822_v25  ;;  %v11861_v14 = vld [vmem:[%s14849_s1 + $0x13b8] sm:$0xff]   ;;  %v11869_v24 = vld [vmem:[%s14849_s1 + $0x1480] sm:$0xff]   ;;  %v11870_v25 = vld [vmem:[%s14849_s1 + $0x1448] sm:$0xff]  }
 0x25e   :  { %10876 = vmatprep.subr.bf16.mxu1 %v11823_v26  ;;  %v11871_v26 = vld [vmem:[%s14849_s1 + $0x14c8] sm:$0xff]  }
 0x260   :  { %10855 = vmatpush3.bf16.msra.mxu0 %v11824_v27  ;;  %v11872_v27 = vld [vmem:[%s14849_s1 + $0x1408] sm:$0xff]  }
 0x261   :  { %10877 = vmatpush3.bf16.msra.mxu1 %v11825_v28  ;;  %10884 = vmatprep.subr.bf16.mxu0 %v11830_v34  ;;  %v11873_v28 = vld [vmem:[%s14849_s1 + $0x1488] sm:$0xff]   ;;  %v11879_v34 = vld [vmem:[%s14849_s1 + $0x14d8] sm:$0xff]  }
 0x262   :  { %10906 = vmatprep.subr.bf16.mxu1 %v11831_v36  ;;  %v11881_v36 = vld [vmem:[%s14849_s1 + $0x1498] sm:$0xff]  }
 0x263   :  { %8047 = vmatmul.mubr.bf16.vlgmr.msra.gmra.mrb[72].mxu0 %v9192_v31  ;;  %v11876_v31 = vld [vmem:[%s14849_s1 + $0x1410] sm:$0xff]  }
 0x264   :  { %8087 = vmatmul.mubr.bf16.vlgmr.msra.gmra.mrb[72].mxu1 %v9194_v33  ;;  %10885 = vmatpush3.bf16.msra.mxu0 %v11832_v37  ;;  %v11878_v33 = vld [vmem:[%s14849_s1 + $0x1458] sm:$0xff]   ;;  %v11882_v37 = vld [vmem:[%s14849_s1 + $0x1460] sm:$0xff]  }
 0x265   :  { %10907 = vmatpush3.bf16.msra.mxu1 %v11833_v38  ;;  %10886 = vmatprep.subr.bf16.mxu0 %v11834_v39  ;;  %v11883_v38 = vld [vmem:[%s14849_s1 + $0x14e0] sm:$0xff]  }
 0x266   :  { %10908 = vmatprep.subr.bf16.mxu1 %v11835_v40  ;;  %8126 = vmatprep.mubr.bf16.mxu0 %v9197_v17  ;;  %v11884_v40 = vld [vmem:[%s14849_s1 + $0x1420] sm:$0xff]   ;;  %v11912_v17 = vld [vmem:[%s14849_s1 + $0x1510] sm:$0xff]  }
 0x267   :  { %8166 = vmatprep.mubr.bf16.mxu1 %v9199_v20  ;;  %v11915_v20 = vld [vmem:[%s14849_s1 + $0x15d8] sm:$0xff]  }
 0x268   :  { %10887 = vmatpush3.bf16.msra.mxu0 %v11836_v41 }
 0x269   :  { %10909 = vmatpush3.bf16.msra.mxu1 %v11837_v42  ;;  %10888 = vmatprep.subr.bf16.mxu0 %v11838_v43  ;;  %v11885_v42 = vld [vmem:[%s14849_s1 + $0x14a0] sm:$0xff]  }
 0x26a   :  { %10910 = vmatprep.subr.bf16.mxu1 %v11839_v44 }
 0x26c   :  { %10889 = vmatpush3.bf16.msra.mxu0 %v11840_v45  ;;  %v11886_v45 = vld [vmem:[%s14849_s1 + $0x1468] sm:$0xff]  }
 0x26d   :  { %10911 = vmatpush3.bf16.msra.mxu1 %v11841_v46  ;;  %10890 = vmatprep.subr.bf16.mxu0 %v11842_v47 }
 0x26e   :  { %10912 = vmatprep.subr.bf16.mxu1 %v11843_v48  ;;  %v11887_v48 = vld [vmem:[%s14849_s1 + $0x14e8] sm:$0xff]  }
 0x270   :  { %10891 = vmatpush3.bf16.msra.mxu0 %v11844_v49 }
 0x271   :  { %10913 = vmatpush3.bf16.msra.mxu1 %v11845_v50  ;;  %10892 = vmatprep.subr.bf16.mxu0 %v11846_v51  ;;  %v11888_v51 = vld [vmem:[%s14849_s1 + $0x1428] sm:$0xff]  }
 0x272   :  { %10914 = vmatprep.subr.bf16.mxu1 %v11847_v52 }
 0x274   :  { %10893 = vmatpush3.bf16.msra.mxu0 %v11848_v54 }
 0x275   :  { %10915 = vmatpush3.bf16.msra.mxu1 %v11849_v56  ;;  %10894 = vmatprep.subr.bf16.mxu0 %v11850_v59  ;;  %v11890_v56 = vld [vmem:[%s14849_s1 + $0x1470] sm:$0xff]  }
 0x276   :  { %v10592_v53 = vpop.f32.mrb[48].mxu0  ;;  %10916 = vmatprep.subr.bf16.mxu1 %v11851_v62  ;;  %v11892_v59 = vld [vmem:[%s14849_s1 + $0x1430] sm:$0xff]   ;;  %v11895_v62 = vld [vmem:[%s14849_s1 + $0x14f8] sm:$0xff]  }
 0x277   :  { %v10614_v55 = vpop.f32.mrb[48].mxu1  ;;  %v10593_v57 = vpop.f32.mrb[49].mxu0 }
 0x278   :  { %v10615_v58 = vpop.f32.mrb[49].mxu1  ;;  %v10594_v60 = vadd.f32 %v10593_v57, %v10592_v53  ;;  %v10595_v63 = vpop.f32.mrb[50].mxu0  ;;  %10895 = vmatpush3.bf16.msra.mxu0 %v11852_v1  ;;  %v11889_v53 = vld [vmem:[%s14849_s1 + $0x14a8] sm:$0xff]   ;;  %v79_v1 = vld [vmem:[%s14850_s0 + $0x140] sm:$0xff] }
 0x279   :  { %v10616_v61 = vadd.f32 %v10615_v58, %v10614_v55  ;;  %v10617_v0 = vpop.f32.mrb[50].mxu1  ;;  %v10596_v4 = vpop.f32.mrb[51].mxu0  ;;  %10917 = vmatpush3.bf16.msra.mxu1 %v11853_v3  ;;  %10896 = vmatprep.subr.bf16.mxu0 %v11854_v6  ;;  %v11891_v58 = vld [vmem:[%s14849_s1 + $0x14f0] sm:$0xff]   ;;  %v11896_v63 = vld [vmem:[%s14849_s1 + $0x1438] sm:$0xff]   ;;  %v9200_v3 = vcombine.low %v79_v1, %v79_v1 }
 0x27a   :  { %v7569_v2 = vadd.f32 %v10594_v60, %v14097_v19  ;;  %v10618_v5 = vpop.f32.mrb[51].mxu1  ;;  %10918 = vmatprep.subr.bf16.mxu1 %v11855_v8  ;;  %v9198_v19 = vcombine.low %v78_v18, %v78_v18  ;;  %v11893_v60 = vld [vmem:[%s14849_s1 + $0x14b0] sm:$0xff]   ;;  %v11897_v0 = vld [vmem:[%s14849_s1 + $0x14b8] sm:$0xff]   ;;  %v9201_v4 = vcombine.high %v79_v1, %v79_v1  ;;  %v11903_v8 = vld [vmem:[%s14849_s1 + $0x15c0] sm:$0xff]  }
 0x27b   :  { %v11913_v18 = vld [vmem:[%s14849_s1 + $0x1590] sm:$0xff]  }
 0x27c   :  { %v14205_v7 = vadd.f32 %v10616_v61, %v7569_v2  ;;  %10897 = vmatpush3.bf16.msra.mxu0 %v11856_v9  ;;  %v11894_v61 = vld [vmem:[%s14849_s1 + $0x1478] sm:$0xff]   ;;  %v80_v2 = vld [vmem:[%s14850_s0 + $0x148] sm:$0xff]  ;;  %v11904_v9 = vld [vmem:[%s14849_s1 + $0x1500] sm:$0xff]  }
 0x27d   :  { %10919 = vmatpush3.bf16.msra.mxu1 %v11857_v10  ;;  %10898 = vmatprep.subr.bf16.mxu0 %v11858_v11  ;;  %v9202_v5 = vcombine.low %v80_v2, %v80_v2  ;;  %v9203_v6 = vcombine.high %v80_v2, %v80_v2  ;;  %v11905_v10 = vld [vmem:[%s14849_s1 + $0x1580] sm:$0xff]   ;;  %v11906_v11 = vld [vmem:[%s14849_s1 + $0x1548] sm:$0xff]   ;;  %v11946_v1 = vld [vmem:[%s14849_s1 + $0x1650] sm:$0xff]  }
 0x27e   :  { %10920 = vmatprep.subr.bf16.mxu1 %v11859_v12  ;;  %v11907_v12 = vld [vmem:[%s14849_s1 + $0x15c8] sm:$0xff]   ;;  %v11947_v2 = vld [vmem:[%s14849_s1 + $0x16d0] sm:$0xff]  }
 0x280   :  { %10899 = vmatpush3.bf16.msra.mxu0 %v11860_v13  ;;  %v11908_v13 = vld [vmem:[%s14849_s1 + $0x1508] sm:$0xff]  }
 0x281   :  { %10921 = vmatpush3.bf16.msra.mxu1 %v11861_v14  ;;  %10928 = vmatprep.subr.bf16.mxu0 %v11866_v21  ;;  %v11909_v14 = vld [vmem:[%s14849_s1 + $0x1588] sm:$0xff]   ;;  %v11916_v21 = vld [vmem:[%s14849_s1 + $0x1518] sm:$0xff]  }
 0x282   :  { %10950 = vmatprep.subr.bf16.mxu1 %v11867_v22  ;;  %v11917_v22 = vld [vmem:[%s14849_s1 + $0x1598] sm:$0xff]  }
 0x283   :  { %8127 = vmatmul.mubr.bf16.vlgmr.msra.gmra.mrb[76].mxu0 %v9196_v16  ;;  %v11911_v16 = vld [vmem:[%s14849_s1 + $0x15d0] sm:$0xff]  }
 0x284   :  { %8167 = vmatmul.mubr.bf16.vlgmr.msra.gmra.mrb[76].mxu1 %v9198_v19  ;;  %10929 = vmatpush3.bf16.msra.mxu0 %v11868_v23  ;;  %v11914_v19 = vld [vmem:[%s14849_s1 + $0x1558] sm:$0xff]   ;;  %v11918_v23 = vld [vmem:[%s14849_s1 + $0x1560] sm:$0xff]  }
 0x285   :  { %10951 = vmatpush3.bf16.msra.mxu1 %v11869_v24  ;;  %10930 = vmatprep.subr.bf16.mxu0 %v11870_v25  ;;  %v11919_v24 = vld [vmem:[%s14849_s1 + $0x15e0] sm:$0xff]  }
 0x286   :  { %10952 = vmatprep.subr.bf16.mxu1 %v11871_v26  ;;  %8206 = vmatprep.mubr.bf16.mxu0 %v9201_v4  ;;  %v11920_v26 = vld [vmem:[%s14849_s1 + $0x1520] sm:$0xff]   ;;  %v11949_v4 = vld [vmem:[%s14849_s1 + $0x1690] sm:$0xff]  }
 0x287   :  { %8246 = vmatprep.mubr.bf16.mxu1 %v9203_v6  ;;  %v11951_v6 = vld [vmem:[%s14849_s1 + $0x16d8] sm:$0xff]  }
 0x288   :  { %10931 = vmatpush3.bf16.msra.mxu0 %v11872_v27 }
 0x289   :  { %10953 = vmatpush3.bf16.msra.mxu1 %v11873_v28  ;;  %10932 = vmatprep.subr.bf16.mxu0 %v11874_v29  ;;  %v11921_v28 = vld [vmem:[%s14849_s1 + $0x15a0] sm:$0xff]  }
 0x28a   :  { %10954 = vmatprep.subr.bf16.mxu1 %v11875_v30 }
 0x28c   :  { %10933 = vmatpush3.bf16.msra.mxu0 %v11876_v31 }
 0x28d   :  { %10955 = vmatpush3.bf16.msra.mxu1 %v11877_v32  ;;  %10934 = vmatprep.subr.bf16.mxu0 %v11878_v33  ;;  %v11922_v32 = vld [vmem:[%s14849_s1 + $0x1568] sm:$0xff]  }
 0x28e   :  { %10956 = vmatprep.subr.bf16.mxu1 %v11879_v34  ;;  %v11923_v34 = vld [vmem:[%s14849_s1 + $0x15e8] sm:$0xff]  }
 0x290   :  { %10935 = vmatpush3.bf16.msra.mxu0 %v11880_v35 }
 0x291   :  { %10957 = vmatpush3.bf16.msra.mxu1 %v11881_v36  ;;  %10936 = vmatprep.subr.bf16.mxu0 %v11882_v37 }
 0x292   :  { %10958 = vmatprep.subr.bf16.mxu1 %v11883_v38  ;;  %v11924_v38 = vld [vmem:[%s14849_s1 + $0x1528] sm:$0xff]  }
 0x294   :  { %10937 = vmatpush3.bf16.msra.mxu0 %v11884_v40 }
 0x295   :  { %10959 = vmatpush3.bf16.msra.mxu1 %v11885_v42  ;;  %10938 = vmatprep.subr.bf16.mxu0 %v11886_v45  ;;  %v11928_v45 = vld [vmem:[%s14849_s1 + $0x1530] sm:$0xff]  }
 0x296   :  { %v10636_v39 = vpop.f32.mrb[52].mxu0  ;;  %10960 = vmatprep.subr.bf16.mxu1 %v11887_v48  ;;  %v11931_v48 = vld [vmem:[%s14849_s1 + $0x15f8] sm:$0xff]  }
 0x297   :  { %v10658_v41 = vpop.f32.mrb[52].mxu1  ;;  %v10637_v43 = vpop.f32.mrb[53].mxu0 }
 0x298   :  { %v10659_v44 = vpop.f32.mrb[53].mxu1  ;;  %v10638_v46 = vadd.f32 %v10637_v43, %v10636_v39  ;;  %v10639_v49 = vpop.f32.mrb[54].mxu0  ;;  %10939 = vmatpush3.bf16.msra.mxu0 %v11888_v51  ;;  %v11925_v39 = vld [vmem:[%s14849_s1 + $0x15a8] sm:$0xff]   ;;  %v11926_v43 = vld [vmem:[%s14849_s1 + $0x1570] sm:$0xff]  }
 0x299   :  { %v10660_v47 = vadd.f32 %v10659_v44, %v10658_v41  ;;  %v10661_v50 = vpop.f32.mrb[54].mxu1  ;;  %v10640_v54 = vpop.f32.mrb[55].mxu0  ;;  %10961 = vmatpush3.bf16.msra.mxu1 %v11889_v53  ;;  %10940 = vmatprep.subr.bf16.mxu0 %v11890_v56  ;;  %v11927_v44 = vld [vmem:[%s14849_s1 + $0x15f0] sm:$0xff]   ;;  %v11932_v49 = vld [vmem:[%s14849_s1 + $0x1538] sm:$0xff]   ;;  %v11938_v56 = vld [vmem:[%s14849_s1 + $0x1640] sm:$0xff]  }
 0x29a   :  { %v7649_v52 = vadd.f32 %v10638_v46, %v14205_v7  ;;  %v10662_v55 = vpop.f32.mrb[55].mxu1  ;;  %10962 = vmatprep.subr.bf16.mxu1 %v11891_v58  ;;  %v11902_v7 = vld [vmem:[%s14849_s1 + $0x1540] sm:$0xff]   ;;  %v11929_v46 = vld [vmem:[%s14849_s1 + $0x15b0] sm:$0xff]   ;;  %v11933_v50 = vld [vmem:[%s14849_s1 + $0x15b8] sm:$0xff]  }
 0x29b   :  { %v81_v51 = vld [vmem:[%s14850_s0 + $0x150] sm:$0xff]  ;;  %v11939_v58 = vld [vmem:[%s14849_s1 + $0x16c0] sm:$0xff]  }
 0x29c   :  { %v14310_v57 = vadd.f32 %v10660_v47, %v7649_v52  ;;  %10941 = vmatpush3.bf16.msra.mxu0 %v11892_v59  ;;  %v11930_v47 = vld [vmem:[%s14849_s1 + $0x1578] sm:$0xff]   ;;  %v9204_v53 = vcombine.low %v81_v51, %v81_v51  ;;  %v9205_v54 = vcombine.high %v81_v51, %v81_v51  ;;  %v11940_v59 = vld [vmem:[%s14849_s1 + $0x1600] sm:$0xff]   ;;  %v11982_v51 = vld [vmem:[%s14849_s1 + $0x1750] sm:$0xff]  }
 0x29d   :  { %10963 = vmatpush3.bf16.msra.mxu1 %v11893_v60  ;;  %10942 = vmatprep.subr.bf16.mxu0 %v11894_v61  ;;  %v82_v52 = vld [vmem:[%s14850_s0 + $0x158] sm:$0xff]  ;;  %v11941_v60 = vld [vmem:[%s14849_s1 + $0x1680] sm:$0xff]   ;;  %v11942_v61 = vld [vmem:[%s14849_s1 + $0x1648] sm:$0xff]  }
 0x29e   :  { %10964 = vmatprep.subr.bf16.mxu1 %v11895_v62  ;;  %v9206_v55 = vcombine.low %v82_v52, %v82_v52  ;;  %v11943_v62 = vld [vmem:[%s14849_s1 + $0x16c8] sm:$0xff]  }
 0x2a0   :  { %10943 = vmatpush3.bf16.msra.mxu0 %v11896_v63  ;;  %v11944_v63 = vld [vmem:[%s14849_s1 + $0x1608] sm:$0xff]  }
 0x2a1   :  { %10965 = vmatpush3.bf16.msra.mxu1 %v11897_v0  ;;  %10972 = vmatprep.subr.bf16.mxu0 %v11902_v7  ;;  %v11945_v0 = vld [vmem:[%s14849_s1 + $0x1688] sm:$0xff]   ;;  %v11952_v7 = vld [vmem:[%s14849_s1 + $0x1618] sm:$0xff]  }
 0x2a2   :  { %10994 = vmatprep.subr.bf16.mxu1 %v11903_v8  ;;  %v11953_v8 = vld [vmem:[%s14849_s1 + $0x1698] sm:$0xff]  }
 0x2a3   :  { %8207 = vmatmul.mubr.bf16.vlgmr.msra.gmra.mrb[80].mxu0 %v9200_v3  ;;  %v11948_v3 = vld [vmem:[%s14849_s1 + $0x1610] sm:$0xff]  }
 0x2a4   :  { %8247 = vmatmul.mubr.bf16.vlgmr.msra.gmra.mrb[80].mxu1 %v9202_v5  ;;  %10973 = vmatpush3.bf16.msra.mxu0 %v11904_v9  ;;  %v11950_v5 = vld [vmem:[%s14849_s1 + $0x1658] sm:$0xff]   ;;  %v11954_v9 = vld [vmem:[%s14849_s1 + $0x1660] sm:$0xff]  }
 0x2a5   :  { %10995 = vmatpush3.bf16.msra.mxu1 %v11905_v10  ;;  %10974 = vmatprep.subr.bf16.mxu0 %v11906_v11  ;;  %v11955_v10 = vld [vmem:[%s14849_s1 + $0x16e0] sm:$0xff]  }
 0x2a6   :  { %10996 = vmatprep.subr.bf16.mxu1 %v11907_v12  ;;  %8286 = vmatprep.mubr.bf16.mxu0 %v9205_v54  ;;  %v11956_v12 = vld [vmem:[%s14849_s1 + $0x1620] sm:$0xff]   ;;  %v11985_v54 = vld [vmem:[%s14849_s1 + $0x1790] sm:$0xff]  }
 0x2a8   :  { %10975 = vmatpush3.bf16.msra.mxu0 %v11908_v13 }
 0x2a9   :  { %10997 = vmatpush3.bf16.msra.mxu1 %v11909_v14  ;;  %10976 = vmatprep.subr.bf16.mxu0 %v11910_v15  ;;  %v11957_v14 = vld [vmem:[%s14849_s1 + $0x16a0] sm:$0xff]  }
 0x2aa   :  { %10998 = vmatprep.subr.bf16.mxu1 %v11911_v16 }
 0x2ac   :  { %10977 = vmatpush3.bf16.msra.mxu0 %v11912_v17  ;;  %v11958_v17 = vld [vmem:[%s14849_s1 + $0x1668] sm:$0xff]  }
 0x2ad   :  { %10999 = vmatpush3.bf16.msra.mxu1 %v11913_v18  ;;  %10978 = vmatprep.subr.bf16.mxu0 %v11914_v19 }
 0x2ae   :  { %11000 = vmatprep.subr.bf16.mxu1 %v11915_v20  ;;  %v11959_v20 = vld [vmem:[%s14849_s1 + $0x16e8] sm:$0xff]  }
 0x2b0   :  { %10979 = vmatpush3.bf16.msra.mxu0 %v11916_v21 }
 0x2b1   :  { %11001 = vmatpush3.bf16.msra.mxu1 %v11917_v22  ;;  %10980 = vmatprep.subr.bf16.mxu0 %v11918_v23  ;;  %v11960_v23 = vld [vmem:[%s14849_s1 + $0x1628] sm:$0xff]  }
 0x2b2   :  { %11002 = vmatprep.subr.bf16.mxu1 %v11919_v24 }
 0x2b4   :  { %10981 = vmatpush3.bf16.msra.mxu0 %v11920_v26 }
 0x2b5   :  { %11003 = vmatpush3.bf16.msra.mxu1 %v11921_v28  ;;  %10982 = vmatprep.subr.bf16.mxu0 %v11922_v32  ;;  %v11962_v28 = vld [vmem:[%s14849_s1 + $0x1670] sm:$0xff]  }
 0x2b6   :  { %v10680_v25 = vpop.f32.mrb[56].mxu0  ;;  %11004 = vmatprep.subr.bf16.mxu1 %v11923_v34  ;;  %v11965_v32 = vld [vmem:[%s14849_s1 + $0x16b0] sm:$0xff]   ;;  %v11967_v34 = vld [vmem:[%s14849_s1 + $0x16f8] sm:$0xff]  }
 0x2b7   :  { %v10702_v27 = vpop.f32.mrb[56].mxu1  ;;  %v10681_v29 = vpop.f32.mrb[57].mxu0 }
 0x2b8   :  { %v10682_v30 = vadd.f32 %v10681_v29, %v10680_v25  ;;  %v10703_v31 = vpop.f32.mrb[57].mxu1  ;;  %v10683_v35 = vpop.f32.mrb[58].mxu0  ;;  %10983 = vmatpush3.bf16.msra.mxu0 %v11924_v38  ;;  %v11961_v25 = vld [vmem:[%s14849_s1 + $0x16a8] sm:$0xff]  }
 0x2b9   :  { %v10704_v33 = vadd.f32 %v10703_v31, %v10702_v27  ;;  %v10705_v37 = vpop.f32.mrb[58].mxu1  ;;  %v10684_v40 = vpop.f32.mrb[59].mxu0  ;;  %11005 = vmatpush3.bf16.msra.mxu1 %v11925_v39  ;;  %10984 = vmatprep.subr.bf16.mxu0 %v11926_v43  ;;  %v11964_v31 = vld [vmem:[%s14849_s1 + $0x1630] sm:$0xff]   ;;  %v11968_v35 = vld [vmem:[%s14849_s1 + $0x1638] sm:$0xff]   ;;  %v11974_v43 = vld [vmem:[%s14849_s1 + $0x1740] sm:$0xff]  }
 0x2ba   :  { %v7729_v36 = vadd.f32 %v10682_v30, %v14310_v57  ;;  %v10706_v42 = vpop.f32.mrb[59].mxu1  ;;  %11006 = vmatprep.subr.bf16.mxu1 %v11927_v44  ;;  %v9207_v57 = vcombine.high %v82_v52, %v82_v52  ;;  %v11963_v30 = vld [vmem:[%s14849_s1 + $0x16f0] sm:$0xff]   ;;  %v83_v37 = vld [vmem:[%s14850_s0 + $0x160] sm:$0xff]  ;;  %v84_v40 = vld [vmem:[%s14850_s0 + $0x168] sm:$0xff] }
 0x2bb   :  { %v9208_v38 = vcombine.low %v83_v37, %v83_v37  ;;  %v9209_v39 = vcombine.high %v83_v37, %v83_v37  ;;  %v9211_v42 = vcombine.high %v84_v40, %v84_v40  ;;  %v11975_v44 = vld [vmem:[%s14849_s1 + $0x17c0] sm:$0xff]   ;;  %v11983_v52 = vld [vmem:[%s14849_s1 + $0x17d0] sm:$0xff]  }
 0x2bc   :  { %v14412_v41 = vadd.f32 %v10704_v33, %v7729_v36  ;;  %10985 = vmatpush3.bf16.msra.mxu0 %v11928_v45  ;;  %8326 = vmatprep.mubr.bf16.mxu1 %v9207_v57  ;;  %v11966_v33 = vld [vmem:[%s14849_s1 + $0x1678] sm:$0xff]   ;;  %v11976_v45 = vld [vmem:[%s14849_s1 + $0x1700] sm:$0xff]  }
 0x2bd   :  { %11007 = vmatpush3.bf16.msra.mxu1 %v11929_v46  ;;  %10986 = vmatprep.subr.bf16.mxu0 %v11930_v47  ;;  %v11969_v36 = vld [vmem:[%s14849_s1 + $0x16b8] sm:$0xff]   ;;  %v11977_v46 = vld [vmem:[%s14849_s1 + $0x1780] sm:$0xff]   ;;  %v11978_v47 = vld [vmem:[%s14849_s1 + $0x1748] sm:$0xff]  }
 0x2be   :  { %11008 = vmatprep.subr.bf16.mxu1 %v11931_v48  ;;  %v11979_v48 = vld [vmem:[%s14849_s1 + $0x17c8] sm:$0xff]   ;;  %v11988_v57 = vld [vmem:[%s14849_s1 + $0x1718] sm:$0xff]  }
 0x2c0   :  { %10987 = vmatpush3.bf16.msra.mxu0 %v11932_v49  ;;  %v11980_v49 = vld [vmem:[%s14849_s1 + $0x1708] sm:$0xff]  }
 0x2c1   :  { %11009 = vmatpush3.bf16.msra.mxu1 %v11933_v50  ;;  %11016 = vmatprep.subr.bf16.mxu0 %v11938_v56  ;;  %v11981_v50 = vld [vmem:[%s14849_s1 + $0x1788] sm:$0xff]   ;;  %v11987_v56 = vld [vmem:[%s14849_s1 + $0x17d8] sm:$0xff]  }
 0x2c2   :  { %11038 = vmatprep.subr.bf16.mxu1 %v11939_v58  ;;  %v11989_v58 = vld [vmem:[%s14849_s1 + $0x1798] sm:$0xff]  }
 0x2c3   :  { %8287 = vmatmul.mubr.bf16.vlgmr.msra.gmra.mrb[84].mxu0 %v9204_v53  ;;  %v11984_v53 = vld [vmem:[%s14849_s1 + $0x1710] sm:$0xff]  }
 0x2c4   :  { %8327 = vmatmul.mubr.bf16.vlgmr.msra.gmra.mrb[84].mxu1 %v9206_v55  ;;  %11017 = vmatpush3.bf16.msra.mxu0 %v11940_v59  ;;  %v11986_v55 = vld [vmem:[%s14849_s1 + $0x1758] sm:$0xff]   ;;  %v11990_v59 = vld [vmem:[%s14849_s1 + $0x1760] sm:$0xff]  }
 0x2c5   :  { %11039 = vmatpush3.bf16.msra.mxu1 %v11941_v60  ;;  %11018 = vmatprep.subr.bf16.mxu0 %v11942_v61  ;;  %v11991_v60 = vld [vmem:[%s14849_s1 + $0x17e0] sm:$0xff]  }
 0x2c6   :  { %11040 = vmatprep.subr.bf16.mxu1 %v11943_v62  ;;  %8366 = vmatprep.mubr.bf16.mxu0 %v9209_v39  ;;  %v11992_v62 = vld [vmem:[%s14849_s1 + $0x1720] sm:$0xff]  }
 0x2c7   :  { %8406 = vmatprep.mubr.bf16.mxu1 %v9211_v42 }
 0x2c8   :  { %11019 = vmatpush3.bf16.msra.mxu0 %v11944_v63 }
 0x2c9   :  { %11041 = vmatpush3.bf16.msra.mxu1 %v11945_v0  ;;  %11020 = vmatprep.subr.bf16.mxu0 %v11946_v1  ;;  %v11993_v0 = vld [vmem:[%s14849_s1 + $0x17a0] sm:$0xff]  }
 0x2ca   :  { %11042 = vmatprep.subr.bf16.mxu1 %v11947_v2 }
 0x2cc   :  { %11021 = vmatpush3.bf16.msra.mxu0 %v11948_v3  ;;  %v11994_v3 = vld [vmem:[%s14849_s1 + $0x1768] sm:$0xff]  }
 0x2cd   :  { %11043 = vmatpush3.bf16.msra.mxu1 %v11949_v4  ;;  %11022 = vmatprep.subr.bf16.mxu0 %v11950_v5 }
 0x2ce   :  { %11044 = vmatprep.subr.bf16.mxu1 %v11951_v6  ;;  %v11995_v6 = vld [vmem:[%s14849_s1 + $0x17e8] sm:$0xff]  }
 0x2d0   :  { %11023 = vmatpush3.bf16.msra.mxu0 %v11952_v7 }
 0x2d1   :  { %11045 = vmatpush3.bf16.msra.mxu1 %v11953_v8  ;;  %11024 = vmatprep.subr.bf16.mxu0 %v11954_v9  ;;  %v11996_v9 = vld [vmem:[%s14849_s1 + $0x1728] sm:$0xff]  }
 0x2d2   :  { %11046 = vmatprep.subr.bf16.mxu1 %v11955_v10 }
 0x2d4   :  { %11025 = vmatpush3.bf16.msra.mxu0 %v11956_v12 }
 0x2d5   :  { %11047 = vmatpush3.bf16.msra.mxu1 %v11957_v14  ;;  %11026 = vmatprep.subr.bf16.mxu0 %v11958_v17  ;;  %v11998_v14 = vld [vmem:[%s14849_s1 + $0x1770] sm:$0xff]  }
 0x2d6   :  { %v10724_v11 = vpop.f32.mrb[60].mxu0  ;;  %11048 = vmatprep.subr.bf16.mxu1 %v11959_v20  ;;  %v12000_v17 = vld [vmem:[%s14849_s1 + $0x1730] sm:$0xff]   ;;  %v12003_v20 = vld [vmem:[%s14849_s1 + $0x17f8] sm:$0xff]  }
 0x2d7   :  { %v10746_v13 = vpop.f32.mrb[60].mxu1  ;;  %v10725_v15 = vpop.f32.mrb[61].mxu0 }
 0x2d8   :  { %v10747_v16 = vpop.f32.mrb[61].mxu1  ;;  %v10726_v18 = vadd.f32 %v10725_v15, %v10724_v11  ;;  %v10727_v21 = vpop.f32.mrb[62].mxu0  ;;  %11027 = vmatpush3.bf16.msra.mxu0 %v11960_v23  ;;  %v11997_v11 = vld [vmem:[%s14849_s1 + $0x17a8] sm:$0xff]   ;;  %v85_v23 = vld [vmem:[%s14850_s0 + $0x170] sm:$0xff] }
 0x2d9   :  { %v10748_v19 = vadd.f32 %v10747_v16, %v10746_v13  ;;  %v10749_v22 = vpop.f32.mrb[62].mxu1  ;;  %v10728_v26 = vpop.f32.mrb[63].mxu0  ;;  %11049 = vmatpush3.bf16.msra.mxu1 %v11961_v25  ;;  %11028 = vmatprep.subr.bf16.mxu0 %v11962_v28  ;;  %v11999_v16 = vld [vmem:[%s14849_s1 + $0x17f0] sm:$0xff]   ;;  %v12004_v21 = vld [vmem:[%s14849_s1 + $0x1738] sm:$0xff]   ;;  %v9212_v25 = vcombine.low %v85_v23, %v85_v23 }
 0x2da   :  { %v7809_v24 = vadd.f32 %v10726_v18, %v14412_v41  ;;  %v10750_v27 = vpop.f32.mrb[63].mxu1  ;;  %11050 = vmatprep.subr.bf16.mxu1 %v11963_v30  ;;  %v9210_v41 = vcombine.low %v84_v40, %v84_v40  ;;  %v12001_v18 = vld [vmem:[%s14849_s1 + $0x17b0] sm:$0xff]   ;;  %v12005_v22 = vld [vmem:[%s14849_s1 + $0x17b8] sm:$0xff]   ;;  %v9213_v26 = vcombine.high %v85_v23, %v85_v23 }
 0x2dc   :  { %v14520_v29 = vadd.f32 %v10748_v19, %v7809_v24  ;;  %11029 = vmatpush3.bf16.msra.mxu0 %v11964_v31  ;;  %v12002_v19 = vld [vmem:[%s14849_s1 + $0x1778] sm:$0xff]  }
 0x2dd   :  { %11051 = vmatpush3.bf16.msra.mxu1 %v11965_v32  ;;  %11030 = vmatprep.subr.bf16.mxu0 %v11966_v33  ;;  %v86_v24 = vld [vmem:[%s14850_s0 + $0x178] sm:$0xff] }
 0x2de   :  { %11052 = vmatprep.subr.bf16.mxu1 %v11967_v34  ;;  %v9214_v27 = vcombine.low %v86_v24, %v86_v24  ;;  %v9215_v28 = vcombine.high %v86_v24, %v86_v24 }
 0x2e0   :  { %11031 = vmatpush3.bf16.msra.mxu0 %v11968_v35 }
 0x2e1   :  { %11053 = vmatpush3.bf16.msra.mxu1 %v11969_v36  ;;  %11060 = vmatprep.subr.bf16.mxu0 %v11974_v43 }
 0x2e2   :  { %11082 = vmatprep.subr.bf16.mxu1 %v11975_v44 }
 0x2e3   :  { %8367 = vmatmul.mubr.bf16.vlgmr.msra.gmra.mrb[88].mxu0 %v9208_v38 }
 0x2e4   :  { %8407 = vmatmul.mubr.bf16.vlgmr.msra.gmra.mrb[88].mxu1 %v9210_v41  ;;  %11061 = vmatpush3.bf16.msra.mxu0 %v11976_v45 }
 0x2e5   :  { %11083 = vmatpush3.bf16.msra.mxu1 %v11977_v46  ;;  %11062 = vmatprep.subr.bf16.mxu0 %v11978_v47 }
 0x2e6   :  { %11084 = vmatprep.subr.bf16.mxu1 %v11979_v48  ;;  %8446 = vmatprep.mubr.bf16.mxu0 %v9213_v26 }
 0x2e7   :  { %8486 = vmatprep.mubr.bf16.mxu1 %v9215_v28 }
 0x2e8   :  { %11063 = vmatpush3.bf16.msra.mxu0 %v11980_v49 }
 0x2e9   :  { %11085 = vmatpush3.bf16.msra.mxu1 %v11981_v50  ;;  %11064 = vmatprep.subr.bf16.mxu0 %v11982_v51 }
 0x2ea   :  { %11086 = vmatprep.subr.bf16.mxu1 %v11983_v52 }
 0x2ec   :  { %11065 = vmatpush3.bf16.msra.mxu0 %v11984_v53  ;;  %v12010_v53 = vld [vmem:[%s14852_s3] ss:$8 sps:$4 sm:$0xff]  }
 0x2ed   :  { %11087 = vmatpush3.bf16.msra.mxu1 %v11985_v54  ;;  %11066 = vmatprep.subr.bf16.mxu0 %v11986_v55  ;;  %v12012_v54 = vld [vmem:[%s14852_s3 + $0x4] ss:$8 sps:$4 sm:$0xff]  }
 0x2ee   :  { %11088 = vmatprep.subr.bf16.mxu1 %v11987_v56 }
 0x2f0   :  { %11067 = vmatpush3.bf16.msra.mxu0 %v11988_v57 }
 0x2f1   :  { %11089 = vmatpush3.bf16.msra.mxu1 %v11989_v58  ;;  %11068 = vmatprep.subr.bf16.mxu0 %v11990_v59  ;;  %v12015_v59 = vld [vmem:[%s14852_s3 + $0x14] ss:$8 sps:$4 sm:$0xff]  }
 0x2f2   :  { %11090 = vmatprep.subr.bf16.mxu1 %v11991_v60 }
 0x2f4   :  { %11069 = vmatpush3.bf16.msra.mxu0 %v11992_v62 }
 0x2f5   :  { %11091 = vmatpush3.bf16.msra.mxu1 %v11993_v0  ;;  %11070 = vmatprep.subr.bf16.mxu0 %v11994_v3  ;;  %v12013_v0 = vld [vmem:[%s14852_s3 + $0x10] ss:$8 sps:$4 sm:$0xff]  }
 0x2f6   :  { %v10768_v61 = vpop.f32.mrb[64].mxu0  ;;  %11092 = vmatprep.subr.bf16.mxu1 %v11995_v6  ;;  %v12016_v6 = vld [vmem:[%s14852_s3 + $0x20] ss:$8 sps:$4 sm:$0xff]  }
 0x2f7   :  { %v10790_v63 = vpop.f32.mrb[64].mxu1  ;;  %v10769_v1 = vpop.f32.mrb[65].mxu0 }
 0x2f8   :  { %v10791_v2 = vpop.f32.mrb[65].mxu1  ;;  %v10770_v4 = vadd.f32 %v10769_v1, %v10768_v61  ;;  %v10771_v7 = vpop.f32.mrb[66].mxu0  ;;  %11071 = vmatpush3.bf16.msra.mxu0 %v11996_v9  ;;  %v12090_v9 = vmov 0  }
 0x2f9   :  { %v10792_v5 = vadd.f32 %v10791_v2, %v10790_v63  ;;  %v10793_v8 = vpop.f32.mrb[66].mxu1  ;;  %v10772_v12 = vpop.f32.mrb[67].mxu0  ;;  %11093 = vmatpush3.bf16.msra.mxu1 %v11997_v11  ;;  %11072 = vmatprep.subr.bf16.mxu0 %v11998_v14  ;;  %v12021_v7 = vld [vmem:[%s14852_s3 + $0x34] ss:$8 sps:$4 sm:$0xff]   ;;  %v12024_v11 = vld [vmem:[%s14853_s5 + $0x4] ss:$8 sps:$4 sm:$0xff]  }
 0x2fa   :  { %v7889_v10 = vadd.f32 %v10770_v4, %v14520_v29  ;;  %v10794_v13 = vpop.f32.mrb[67].mxu1  ;;  %11094 = vmatprep.subr.bf16.mxu1 %v11999_v16  ;;  %v12018_v4 = vld [vmem:[%s14852_s3 + $0x24] ss:$8 sps:$4 sm:$0xff]   ;;  %v12019_v8 = vld [vmem:[%s14852_s3 + $0x30] ss:$8 sps:$4 sm:$0xff]  }
 0x2fb   :  { %v12027_v12 = vld [vmem:[%s14853_s5 + $0x14] ss:$8 sps:$4 sm:$0xff]   ;;  %v12025_v13 = vld [vmem:[%s14853_s5 + $0x10] ss:$8 sps:$4 sm:$0xff]   ;;  %v12030_v14 = vld [vmem:[%s14853_s5 + $0x24] ss:$8 sps:$4 sm:$0xff]  }
 0x2fc   :  { %v7929_v15 = vadd.f32 %v10792_v5, %v7889_v10  ;;  %11073 = vmatpush3.bf16.msra.mxu0 %v12000_v17  ;;  %v12022_v10 = vld [vmem:[%s14853_s5] ss:$8 sps:$4 sm:$0xff]   ;;  %v12033_v16 = vld [vmem:[%s14853_s5 + $0x34] ss:$8 sps:$4 sm:$0xff]   ;;  %v12031_v17 = vld [vmem:[%s14853_s5 + $0x30] ss:$8 sps:$4 sm:$0xff]  }
 0x2fd   :  { %11095 = vmatpush3.bf16.msra.mxu1 %v12001_v18  ;;  %11074 = vmatprep.subr.bf16.mxu0 %v12002_v19  ;;  %v12036_v18 = vld [vmem:[%s14853_s5 + $0x44] ss:$8 sps:$4 sm:$0xff]   ;;  %v12034_v19 = vld [vmem:[%s14853_s5 + $0x40] ss:$8 sps:$4 sm:$0xff]  }
 0x2fe   :  { %11096 = vmatprep.subr.bf16.mxu1 %v12003_v20 }
 0x300   :  { %11075 = vmatpush3.bf16.msra.mxu0 %v12004_v21  ;;  %v12039_v21 = vld [vmem:[%s14853_s5 + $0x54] ss:$8 sps:$4 sm:$0xff]  }
 0x301   :  { %11097 = vmatpush3.bf16.msra.mxu1 %v12005_v22  ;;  %8560 = vmatprep.subr.bf16.mxu0 %v12012_v54 }
 0x302   :  { %8809 = vmatprep.subr.bf16.mxu1 %v12024_v11 }
 0x303   :  { %8447 = vmatmul.mubr.bf16.vlgmr.msra.gmra.mrb[92].mxu0 %v9212_v25 }
 0x304   :  { %8487 = vmatmul.mubr.bf16.vlgmr.msra.gmra.mrb[92].mxu1 %v9214_v27  ;;  %8561 = vmatpush1.bf16.msra.mxu0 %v12010_v53 }
 0x305   :  { %8562 = vmatprep.subr.bf16.mxu0 %v12015_v59  ;;  %8592 = vmatprep.mubr.bf16.mxu0 %v12090_v9 }
 0x306   :  { %8810 = vmatpush1.bf16.msra.mxu1 %v12022_v10 }
 0x307   :  { %8811 = vmatprep.subr.bf16.mxu1 %v12027_v12 }
 0x308   :  { %8563 = vmatpush1.bf16.msra.mxu0 %v12013_v0 }
 0x309   :  { %8564 = vmatprep.subr.bf16.mxu0 %v12018_v4 }
 0x30a   :  { %8812 = vmatpush1.bf16.msra.mxu1 %v12025_v13 }
 0x30b   :  { %8813 = vmatprep.subr.bf16.mxu1 %v12030_v14 }
 0x30c   :  { %8565 = vmatpush1.bf16.msra.mxu0 %v12016_v6 }
 0x30d   :  { %8566 = vmatprep.subr.bf16.mxu0 %v12021_v7 }
 0x310   :  { %8567 = vmatpush1.bf16.msra.mxu0 %v12019_v8 }
 0x316   :  { %v10812_v29 = vpop.f32.mrb[68].mxu0 }
 0x317   :  { %v10834_v30 = vpop.f32.mrb[68].mxu1  ;;  %v10813_v31 = vpop.f32.mrb[69].mxu0 }
 0x318   :  { %v10814_v32 = vadd.f32 %v10813_v31, %v10812_v29  ;;  %v10835_v33 = vpop.f32.mrb[69].mxu1  ;;  %v10815_v34 = vpop.f32.mrb[70].mxu0 }
 0x319   :  { %v10836_v35 = vadd.f32 %v10835_v33, %v10834_v30  ;;  %v10837_v36 = vpop.f32.mrb[70].mxu1  ;;  %v10816_v37 = vpop.f32.mrb[71].mxu0  ;;  %v12037_v30 = vld [vmem:[%s14853_s5 + $0x50] ss:$8 sps:$4 sm:$0xff]   ;;  %v12042_v33 = vld [vmem:[%s14853_s5 + $0x64] ss:$8 sps:$4 sm:$0xff]  }
 0x31a   :  { %v7969_v38 = vadd.f32 %v10814_v32, %v7929_v15  ;;  %v10838_v39 = vpop.f32.mrb[71].mxu1  ;;  %v12028_v15 = vld [vmem:[%s14853_s5 + $0x20] ss:$8 sps:$4 sm:$0xff]   ;;  %v12045_v36 = vld [vmem:[%s14853_s5 + $0x74] ss:$8 sps:$4 sm:$0xff]  }
 0x31b   :  { %8814 = vmatpush1.bf16.msra.mxu1 %v12028_v15  ;;  %v12043_v37 = vld [vmem:[%s14853_s5 + $0x70] ss:$8 sps:$4 sm:$0xff]   ;;  %v12046_v39 = vld [vmem:[%s14853_s5 + $0x80] ss:$8 sps:$4 sm:$0xff]  }
 0x31c   :  { %v8009_v40 = vadd.f32 %v10836_v35, %v7969_v38  ;;  %8815 = vmatprep.subr.bf16.mxu1 %v12033_v16  ;;  %v12040_v35 = vld [vmem:[%s14853_s5 + $0x60] ss:$8 sps:$4 sm:$0xff]   ;;  %v12048_v38 = vld [vmem:[%s14853_s5 + $0x84] ss:$8 sps:$4 sm:$0xff]  }
 0x31f   :  { %8816 = vmatpush1.bf16.msra.mxu1 %v12031_v17 }
 0x320   :  { %8817 = vmatprep.subr.bf16.mxu1 %v12036_v18 }
 0x323   :  { %8818 = vmatpush1.bf16.msra.mxu1 %v12034_v19 }
 0x324   :  { %8819 = vmatprep.subr.bf16.mxu1 %v12039_v21 }
 0x327   :  { %8820 = vmatpush1.bf16.msra.mxu1 %v12037_v30  ;;  %v12072_v30 = vld [vmem:[%s14854_s7 + $0x48] sm:$0xff]  }
 0x328   :  { %8821 = vmatprep.subr.bf16.mxu1 %v12042_v33  ;;  %v12075_v33 = vld [vmem:[%s14854_s7 + $0x10] sm:$0xff]  }
 0x32b   :  { %8822 = vmatpush1.bf16.msra.mxu1 %v12040_v35  ;;  %v12077_v35 = vld [vmem:[%s14854_s7 + $0x18] sm:$0xff]  }
 0x32c   :  { %8823 = vmatprep.subr.bf16.mxu1 %v12045_v36  ;;  %v12078_v36 = vld [vmem:[%s14854_s7 + $0x60] sm:$0xff]  }
 0x32f   :  { %8824 = vmatpush1.bf16.msra.mxu1 %v12043_v37  ;;  %v12079_v37 = vld [vmem:[%s14854_s7 + $0x20] sm:$0xff]  }
 0x330   :  { %8825 = vmatprep.subr.bf16.mxu1 %v12048_v38  ;;  %v12080_v38 = vld [vmem:[%s14854_s7 + $0x68] sm:$0xff]  }
 0x333   :  { %8826 = vmatpush1.bf16.msra.mxu1 %v12046_v39  ;;  %v12081_v39 = vld [vmem:[%s14854_s7 + $0x28] sm:$0xff]  }
 0x336   :  { %v10856_v41 = vpop.f32.mrb[72].mxu0 }
 0x337   :  { %v10878_v42 = vpop.f32.mrb[72].mxu1  ;;  %v10857_v43 = vpop.f32.mrb[73].mxu0 }
 0x338   :  { %v10858_v44 = vadd.f32 %v10857_v43, %v10856_v41  ;;  %v10879_v45 = vpop.f32.mrb[73].mxu1  ;;  %v10859_v46 = vpop.f32.mrb[74].mxu0  ;;  %v12049_v41 = vld [vmem:[%s14853_s5 + $0x90] ss:$8 sps:$4 sm:$0xff]   ;;  %v12052_v43 = vld [vmem:[%s14853_s5 + $0xa0] ss:$8 sps:$4 sm:$0xff]  }
 0x339   :  { %v10880_v47 = vadd.f32 %v10879_v45, %v10878_v42  ;;  %v10881_v48 = vpop.f32.mrb[74].mxu1  ;;  %v10860_v49 = vpop.f32.mrb[75].mxu0  ;;  %v12054_v42 = vld [vmem:[%s14853_s5 + $0xa4] ss:$8 sps:$4 sm:$0xff]   ;;  %v12055_v45 = vld [vmem:[%s14853_s5 + $0xb0] ss:$8 sps:$4 sm:$0xff]  }
 0x33a   :  { %v8049_v50 = vadd.f32 %v10858_v44, %v8009_v40  ;;  %v10882_v51 = vpop.f32.mrb[75].mxu1  ;;  %v12051_v40 = vld [vmem:[%s14853_s5 + $0x94] ss:$8 sps:$4 sm:$0xff]   ;;  %v12060_v46 = vld [vmem:[%s14853_s5 + $0xc4] ss:$8 sps:$4 sm:$0xff]  }
 0x33b   :  { %8827 = vmatprep.subr.bf16.mxu1 %v12051_v40  ;;  %v12057_v44 = vld [vmem:[%s14853_s5 + $0xb4] ss:$8 sps:$4 sm:$0xff]   ;;  %v8506_v40 = vlaneseq }
 0x33c   :  { %v8089_v52 = vadd.f32 %v10880_v47, %v8049_v50  ;;  %8828 = vmatpush1.bf16.msra.mxu1 %v12049_v41  ;;  %v12058_v47 = vld [vmem:[%s14853_s5 + $0xc0] ss:$8 sps:$4 sm:$0xff]   ;;  %v12063_v48 = vld [vmem:[%s14853_s5 + $0xd4] ss:$8 sps:$4 sm:$0xff]  }
 0x33d   :  { %8829 = vmatprep.subr.bf16.mxu1 %v12054_v42  ;;  %v8507_v41 = vshrl.u32 %v8506_v40, 7 }
 0x33f   :  { %v8508_v42 = vsub.s32 0, %v8507_v41 }
 0x340   :  { %8830 = vmatpush1.bf16.msra.mxu1 %v12052_v43  ;;  %v8504_v43 = vld [vmem:[%s14855_s4] sm:$0x3] }
 0x341   :  { %8831 = vmatprep.subr.bf16.mxu1 %v12057_v44  ;;  %v8512_v44 = vsub.s32 1, %v8507_v41 }
 0x344   :  { %8832 = vmatpush1.bf16.msra.mxu1 %v12055_v45  ;;  %v8509_v45 = vrot.slane %v8504_v43, %v8508_v42 }
 0x345   :  { %8833 = vmatprep.subr.bf16.mxu1 %v12060_v46  ;;  %v8513_v46 = vrot.slane %v8504_v43, %v8512_v44 }
 0x348   :  { %8834 = vmatpush1.bf16.msra.mxu1 %v12058_v47 }
 0x349   :  { %8835 = vmatprep.subr.bf16.mxu1 %v12063_v48 }
 0x356   :  { %v10900_v55 = vpop.f32.mrb[76].mxu0 }
 0x357   :  { %v10922_v56 = vpop.f32.mrb[76].mxu1  ;;  %v10901_v57 = vpop.f32.mrb[77].mxu0 }
 0x358   :  { %v10923_v58 = vpop.f32.mrb[77].mxu1  ;;  %v10902_v60 = vadd.f32 %v10901_v57, %v10900_v55  ;;  %v10903_v62 = vpop.f32.mrb[78].mxu0  ;;  %v12061_v55 = vld [vmem:[%s14853_s5 + $0xd0] ss:$8 sps:$4 sm:$0xff]  }
 0x359   :  { %v10924_v61 = vadd.f32 %v10923_v58, %v10922_v56  ;;  %v10925_v63 = vpop.f32.mrb[78].mxu1  ;;  %v10904_v1 = vpop.f32.mrb[79].mxu0  ;;  %8836 = vmatpush1.bf16.msra.mxu1 %v12061_v55 }
 0x35a   :  { %v10926_v2 = vpop.f32.mrb[79].mxu1  ;;  %v8129_v3 = vadd.f32 %v10902_v60, %v8089_v52 }
 0x35c   :  { %v8169_v5 = vadd.f32 %v10924_v61, %v8129_v3 }
 0x376   :  { %v10944_v20 = vpop.f32.mrb[80].mxu0 }
 0x377   :  { %v10966_v22 = vpop.f32.mrb[80].mxu1  ;;  %v10945_v23 = vpop.f32.mrb[81].mxu0 }
 0x378   :  { %v10946_v24 = vadd.f32 %v10945_v23, %v10944_v20  ;;  %v10967_v25 = vpop.f32.mrb[81].mxu1  ;;  %v10947_v26 = vpop.f32.mrb[82].mxu0 }
 0x379   :  { %v10968_v27 = vadd.f32 %v10967_v25, %v10966_v22  ;;  %v10969_v28 = vpop.f32.mrb[82].mxu1  ;;  %v10948_v29 = vpop.f32.mrb[83].mxu0  ;;  %v12064_v25 = vld [vmem:[%s14853_s5 + $0xe0] ss:$8 sps:$4 sm:$0xff]   ;;  %v12069_v26 = vld [vmem:[%s14853_s5 + $0xf4] ss:$8 sps:$4 sm:$0xff]  }
 0x37a   :  { %v8209_v31 = vadd.f32 %v10946_v24, %v8169_v5  ;;  %v10970_v32 = vpop.f32.mrb[83].mxu1  ;;  %v12066_v24 = vld [vmem:[%s14853_s5 + $0xe4] ss:$8 sps:$4 sm:$0xff]  }
 0x37b   :  { %8837 = vmatprep.subr.bf16.mxu1 %v12066_v24  ;;  %v12070_v28 = vld [vmem:[%s14854_s7 + $0x40] sm:$0xff]   ;;  %v12074_v32 = vld [vmem:[%s14854_s7 + $0x50] sm:$0xff]  }
 0x37c   :  { %v8249_v34 = vadd.f32 %v10968_v27, %v8209_v31  ;;  %8838 = vmatpush1.bf16.msra.mxu1 %v12064_v25  ;;  %v12067_v27 = vld [vmem:[%s14853_s5 + $0xf0] ss:$8 sps:$4 sm:$0xff]   ;;  %v12071_v29 = vld [vmem:[%s14854_s7] sm:$0xff]   ;;  %11104 = vmatprep.subr.bf16.mxu0 %v12070_v28  ;;  %v12073_v31 = vld [vmem:[%s14854_s7 + $0x8] sm:$0xff]  }
 0x37d   :  { %8839 = vmatprep.subr.bf16.mxu1 %v12069_v26  ;;  %v10042_v24 = vld [vmem:[%s14859_s10] ss:$0 sm:$0xff] }
 0x380   :  { %8840 = vmatpush1.bf16.msra.mxu1 %v12067_v27 }
 0x396   :  { %v10988_v49 = vpop.f32.mrb[84].mxu0 }
 0x397   :  { %v11010_v50 = vpop.f32.mrb[84].mxu1  ;;  %v10989_v51 = vpop.f32.mrb[85].mxu0 }
 0x398   :  { %v10990_v52 = vadd.f32 %v10989_v51, %v10988_v49  ;;  %v11011_v53 = vpop.f32.mrb[85].mxu1  ;;  %v10991_v54 = vpop.f32.mrb[86].mxu0 }
 0x399   :  { %v11012_v56 = vadd.f32 %v11011_v53, %v11010_v50  ;;  %v11013_v57 = vpop.f32.mrb[86].mxu1  ;;  %v10992_v58 = vpop.f32.mrb[87].mxu0 }
 0x39a   :  { %v8289_v59 = vadd.f32 %v10990_v52, %v8249_v34  ;;  %v11014_v60 = vpop.f32.mrb[87].mxu1  ;;  %v12076_v34 = vld [vmem:[%s14854_s7 + $0x58] sm:$0xff]   ;;  %v12082_v57 = vld [vmem:[%s14854_s7 + $0x70] sm:$0xff]  }
 0x39b   :  { %v12083_v58 = vld [vmem:[%s14854_s7 + $0x30] sm:$0xff]   ;;  %v12085_v60 = vld [vmem:[%s14854_s7 + $0x38] sm:$0xff]  }
 0x39c   :  { %v8329_v61 = vadd.f32 %v11012_v56, %v8289_v59  ;;  %v12084_v59 = vld [vmem:[%s14854_s7 + $0x78] sm:$0xff]  }
 0x3b6   :  { %v11032_v62 = vpop.f32.mrb[88].mxu0 }
 0x3b7   :  { %v11054_v63 = vpop.f32.mrb[88].mxu1  ;;  %v11033_v0 = vpop.f32.mrb[89].mxu0 }
 0x3b8   :  { %v11055_v1 = vpop.f32.mrb[89].mxu1  ;;  %v11034_v2 = vadd.f32 %v11033_v0, %v11032_v62  ;;  %v11035_v4 = vpop.f32.mrb[90].mxu0  ;;  %v8637_v62 = vld [vmem:[%s14857_s6] sm:$0x3] }
 0x3b9   :  { %v11056_v3 = vadd.f32 %v11055_v1, %v11054_v63  ;;  %v11057_v5 = vpop.f32.mrb[90].mxu1  ;;  %v11036_v6 = vpop.f32.mrb[91].mxu0  ;;  %v8642_v63 = vrot.slane %v8637_v62, %v8508_v42  ;;  %v8646_v0 = vrot.slane %v8637_v62, %v8512_v44 }
 0x3ba   :  { %v11058_v7 = vpop.f32.mrb[91].mxu1  ;;  %v8369_v8 = vadd.f32 %v11034_v2, %v8329_v61  ;;  %v12091_v61 = vmov 0.0  }
 0x3bc   :  { %v8409_v9 = vadd.f32 %v11056_v3, %v8369_v8 }
 0x3d6   :  { %v11076_v10 = vpop.f32.mrb[92].mxu0 }
 0x3d7   :  { %v11098_v11 = vpop.f32.mrb[92].mxu1  ;;  %v11077_v12 = vpop.f32.mrb[93].mxu0 }
 0x3d8   :  { %v11078_v13 = vadd.f32 %v11077_v12, %v11076_v10  ;;  %v11099_v14 = vpop.f32.mrb[93].mxu1  ;;  %v11079_v15 = vpop.f32.mrb[94].mxu0  ;;  %v12086_v10 = vld [vmem:[%s14856_s9] sm:$0xff]   ;;  %v12087_v12 = vld [vmem:[%s14856_s9 + $0x8] sm:$0xff]  }
 0x3d9   :  { %v11100_v16 = vadd.f32 %v11099_v14, %v11098_v11  ;;  %v11101_v17 = vpop.f32.mrb[94].mxu1  ;;  %v11080_v18 = vpop.f32.mrb[95].mxu0  ;;  %v12089_v14 = vld [vmem:[%s14856_s9 + $0x18] sm:$0xff]  }
 0x3da   :  { %v8449_v19 = vadd.f32 %v11078_v13, %v8409_v9  ;;  %v11102_v20 = vpop.f32.mrb[95].mxu1  ;;  %v12088_v13 = vld [vmem:[%s14856_s9 + $0x10] sm:$0xff]  }
 0x3dc   :  { %v8489_v21 = vadd.f32 %v11100_v16, %v8449_v19  ;;  %v10025_v16 = vld [vmem:[%s14858_s8] ss:$0 sm:$0xff] }
 0x3de   :  { %v8494_v22 = vmax.f32 %v8489_v21, 0.0 }
 0x3e0   :  { %v8495_v23 = vpack.c.bf16 %v8494_v22, %v8494_v22 }
 0x3e2   :  { %9992 = vmatmul.mubr.msk.bf16.vlgmr.msra.gmra.mrb[96].mxu0 %vm8556_vm0, %v8495_v23 }
 0x3e3   :  { %11105 = vmatpush3.bf16.msra.mxu0 %v12071_v29 }
 0x3e4   :  { %11106 = vmatprep.subr.bf16.mxu0 %v12072_v30 }
 0x3e7   :  { %11107 = vmatpush3.bf16.msra.mxu0 %v12073_v31 }
 0x3e8   :  { %11108 = vmatprep.subr.bf16.mxu0 %v12074_v32 }
 0x3eb   :  { %11109 = vmatpush3.bf16.msra.mxu0 %v12075_v33 }
 0x3ec   :  { %11110 = vmatprep.subr.bf16.mxu0 %v12076_v34 }
 0x3ef   :  { %11111 = vmatpush3.bf16.msra.mxu0 %v12077_v35 }
 0x3f0   :  { %11112 = vmatprep.subr.bf16.mxu0 %v12078_v36 }
 0x3f3   :  { %11113 = vmatpush3.bf16.msra.mxu0 %v12079_v37 }
 0x3f4   :  { %11114 = vmatprep.subr.bf16.mxu0 %v12080_v38 }
 0x3f7   :  { %11115 = vmatpush3.bf16.msra.mxu0 %v12081_v39 }
 0x3f8   :  { %11116 = vmatprep.subr.bf16.mxu0 %v12082_v57 }
 0x3fb   :  { %11117 = vmatpush3.bf16.msra.mxu0 %v12083_v58 }
 0x3fc   :  { %11118 = vmatprep.subr.bf16.mxu0 %v12084_v59 }
 0x3ff   :  { %11119 = vmatpush3.bf16.msra.mxu0 %v12085_v60 }
 0x400   :  { %11131 = vmatprep.subr.bf16.mxu0 %v12091_v61 }
 0x4b5   :  { %v8594_v47 = vpop.f32.mrb[96].mxu0 }
 0x4b6   :  { %v8595_v48 = vadd.f32 %v8594_v47, %v8509_v45  ;;  %v8596_v49 = vpop.f32.mrb[97].mxu0 }
 0x4b7   :  { %v8597_v50 = vadd.f32 %v8596_v49, %v8513_v46  ;;  %v8598_v51 = vpop.f32.mrb[98].mxu0 }
 0x4b8   :  { %v8601_v52 = vmax.f32 %v8595_v48, 0.0  ;;  %v8599_v53 = vpop.f32.mrb[99].mxu0 }
 0x4b9   :  { %v8602_v54 = vmax.f32 %v8597_v50, 0.0 }
 0x4ba   :  { %v8603_v56 = vpack.c.bf16 %v8601_v52, %v8601_v52 }
 0x4bb   :  { %v8604_v55 = vpack.c.bf16 %v8602_v54, %v8602_v54 }
 0x4bd   :  { %8841 = vmatprep.mubr.bf16.mxu1 %v8604_v55 }
 0x4be   :  { %8842 = vmatmul.mubr.bf16.vlgmr.msra.gmra.mrb[96].mxu1 %v8603_v56 }
 0x591   :  { %v8843_v1 = vpop.f32.mrb[96].mxu1 }
 0x592   :  { %v8844_v2 = vadd.f32 %v8843_v1, %v8642_v63  ;;  %v8845_v3 = vpop.f32.mrb[97].mxu1 }
 0x593   :  { %v8846_v4 = vadd.f32 %v8845_v3, %v8646_v0  ;;  %v8847_v5 = vpop.f32.mrb[98].mxu1 }
 0x594   :  { %v8850_v6 = vmax.f32 %v8844_v2, 0.0  ;;  %v8848_v7 = vpop.f32.mrb[99].mxu1 }
 0x595   :  { %v8851_v8 = vmax.f32 %v8846_v4, 0.0 }
 0x596   :  { %v8852_v11 = vpack.c.bf16 %v8850_v6, %v8850_v6 }
 0x597   :  { %v8853_v9 = vpack.c.bf16 %v8851_v8, %v8851_v8 }
 0x599   :  { %9021 = vmatprep.mubr.bf16.mxu0 %v8853_v9 }
 0x59a   :  { %9022 = vmatmul.mubr.bf16.vlgmr.msra.gmra.mrb[100].mxu0 %v8852_v11 }
 0x59b   :  { %11132 = vmatpush3.bf16.msra.mxu0 %v12086_v10  ;;  %11139 = vmatprep.mubr.msk.bf16.mxu0 %vm12092_vm1, %v12091_v61 }
 0x59c   :  { %11133 = vmatprep.subr.bf16.mxu0 %v12091_v61 }
 0x59f   :  { %11134 = vmatpush3.bf16.msra.mxu0 %v12087_v12 }
 0x5a0   :  { %11135 = vmatprep.subr.bf16.mxu0 %v12091_v61 }
 0x5a3   :  { %11136 = vmatpush3.bf16.msra.mxu0 %v12088_v13 }
 0x5a4   :  { %11137 = vmatprep.subr.bf16.mxu0 %v12091_v61 }
 0x5a7   :  { %11138 = vmatpush3.bf16.msra.mxu0 %v12089_v14 }
 0x66d   :  { %v11120_v15 = vpop.f32.mrb[100].mxu0 }
 0x66e   :  { %v11121_v17 = vpop.f32.mrb[101].mxu0 }
 0x66f   :  { %v11122_v18 = vadd.f32 %v11121_v17, %v11120_v15  ;;  %v11123_v19 = vpop.f32.mrb[102].mxu0 }
 0x670   :  { %v11124_v20 = vpop.f32.mrb[103].mxu0 }
 0x671   :  { %v9024_v21 = vadd.f32 %v11122_v18, %v10025_v16 }
 0x673   :  { %v9029_v22 = vmax.f32 %v9024_v21, 0.0 }
 0x675   :  { %v9030_v23 = vpack.c.bf16 %v9029_v22, %v9029_v22 }
 0x677   :  { %11140 = vmatmul.mubr.msk.bf16.vlgmr.msra.gmra.mrb[104].mxu0 %vm8556_vm0, %v9030_v23 }
 0x74a   :  { %v9107_v25 = vpop.f32.mrb[104].mxu0 }
 0x74b   :  { %v9108_v26 = vadd.f32 %v10042_v24, %v9107_v25  ;;  %v11141_v27 = vpop.f32.mrb[105].mxu0 }
 0x74c   :  { %v9110_v28 = vpop.f32.mrb[106].mxu0 }
 0x74d   :  { %9114 = vst.msk [vmem:[%s14860_s11] sm:$0xff] %vm9113_vm2, %v9108_v26  ;;  %v11142_v29 = vpop.f32.mrb[107].mxu0 }

</bundles_post_ra>
